<compile_context>
chip_gen: v6e
topology: v6e:2x2x1
jax: 0.10.0
libtpu: 0.0.40
codegen_flags: <defaults>
</compile_context>

<pallas_src>
import functools

import jax
import jax.numpy as jnp
import numpy as np
from jax import lax
from jax.experimental import pallas as pl
from jax.experimental.pallas import tpu as pltpu

_VMEM_LIMIT = 40 * 1024 * 1024  # explicit scoped-VMEM budget (<=56 MiB for v7x)


# ----------------------------------------------------------------------------- utils
def _round_up(x, m):
    return (x + m - 1) // m * m


def _pick_tn(n):
    # Prefer tiles giving >= 4 grid steps so the weight-stream DMA pipeline has
    # depth (perf review: 2-step grids expose the first weight-tile DMA).
    for t in (512, 256, 128):
        if n % t == 0 and n // t >= 4:
            return t
    for t in (512, 256, 128):
        if n % t == 0:
            return t
    return n


def _pick_hh(h):
    for cand in (4, 2, 1):
        if h % cand == 0:
            return cand
    return 1


def _mish(x):
    # PyTorch F.softplus uses threshold=20 (returns x when x > 20).
    sp = jnp.where(x > 20.0, x, jnp.log1p(jnp.exp(jnp.minimum(x, 20.0))))
    return x * jnp.tanh(sp)


# ----------------------------------------------------------------------------- fused matmul kernel
def _matmul_kernel(a_ref, w_ref, b_ref, o_ref, *, act):
    acc = jnp.dot(a_ref[...], w_ref[...], preferred_element_type=jnp.float32)
    acc = acc + b_ref[...]
    if act == "mish":
        acc = _mish(acc)
    o_ref[...] = acc.astype(o_ref.dtype)


def pallas_matmul(a, w, bias, act=None, out_dtype=jnp.bfloat16):
    """a: (M, K), w: (K, N), bias: (N,) -> (M, N).

    bf16 operands on the MXU, f32 accumulation.  Single resident M tile + grid
    over lane-dense N tiles only, so `w` is streamed from HBM exactly once."""
    M, K = a.shape
    N = w.shape[1]
    Mp = _round_up(max(M, 8), 8)
    tn = _pick_tn(N)
    Np = _round_up(N, tn)
    a_p = a.astype(jnp.bfloat16)
    if Mp != M:
        a_p = jnp.pad(a_p, ((0, Mp - M), (0, 0)))
    w_p = w.astype(jnp.bfloat16)
    b_p = bias.astype(jnp.float32).reshape(1, N)
    if Np != N:
        w_p = jnp.pad(w_p, ((0, 0), (0, Np - N)))
        b_p = jnp.pad(b_p, ((0, 0), (0, Np - N)))
    out = pl.pallas_call(
        functools.partial(_matmul_kernel, act=act),
        out_shape=jax.ShapeDtypeStruct((Mp, Np), out_dtype),
        grid=(Np // tn,),
        in_specs=[
            pl.BlockSpec((Mp, K), lambda j: (0, 0)),   # resident, fetched once
            pl.BlockSpec((K, tn), lambda j: (0, j)),   # weights streamed once
            pl.BlockSpec((1, tn), lambda j: (0, j)),
        ],
        out_specs=pl.BlockSpec((Mp, tn), lambda j: (0, j)),
        compiler_params=pltpu.CompilerParams(
            dimension_semantics=("parallel",),
            vmem_limit_bytes=_VMEM_LIMIT),
    )(a_p, w_p, b_p)
    if Mp != M or Np != N:
        out = out[:M, :N]
    return out


# ----------------------------------------------------------------------------- fused SeparableConv kernel
def _sepconv_kernel(*refs, batch, height, width, channels, cc, hh,
                    act_in, act_out, has_res):
    """Grid step j owns one Cout tile.

    At j == 0 the depthwise 3x3 (with optional fused input Mish) for the whole
    batch is written into the persistent VMEM scratch `dw_ref` (bf16, (N*H*W, C)).
    The 3x3 halo is handled entirely in VMEM via a small zero-bordered per-chunk
    scratch (no XLA jnp.pad round trip through HBM).  Every j then runs the
    pointwise matmul for its Cout tile straight out of VMEM (bf16 MXU, f32
    accumulation) + bias [+ epilogue Mish] [+ fused residual add]."""
    if has_res:
        (x_ref, dww_ref, dwb_ref, pww_ref, pwb_ref, res_ref,
         o_ref, xpad_ref, dw_ref) = refs
    else:
        (x_ref, dww_ref, dwb_ref, pww_ref, pwb_ref,
         o_ref, xpad_ref, dw_ref) = refs
        res_ref = None

    j = pl.program_id(0)
    n_hs = height // hh
    n_cc = channels // cc

    @pl.when(j == 0)
    def _depthwise():
        # Zero the (small) padded-chunk scratch once; the interior is rewritten
        # per channel chunk, borders stay zero -> halo handled in VMEM.
        xpad_ref[...] = jnp.zeros(xpad_ref.shape, xpad_ref.dtype)

        def chunk_body(ci, carry):
            c0 = pl.multiple_of(ci * cc, cc)          # lane-aligned channel chunk
            # padded (optionally Mish-activated) copy of this channel chunk
            xs_in = x_ref[:, :, :, pl.ds(c0, cc)]
            if act_in:
                xs_in = _mish(xs_in.astype(jnp.float32))
            xpad_ref[:, 1:height + 1, 1:width + 1, :] = xs_in.astype(xpad_ref.dtype)

            # loop-invariant broadcasts hoisted once per chunk (perf review)
            wk = dww_ref[:, pl.ds(c0, cc)]            # (9, cc) f32
            wtap = [wk[t].reshape(1, 1, cc) for t in range(9)]
            bias = dwb_ref[:, pl.ds(c0, cc)].reshape(1, 1, cc)

            # static (fully visible) batch / H-strip loops; all slices are
            # compile-time aligned.  Only ONE column-phase accumulator is live
            # at a time -> no vreg spills even at hh=4.
            for b in range(batch):
                for si in range(n_hs):
                    h0 = si * hh
                    xs = xpad_ref[b, h0:h0 + hh + 2, :, :].astype(jnp.float32)
                    res = None
                    for dw in range(3):
                        col = xs[0:hh] * wtap[dw]
                        col = col + xs[1:hh + 1] * wtap[3 + dw]
                        col = col + xs[2:hh + 2] * wtap[6 + dw]
                        part = col[:, dw:dw + width, :]
                        res = part if res is None else res + part
                    res = res + bias
                    r0 = (b * height + h0) * width
                    dw_ref[r0:r0 + hh * width, pl.ds(c0, cc)] = (
                        res.reshape(hh * width, cc).astype(dw_ref.dtype))
            return carry

        lax.fori_loop(0, n_cc, chunk_body, 0)

    # pointwise 1x1 (BN folded) for this Cout tile, straight off the VMEM scratch
    acc = jnp.dot(dw_ref[...], pww_ref[...], preferred_element_type=jnp.float32)
    acc = acc + pwb_ref[...]
    if act_out == "mish":
        acc = _mish(acc)                              # overlaps MXU/DMA (EUP slot)
    if has_res:
        acc = acc + res_ref[...].astype(jnp.float32)  # fused residual add
    o_ref[...] = acc.astype(o_ref.dtype)


def fused_sepconv(x, dw_w9, dw_b, pw_w, pw_b, act_in, act_out=None, residual=None):
    """x: (N,H,W,C) bf16 (UNPADDED); dw_w9: (9,C) f32; dw_b: (1,C)/(C,) f32;
    pw_w: (C,Cout) bf16; pw_b: (1,Cout)/(Cout,) f32; residual: (N,H,W,Cout) or None
    -> (N,H,W,Cout) bf16.
    [optional Mish] + depthwise 3x3 (stride 1, pad 1) + pointwise 1x1 (BN folded)
    [+ optional Mish] [+ residual], all in ONE pallas_call."""
    n, h, w, c = x.shape
    cout = pw_w.shape[1]
    hh = _pick_hh(h)
    cc = 128 if c % 128 == 0 else c
    tn = _pick_tn(cout)
    coutp = _round_up(cout, tn)
    rows = n * h * w
    has_res = residual is not None

    x_bf = x.astype(jnp.bfloat16)
    pw_w_p = pw_w.astype(jnp.bfloat16)
    pw_b_p = pw_b.astype(jnp.float32).reshape(1, cout)
    if coutp != cout:
        pw_w_p = jnp.pad(pw_w_p, ((0, 0), (0, coutp - cout)))
        pw_b_p = jnp.pad(pw_b_p, ((0, 0), (0, coutp - cout)))

    in_specs = [
        pl.BlockSpec((n, h, w, c), lambda j: (0, 0, 0, 0)),   # unpadded x, fetched once
        pl.BlockSpec((9, c), lambda j: (0, 0)),
        pl.BlockSpec((1, c), lambda j: (0, 0)),
        pl.BlockSpec((c, tn), lambda j: (0, j)),              # pw weights streamed once
        pl.BlockSpec((1, tn), lambda j: (0, j)),
    ]
    args = [x_bf, dw_w9.astype(jnp.float32),
            dw_b.astype(jnp.float32).reshape(1, c), pw_w_p, pw_b_p]
    if has_res:
        assert coutp == cout, "residual fusion requires Cout % tn == 0"
        in_specs.append(pl.BlockSpec((rows, tn), lambda j: (0, j)))
        args.append(residual.reshape(rows, cout).astype(jnp.bfloat16))

    out = pl.pallas_call(
        functools.partial(_sepconv_kernel, batch=n, height=h, width=w, channels=c,
                          cc=cc, hh=hh, act_in=act_in, act_out=act_out,
                          has_res=has_res),
        out_shape=jax.ShapeDtypeStruct((rows, coutp), jnp.bfloat16),
        grid=(coutp // tn,),
        in_specs=in_specs,
        out_specs=pl.BlockSpec((rows, tn), lambda j: (0, j)),
        scratch_shapes=[
            pltpu.VMEM((n, h + 2, w + 2, cc), jnp.bfloat16),  # per-chunk halo scratch
            pltpu.VMEM((rows, c), jnp.bfloat16),              # depthwise result
        ],
        compiler_params=pltpu.CompilerParams(
            # Cout tiles reuse the depthwise scratch written at j==0 -> sequential.
            # TODO(synk): v7x could mark this core-parallel with a per-core
            # "already computed" SMEM flag (scratch is per-core).
            dimension_semantics=("arbitrary",),
            vmem_limit_bytes=_VMEM_LIMIT),
    )(*args)
    if coutp != cout:
        out = out[:, :cout]
    return out.reshape(n, h, w, cout)


# ----------------------------------------------------------------------------- conv / pooling glue
def conv3x3_im2col(x, wmat, bias, padding, act=None):
    """Stride-1 3x3 conv as im2col + fused Pallas matmul.  wmat: (9*Cin, Cout)."""
    n, h, w, cin = x.shape
    xp = jnp.pad(x, ((0, 0), (padding, padding), (padding, padding), (0, 0)))
    ho, wo = xp.shape[1] - 2, xp.shape[2] - 2
    cols = [xp[:, dh:dh + ho, dw:dw + wo, :] for dh in range(3) for dw in range(3)]
    patches = jnp.concatenate(cols, axis=-1).reshape(n * ho * wo, 9 * cin)
    y = pallas_matmul(patches, wmat, bias, act=act)
    return y.reshape(n, ho, wo, -1)


def maxpool3x3_s2_p1(x):
    # TODO(synk): MaxPool2d(3,2,1) kept in XLA glue (negligible vs. conv cost).
    return lax.reduce_window(x, jnp.array(-jnp.inf, x.dtype), lax.max,
                             (1, 3, 3, 1), (1, 2, 2, 1),
                             [(0, 0), (1, 1), (1, 1), (0, 0)])


# ----------------------------------------------------------------------------- parameters (synthetic, deterministic)
def _normal(key, shape, std):
    return std * jax.random.normal(key, shape, jnp.float32)


def _bn_params(key, c):
    k1, k2, k3 = jax.random.split(key, 3)
    return (1.0 + 0.1 * jax.random.normal(k1, (c,), jnp.float32),
            0.1 * jax.random.normal(k2, (c,), jnp.float32),
            0.1 * jax.random.normal(k3, (c,), jnp.float32),
            jnp.ones((c,), jnp.float32))


def _sep_params(key, cin, cout, bias):
    k1, k2, k3, k4 = jax.random.split(key, 4)
    z = jnp.zeros
    return dict(
        dw_w=_normal(k1, (3, 3, cin), (2.0 / 9.0) ** 0.5),
        dw_b=(0.01 * jax.random.normal(k2, (cin,), jnp.float32)
              if bias else z((cin,), jnp.float32)),
        pw_w=_normal(k3, (cin, cout), (2.0 / cin) ** 0.5),
        pw_b=(0.01 * jax.random.normal(k4, (cout,), jnp.float32)
              if bias else z((cout,), jnp.float32)))


def _block_params(key, cin, cout, reps, strides):
    keys = jax.random.split(key, 2 * reps + 2)
    rep = []
    fin = cin
    for r in range(reps):               # grow_first: first rep grows cin -> cout
        rep.append(dict(sep=_sep_params(keys[2 * r], fin, cout, bias=False),
                        bn=_bn_params(keys[2 * r + 1], cout)))
        fin = cout
    p = dict(rep=rep, strides=strides, cin=cin, cout=cout)
    if cout != cin or strides != 1:
        p["skip_w"] = _normal(keys[-2], (cin, cout), (2.0 / cin) ** 0.5)
        p["skip_bn"] = _bn_params(keys[-1], cout)
    return p


def init_params(key, num_class):
    ks = jax.random.split(key, 17)
    p = {}
    p["conv1_w"] = _normal(ks[0], (3, 3, 1, 192), (2.0 / 9.0) ** 0.5)
    p["conv1_b"] = 0.01 * jax.random.normal(ks[1], (192,), jnp.float32)
    p["bn1"] = _bn_params(ks[2], 192)
    p["conv2_w"] = _normal(ks[3], (3, 3, 192, 512), (2.0 / (9 * 192)) ** 0.5)
    p["conv2_b"] = 0.01 * jax.random.normal(ks[4], (512,), jnp.float32)
    p["bn2"] = _bn_params(ks[5], 512)
    p["block1"] = _block_params(ks[6], 512, 1024, 3, 1)
    p["block2"] = _block_params(ks[7], 1024, 1024, 3, 1)
    p["block3"] = _block_params(ks[8], 1024, 1024, 3, 1)
    p["block4"] = _block_params(ks[9], 1024, 1024, 3, 1)
    p["block5"] = _block_params(ks[10], 1024, 1024, 3, 1)
    p["block6"] = _block_params(ks[11], 1024, 2048, 2, 2)
    p["block7"] = _block_params(ks[12], 2048, 3072, 2, 2)
    p["conv3"] = _sep_params(ks[13], 3072, 4096, bias=True)
    p["fc_w"] = _normal(ks[14], (4096, num_class), (1.0 / 4096.0) ** 0.5)
    p["fc_b"] = 0.01 * jax.random.normal(ks[15], (num_class,), jnp.float32)
    return p


def _fold_bn(w, b, bn, eps=1e-5):
    gamma, beta, mean, var = bn
    scale = gamma / jnp.sqrt(var + eps)
    return w * scale, (b - mean) * scale + beta


def prepare_params(raw):
    """Fold eval-mode BatchNorms into the adjacent convs and pre-cast the large
    pointwise / im2col weights to bf16 ONCE on the host (outside the jitted
    forward), so the forward streams half the HBM bytes and never re-folds.

    TODO(synk): fp8 (v7x) / int8 (v6e) weight quantization with per-channel
    scales folded here would halve the dominant weight stream (needs accuracy
    validation; v5e has no fp8 path)."""
    p = {}
    w, b = _fold_bn(raw["conv1_w"], raw["conv1_b"], raw["bn1"])
    p["conv1_w"], p["conv1_b"] = w, b
    w, b = _fold_bn(raw["conv2_w"], raw["conv2_b"], raw["bn2"])
    p["conv2_w"] = w.reshape(9 * 192, 512).astype(jnp.bfloat16)
    p["conv2_b"] = b
    for name in ("block1", "block2", "block3", "block4", "block5", "block6", "block7"):
        rb = raw[name]
        blk = dict(rep=[])
        for r in rb["rep"]:
            sep = r["sep"]
            pw_w, pw_b = _fold_bn(sep["pw_w"], sep["pw_b"], r["bn"])
            cin = sep["dw_w"].shape[-1]
            blk["rep"].append(dict(
                dw_w=sep["dw_w"].reshape(9, cin),
                dw_b=sep["dw_b"].reshape(1, cin),
                pw_w=pw_w.astype(jnp.bfloat16),
                pw_b=pw_b.reshape(1, -1)))
        if "skip_w" in rb:
            cout = rb["cout"]
            sw, sb = _fold_bn(rb["skip_w"], jnp.zeros((cout,), jnp.float32), rb["skip_bn"])
            blk["skip_w"] = sw.astype(jnp.bfloat16)
            blk["skip_b"] = sb
        p[name] = blk
    c3 = raw["conv3"]
    p["conv3"] = dict(dw_w=c3["dw_w"].reshape(9, 3072), dw_b=c3["dw_b"].reshape(1, 3072),
                      pw_w=c3["pw_w"].astype(jnp.bfloat16), pw_b=c3["pw_b"].reshape(1, 4096))
    p["fc_w"], p["fc_b"] = raw["fc_w"], raw["fc_b"]
    return p


# block name -> stride (kept static / out of the jitted pytree)
_BLOCKS = (("block1", 1), ("block2", 1), ("block3", 1), ("block4", 1),
           ("block5", 1), ("block6", 2), ("block7", 2))


# ----------------------------------------------------------------------------- model forward
def block_forward(x, p, strides):
    if "skip_w" in p:
        skip_in = x[:, ::strides, ::strides, :] if strides != 1 else x
        ns, hs, ws, cs = skip_in.shape
        skip = pallas_matmul(skip_in.reshape(ns * hs * ws, cs), p["skip_w"], p["skip_b"])
        skip = skip.reshape(ns, hs, ws, -1)
    else:
        skip = x

    reps = p["rep"]
    nreps = len(reps)
    fuse_res = (strides == 1)    # residual fused into the last rep's epilogue
    h = x
    for i, r in enumerate(reps):
        last = (i == nreps - 1)
        # Pre-activation Mish: for reps 2..N it is produced by the PREVIOUS rep's
        # epilogue (act_out='mish', overlaps MXU/DMA); only the first rep applies
        # it on the way into the depthwise (its input is the raw block input,
        # which also feeds the residual path un-activated).
        h = fused_sepconv(h, r["dw_w"], r["dw_b"], r["pw_w"], r["pw_b"],
                          act_in=(i == 0),
                          act_out=None if last else "mish",
                          residual=(skip if (fuse_res and last) else None))
    if strides != 1:
        h = maxpool3x3_s2_p1(h)
        # TODO(synk): residual add after the maxpool kept in XLA glue (tiny).
        h = h + skip
    return h


def wide_tip_xception_forward(x_nchw, p):
    x = jnp.transpose(x_nchw, (0, 2, 3, 1)).astype(jnp.float32)        # NCHW -> NHWC

    # conv1 + bn1(folded) + mish.
    # TODO(synk): conv1 (Cin=1, K=9) and the final FC (M=2) are degenerate matmuls
    # that leave the MXU empty; left to XLA.
    x = lax.conv_general_dilated(x, p["conv1_w"], (2, 2), ((1, 1), (1, 1)),
                                 dimension_numbers=("NHWC", "HWIO", "NHWC"))
    x = _mish(x + p["conv1_b"]).astype(jnp.bfloat16)

    x = conv3x3_im2col(x, p["conv2_w"], p["conv2_b"], padding=1)        # conv2 + bn2

    for name, strides in _BLOCKS:
        x = block_forward(x, p[name], strides)

    # mish -> SeparableConv2d(3072, 4096, 3, pad=0) -> mish, all in one fused
    # kernel: run the pad=1 kernel and keep the interior (interior of a zero-padded
    # conv == the 'valid' pad=0 conv).
    c3 = p["conv3"]
    y = fused_sepconv(x, c3["dw_w"], c3["dw_b"], c3["pw_w"], c3["pw_b"],
                      act_in=True, act_out="mish")
    y = y[:, 1:-1, 1:-1, :]

    pooled = jnp.mean(y.astype(jnp.float32), axis=(1, 2))               # avg_pool (1,1)
    return pooled @ p["fc_w"] + p["fc_b"]                               # fc (plain JAX)


# ----------------------------------------------------------------------------- self-tests (kernel vs. plain-JAX references)
def _sepconv_reference(x, dw_w, dw_b, pw_w, pw_b, act_in, act_out, residual=None):
    c = x.shape[-1]
    xf = x.astype(jnp.float32)
    if act_in:
        xf = _mish(xf).astype(jnp.bfloat16).astype(jnp.float32)
    xp = jnp.pad(xf, ((0, 0), (1, 1), (1, 1), (0, 0)))
    dw = lax.conv_general_dilated(xp, dw_w.reshape(3, 3, 1, c), (1, 1), "VALID",
                                  dimension_numbers=("NHWC", "HWIO", "NHWC"),
                                  feature_group_count=c)
    dw = dw + dw_b.reshape(1, 1, 1, c)
    a = dw.astype(jnp.bfloat16).astype(jnp.float32)
    wf = pw_w.astype(jnp.bfloat16).astype(jnp.float32)
    y = jnp.einsum("nhwc,cd->nhwd", a, wf) + pw_b.reshape(1, 1, 1, -1)
    if act_out == "mish":
        y = _mish(y)
    if residual is not None:
        y = y + residual.astype(jnp.float32)
    return y


def _self_test():
    key = jax.random.PRNGKey(1)
    k1, k2, k3, k4, k5, k6 = jax.random.split(key, 6)
    # fused separable conv (mish-in, mish-out, fused residual) vs. reference
    n, h, w, c, co = 2, 8, 8, 256, 1024
    x = jax.random.normal(k1, (n, h, w, c), jnp.float32).astype(jnp.bfloat16)
    dw_w = 0.2 * jax.random.normal(k2, (3, 3, c), jnp.float32)
    dw_b = 0.05 * jax.random.normal(k3, (c,), jnp.float32)
    pw_w = jax.random.normal(k4, (c, co), jnp.float32) / np.sqrt(c)
    pw_b = 0.05 * jax.random.normal(k5, (co,), jnp.float32)
    res = (0.3 * jax.random.normal(k6, (n, h, w, co), jnp.float32)).astype(jnp.bfloat16)
    got = fused_sepconv(x, dw_w.reshape(9, c), dw_b, pw_w.astype(jnp.bfloat16), pw_b,
                        act_in=True, act_out="mish", residual=res).astype(jnp.float32)
    want = _sepconv_reference(x, dw_w, dw_b, pw_w, pw_b, True, "mish", res)
    np.testing.assert_allclose(np.asarray(got), np.asarray(want), rtol=6e-2, atol=6e-2)


# ----------------------------------------------------------------------------- main
if __name__ == "__main__":
    _self_test()

    key = jax.random.PRNGKey(0)
    kp, kx = jax.random.split(key)
    num_class = 10
    raw = init_params(kp, num_class)
    params = prepare_params(raw)            # fold BN + bf16-cast weights once (host)

    # Smallest spatial size that keeps conv3 (3x3, pad 0) valid: 32x32 input.
    x = jax.random.normal(kx, (2, 1, 32, 32), jnp.float32)              # NCHW input
    fwd = jax.jit(wide_tip_xception_forward)
    out = jax.block_until_ready(fwd(x, params))
    assert out.shape == (2, num_class), out.shape
    assert bool(jnp.all(jnp.isfinite(out)))
    print("KERNEL_OK")
</pallas_src>

<mosaic_0001>
module attributes {stable_mosaic.version = 11 : i64} {
  func.func @_sepconv_kernel(%arg0: i32, %arg1: memref<2x8x8x256xbf16, #tpu.memory_space<vmem>>, %arg2: memref<9x256xf32, #tpu.memory_space<vmem>>, %arg3: memref<1x256xf32, #tpu.memory_space<vmem>>, %arg4: memref<256x256xbf16, #tpu.memory_space<vmem>>, %arg5: memref<1x256xf32, #tpu.memory_space<vmem>>, %arg6: memref<128x256xbf16, #tpu.memory_space<vmem>>, %arg7: memref<128x256xbf16, #tpu.memory_space<vmem>>, %arg8: memref<2x10x10x128xbf16, #tpu.memory_space<vmem>>, %arg9: memref<128x256xbf16, #tpu.memory_space<vmem>>) attributes {dimension_semantics = [#tpu.dimension_semantics<arbitrary>], iteration_bounds = array<i64: 4>, scalar_prefetch = 0 : i64, scratch_operands = 2 : i64, tpu.core_type = #tpu.core_type<tc>, window_params = [{pipeline_mode = #tpu.pipeline_mode<synchronous>, transform_indices = @transform_0, window_bounds = array<i64: 2, 8, 8, 256>}, {pipeline_mode = #tpu.pipeline_mode<synchronous>, transform_indices = @transform_1, window_bounds = array<i64: 9, 256>}, {pipeline_mode = #tpu.pipeline_mode<synchronous>, transform_indices = @transform_2, window_bounds = array<i64: 1, 256>}, {transform_indices = @transform_3, window_bounds = array<i64: 256, 256>}, {transform_indices = @transform_4, window_bounds = array<i64: 1, 256>}, {transform_indices = @transform_5, window_bounds = array<i64: 128, 256>}, {transform_indices = @transform_6, window_bounds = array<i64: 128, 256>}]} {
    %c0_i32 = arith.constant 0 : i32
    %0 = arith.cmpi eq, %arg0, %c0_i32 : i32
    %1 = arith.extui %0 : i1 to i32
    %c0_i32_0 = arith.constant 0 : i32
    %2 = arith.cmpi ne, %1, %c0_i32_0 : i32
    scf.if %2 {
      %cst_12 = arith.constant 0.000000e+00 : bf16
      %23 = vector.broadcast %cst_12 : bf16 to vector<2x10x10x128xbf16>
      %c0_13 = arith.constant 0 : index
      %c0_14 = arith.constant 0 : index
      %c0_15 = arith.constant 0 : index
      %c0_16 = arith.constant 0 : index
      %24 = vector.load %arg8[%c0_13, %c0_14, %c0_15, %c0_16] : memref<2x10x10x128xbf16, #tpu.memory_space<vmem>>, vector<2x10x10x128xbf16>
      tpu.vector_store %arg8[%c0_13, %c0_14, %c0_15, %c0_16], %23 {strides = array<i32>} : memref<2x10x10x128xbf16, #tpu.memory_space<vmem>>, vector<2x10x10x128xbf16>,
      %c0_i32_17 = arith.constant 0 : i32
      %c2_i32 = arith.constant 2 : i32
      %25 = arith.addi %c0_i32_17, %c2_i32 : i32
      %c1_i32 = arith.constant 1 : i32
      scf.for %arg10 = %c0_i32_17 to %25 step %c1_i32  : i32 {
        %c128_i32 = arith.constant 128 : i32
        %26 = arith.muli %arg10, %c128_i32 : i32
        %27 = tpu.assume_multiple %26, 128 : i32
        %c0_19 = arith.constant 0 : index
        %c0_20 = arith.constant 0 : index
        %c0_21 = arith.constant 0 : index
        %28 = arith.index_cast %27 : i32 to index
        %29 = vector.load %arg1[%c0_19, %c0_20, %c0_21, %28] : memref<2x8x8x256xbf16, #tpu.memory_space<vmem>>, vector<2x8x8x128xbf16>
        %30 = arith.extf %29 : vector<2x8x8x128xbf16> to vector<2x8x8x128xf32>
        %cst_22 = arith.constant 2.000000e+01 : f32
        %31 = vector.broadcast %cst_22 : f32 to vector<2x8x8x128xf32>
        %32 = arith.cmpf ogt, %30, %31 : vector<2x8x8x128xf32>
        %cst_23 = arith.constant 2.000000e+01 : f32
        %33 = vector.broadcast %cst_23 : f32 to vector<2x8x8x128xf32>
        %34 = arith.minimumf %30, %33 : vector<2x8x8x128xf32>
        %35 = math.exp %34 : vector<2x8x8x128xf32>
        %36 = math.log1p %35 : vector<2x8x8x128xf32>
        %37 = arith.select %32, %30, %36 : vector<2x8x8x128xi1>, vector<2x8x8x128xf32>
        %38 = math.tanh %37 : vector<2x8x8x128xf32>
        %39 = arith.mulf %30, %38 : vector<2x8x8x128xf32>
        %40 = arith.truncf %39 : vector<2x8x8x128xf32> to vector<2x8x8x128xbf16>
        %c0_24 = arith.constant 0 : index
        %c1 = arith.constant 1 : index
        %c1_25 = arith.constant 1 : index
        %c0_26 = arith.constant 0 : index
        %41 = vector.load %arg8[%c0_24, %c1, %c1_25, %c0_26] : memref<2x10x10x128xbf16, #tpu.memory_space<vmem>>, vector<2x8x8x128xbf16>
        tpu.vector_store %arg8[%c0_24, %c1, %c1_25, %c0_26], %40 {strides = array<i32>} : memref<2x10x10x128xbf16, #tpu.memory_space<vmem>>, vector<2x8x8x128xbf16>,
        %c0_27 = arith.constant 0 : index
        %42 = arith.index_cast %27 : i32 to index
        %43 = vector.load %arg2[%c0_27, %42] : memref<9x256xf32, #tpu.memory_space<vmem>>, vector<9x128xf32>
        %44 = vector.extract_strided_slice %43 {offsets = [0, 0], sizes = [1, 128], strides = [1, 1]} : vector<9x128xf32> to vector<1x128xf32>
        %45 = vector.shape_cast %44 : vector<1x128xf32> to vector<128xf32>
        %46 = vector.shape_cast %45 : vector<128xf32> to vector<1x1x128xf32>
        %47 = vector.extract_strided_slice %43 {offsets = [1, 0], sizes = [1, 128], strides = [1, 1]} : vector<9x128xf32> to vector<1x128xf32>
        %48 = vector.shape_cast %47 : vector<1x128xf32> to vector<128xf32>
        %49 = vector.shape_cast %48 : vector<128xf32> to vector<1x1x128xf32>
        %50 = vector.extract_strided_slice %43 {offsets = [2, 0], sizes = [1, 128], strides = [1, 1]} : vector<9x128xf32> to vector<1x128xf32>
        %51 = vector.shape_cast %50 : vector<1x128xf32> to vector<128xf32>
        %52 = vector.shape_cast %51 : vector<128xf32> to vector<1x1x128xf32>
        %53 = vector.extract_strided_slice %43 {offsets = [3, 0], sizes = [1, 128], strides = [1, 1]} : vector<9x128xf32> to vector<1x128xf32>
        %54 = vector.shape_cast %53 : vector<1x128xf32> to vector<128xf32>
        %55 = vector.shape_cast %54 : vector<128xf32> to vector<1x1x128xf32>
        %56 = vector.extract_strided_slice %43 {offsets = [4, 0], sizes = [1, 128], strides = [1, 1]} : vector<9x128xf32> to vector<1x128xf32>
        %57 = vector.shape_cast %56 : vector<1x128xf32> to vector<128xf32>
        %58 = vector.shape_cast %57 : vector<128xf32> to vector<1x1x128xf32>
        %59 = vector.extract_strided_slice %43 {offsets = [5, 0], sizes = [1, 128], strides = [1, 1]} : vector<9x128xf32> to vector<1x128xf32>
        %60 = vector.shape_cast %59 : vector<1x128xf32> to vector<128xf32>
        %61 = vector.shape_cast %60 : vector<128xf32> to vector<1x1x128xf32>
        %62 = vector.extract_strided_slice %43 {offsets = [6, 0], sizes = [1, 128], strides = [1, 1]} : vector<9x128xf32> to vector<1x128xf32>
        %63 = vector.shape_cast %62 : vector<1x128xf32> to vector<128xf32>
        %64 = vector.shape_cast %63 : vector<128xf32> to vector<1x1x128xf32>
        %65 = vector.extract_strided_slice %43 {offsets = [7, 0], sizes = [1, 128], strides = [1, 1]} : vector<9x128xf32> to vector<1x128xf32>
        %66 = vector.shape_cast %65 : vector<1x128xf32> to vector<128xf32>
        %67 = vector.shape_cast %66 : vector<128xf32> to vector<1x1x128xf32>
        %68 = vector.extract_strided_slice %43 {offsets = [8, 0], sizes = [1, 128], strides = [1, 1]} : vector<9x128xf32> to vector<1x128xf32>
        %69 = vector.shape_cast %68 : vector<1x128xf32> to vector<128xf32>
        %70 = vector.shape_cast %69 : vector<128xf32> to vector<1x1x128xf32>
        %c0_28 = arith.constant 0 : index
        %71 = arith.index_cast %27 : i32 to index
        %72 = vector.load %arg3[%c0_28, %71] : memref<1x256xf32, #tpu.memory_space<vmem>>, vector<1x128xf32>
        %73 = vector.shape_cast %72 : vector<1x128xf32> to vector<1x1x128xf32>
        %c0_29 = arith.constant 0 : index
        %c0_30 = arith.constant 0 : index
        %c0_31 = arith.constant 0 : index
        %c0_32 = arith.constant 0 : index
        %74 = vector.load %arg8[%c0_29, %c0_30, %c0_31, %c0_32] : memref<2x10x10x128xbf16, #tpu.memory_space<vmem>>, vector<1x6x10x128xbf16>
        %75 = vector.shape_cast %74 : vector<1x6x10x128xbf16> to vector<6x10x128xbf16>
        %76 = arith.extf %75 : vector<6x10x128xbf16> to vector<6x10x128xf32>
        %77 = vector.extract_strided_slice %76 {offsets = [0, 0, 0], sizes = [4, 10, 128], strides = [1, 1, 1]} : vector<6x10x128xf32> to vector<4x10x128xf32>
        %78 = vector.broadcast %46 : vector<1x1x128xf32> to vector<4x10x128xf32>
        %79 = arith.mulf %77, %78 : vector<4x10x128xf32>
        %80 = vector.extract_strided_slice %76 {offsets = [1, 0, 0], sizes = [4, 10, 128], strides = [1, 1, 1]} : vector<6x10x128xf32> to vector<4x10x128xf32>
        %81 = vector.broadcast %55 : vector<1x1x128xf32> to vector<4x10x128xf32>
        %82 = arith.mulf %80, %81 : vector<4x10x128xf32>
        %83 = arith.addf %79, %82 : vector<4x10x128xf32>
        %84 = vector.extract_strided_slice %76 {offsets = [2, 0, 0], sizes = [4, 10, 128], strides = [1, 1, 1]} : vector<6x10x128xf32> to vector<4x10x128xf32>
        %85 = vector.broadcast %64 : vector<1x1x128xf32> to vector<4x10x128xf32>
        %86 = arith.mulf %84, %85 : vector<4x10x128xf32>
        %87 = arith.addf %83, %86 : vector<4x10x128xf32>
        %88 = vector.extract_strided_slice %87 {offsets = [0, 0, 0], sizes = [4, 8, 128], strides = [1, 1, 1]} : vector<4x10x128xf32> to vector<4x8x128xf32>
        %89 = vector.extract_strided_slice %76 {offsets = [0, 0, 0], sizes = [4, 10, 128], strides = [1, 1, 1]} : vector<6x10x128xf32> to vector<4x10x128xf32>
        %90 = vector.broadcast %49 : vector<1x1x128xf32> to vector<4x10x128xf32>
        %91 = arith.mulf %89, %90 : vector<4x10x128xf32>
        %92 = vector.extract_strided_slice %76 {offsets = [1, 0, 0], sizes = [4, 10, 128], strides = [1, 1, 1]} : vector<6x10x128xf32> to vector<4x10x128xf32>
        %93 = vector.broadcast %58 : vector<1x1x128xf32> to vector<4x10x128xf32>
        %94 = arith.mulf %92, %93 : vector<4x10x128xf32>
        %95 = arith.addf %91, %94 : vector<4x10x128xf32>
        %96 = vector.extract_strided_slice %76 {offsets = [2, 0, 0], sizes = [4, 10, 128], strides = [1, 1, 1]} : vector<6x10x128xf32> to vector<4x10x128xf32>
        %97 = vector.broadcast %67 : vector<1x1x128xf32> to vector<4x10x128xf32>
        %98 = arith.mulf %96, %97 : vector<4x10x128xf32>
        %99 = arith.addf %95, %98 : vector<4x10x128xf32>
        %100 = vector.extract_strided_slice %99 {offsets = [0, 1, 0], sizes = [4, 8, 128], strides = [1, 1, 1]} : vector<4x10x128xf32> to vector<4x8x128xf32>
        %101 = arith.addf %88, %100 : vector<4x8x128xf32>
        %102 = vector.extract_strided_slice %76 {offsets = [0, 0, 0], sizes = [4, 10, 128], strides = [1, 1, 1]} : vector<6x10x128xf32> to vector<4x10x128xf32>
        %103 = vector.broadcast %52 : vector<1x1x128xf32> to vector<4x10x128xf32>
        %104 = arith.mulf %102, %103 : vector<4x10x128xf32>
        %105 = vector.extract_strided_slice %76 {offsets = [1, 0, 0], sizes = [4, 10, 128], strides = [1, 1, 1]} : vector<6x10x128xf32> to vector<4x10x128xf32>
        %106 = vector.broadcast %61 : vector<1x1x128xf32> to vector<4x10x128xf32>
        %107 = arith.mulf %105, %106 : vector<4x10x128xf32>
        %108 = arith.addf %104, %107 : vector<4x10x128xf32>
        %109 = vector.extract_strided_slice %76 {offsets = [2, 0, 0], sizes = [4, 10, 128], strides = [1, 1, 1]} : vector<6x10x128xf32> to vector<4x10x128xf32>
        %110 = vector.broadcast %70 : vector<1x1x128xf32> to vector<4x10x128xf32>
        %111 = arith.mulf %109, %110 : vector<4x10x128xf32>
        %112 = arith.addf %108, %111 : vector<4x10x128xf32>
        %113 = vector.extract_strided_slice %112 {offsets = [0, 2, 0], sizes = [4, 8, 128], strides = [1, 1, 1]} : vector<4x10x128xf32> to vector<4x8x128xf32>
        %114 = arith.addf %101, %113 : vector<4x8x128xf32>
        %115 = vector.broadcast %73 : vector<1x1x128xf32> to vector<4x8x128xf32>
        %116 = arith.addf %114, %115 : vector<4x8x128xf32>
        %117 = vector.shape_cast %116 : vector<4x8x128xf32> to vector<32x128xf32>
        %118 = arith.truncf %117 : vector<32x128xf32> to vector<32x128xbf16>
        %c0_33 = arith.constant 0 : index
        %119 = arith.index_cast %27 : i32 to index
        %120 = vector.load %arg9[%c0_33, %119] : memref<128x256xbf16, #tpu.memory_space<vmem>>, vector<32x128xbf16>
        tpu.vector_store %arg9[%c0_33, %119], %118 {strides = array<i32>} : memref<128x256xbf16, #tpu.memory_space<vmem>>, vector<32x128xbf16>,
        %c0_34 = arith.constant 0 : index
        %c4 = arith.constant 4 : index
        %c0_35 = arith.constant 0 : index
        %c0_36 = arith.constant 0 : index
        %121 = vector.load %arg8[%c0_34, %c4, %c0_35, %c0_36] : memref<2x10x10x128xbf16, #tpu.memory_space<vmem>>, vector<1x6x10x128xbf16>
        %122 = vector.shape_cast %121 : vector<1x6x10x128xbf16> to vector<6x10x128xbf16>
        %123 = arith.extf %122 : vector<6x10x128xbf16> to vector<6x10x128xf32>
        %124 = vector.extract_strided_slice %123 {offsets = [0, 0, 0], sizes = [4, 10, 128], strides = [1, 1, 1]} : vector<6x10x128xf32> to vector<4x10x128xf32>
        %125 = vector.broadcast %46 : vector<1x1x128xf32> to vector<4x10x128xf32>
        %126 = arith.mulf %124, %125 : vector<4x10x128xf32>
        %127 = vector.extract_strided_slice %123 {offsets = [1, 0, 0], sizes = [4, 10, 128], strides = [1, 1, 1]} : vector<6x10x128xf32> to vector<4x10x128xf32>
        %128 = vector.broadcast %55 : vector<1x1x128xf32> to vector<4x10x128xf32>
        %129 = arith.mulf %127, %128 : vector<4x10x128xf32>
        %130 = arith.addf %126, %129 : vector<4x10x128xf32>
        %131 = vector.extract_strided_slice %123 {offsets = [2, 0, 0], sizes = [4, 10, 128], strides = [1, 1, 1]} : vector<6x10x128xf32> to vector<4x10x128xf32>
        %132 = vector.broadcast %64 : vector<1x1x128xf32> to vector<4x10x128xf32>
        %133 = arith.mulf %131, %132 : vector<4x10x128xf32>
        %134 = arith.addf %130, %133 : vector<4x10x128xf32>
        %135 = vector.extract_strided_slice %134 {offsets = [0, 0, 0], sizes = [4, 8, 128], strides = [1, 1, 1]} : vector<4x10x128xf32> to vector<4x8x128xf32>
        %136 = vector.extract_strided_slice %123 {offsets = [0, 0, 0], sizes = [4, 10, 128], strides = [1, 1, 1]} : vector<6x10x128xf32> to vector<4x10x128xf32>
        %137 = vector.broadcast %49 : vector<1x1x128xf32> to vector<4x10x128xf32>
        %138 = arith.mulf %136, %137 : vector<4x10x128xf32>
        %139 = vector.extract_strided_slice %123 {offsets = [1, 0, 0], sizes = [4, 10, 128], strides = [1, 1, 1]} : vector<6x10x128xf32> to vector<4x10x128xf32>
        %140 = vector.broadcast %58 : vector<1x1x128xf32> to vector<4x10x128xf32>
        %141 = arith.mulf %139, %140 : vector<4x10x128xf32>
        %142 = arith.addf %138, %141 : vector<4x10x128xf32>
        %143 = vector.extract_strided_slice %123 {offsets = [2, 0, 0], sizes = [4, 10, 128], strides = [1, 1, 1]} : vector<6x10x128xf32> to vector<4x10x128xf32>
        %144 = vector.broadcast %67 : vector<1x1x128xf32> to vector<4x10x128xf32>
        %145 = arith.mulf %143, %144 : vector<4x10x128xf32>
        %146 = arith.addf %142, %145 : vector<4x10x128xf32>
        %147 = vector.extract_strided_slice %146 {offsets = [0, 1, 0], sizes = [4, 8, 128], strides = [1, 1, 1]} : vector<4x10x128xf32> to vector<4x8x128xf32>
        %148 = arith.addf %135, %147 : vector<4x8x128xf32>
        %149 = vector.extract_strided_slice %123 {offsets = [0, 0, 0], sizes = [4, 10, 128], strides = [1, 1, 1]} : vector<6x10x128xf32> to vector<4x10x128xf32>
        %150 = vector.broadcast %52 : vector<1x1x128xf32> to vector<4x10x128xf32>
        %151 = arith.mulf %149, %150 : vector<4x10x128xf32>
        %152 = vector.extract_strided_slice %123 {offsets = [1, 0, 0], sizes = [4, 10, 128], strides = [1, 1, 1]} : vector<6x10x128xf32> to vector<4x10x128xf32>
        %153 = vector.broadcast %61 : vector<1x1x128xf32> to vector<4x10x128xf32>
        %154 = arith.mulf %152, %153 : vector<4x10x128xf32>
        %155 = arith.addf %151, %154 : vector<4x10x128xf32>
        %156 = vector.extract_strided_slice %123 {offsets = [2, 0, 0], sizes = [4, 10, 128], strides = [1, 1, 1]} : vector<6x10x128xf32> to vector<4x10x128xf32>
        %157 = vector.broadcast %70 : vector<1x1x128xf32> to vector<4x10x128xf32>
        %158 = arith.mulf %156, %157 : vector<4x10x128xf32>
        %159 = arith.addf %155, %158 : vector<4x10x128xf32>
        %160 = vector.extract_strided_slice %159 {offsets = [0, 2, 0], sizes = [4, 8, 128], strides = [1, 1, 1]} : vector<4x10x128xf32> to vector<4x8x128xf32>
        %161 = arith.addf %148, %160 : vector<4x8x128xf32>
        %162 = vector.broadcast %73 : vector<1x1x128xf32> to vector<4x8x128xf32>
        %163 = arith.addf %161, %162 : vector<4x8x128xf32>
        %164 = vector.shape_cast %163 : vector<4x8x128xf32> to vector<32x128xf32>
        %165 = arith.truncf %164 : vector<32x128xf32> to vector<32x128xbf16>
        %c32 = arith.constant 32 : index
        %166 = arith.index_cast %27 : i32 to index
        %167 = vector.load %arg9[%c32, %166] : memref<128x256xbf16, #tpu.memory_space<vmem>>, vector<32x128xbf16>
        tpu.vector_store %arg9[%c32, %166], %165 {strides = array<i32>} : memref<128x256xbf16, #tpu.memory_space<vmem>>, vector<32x128xbf16>,
        %c1_37 = arith.constant 1 : index
        %c0_38 = arith.constant 0 : index
        %c0_39 = arith.constant 0 : index
        %c0_40 = arith.constant 0 : index
        %168 = vector.load %arg8[%c1_37, %c0_38, %c0_39, %c0_40] : memref<2x10x10x128xbf16, #tpu.memory_space<vmem>>, vector<1x6x10x128xbf16>
        %169 = vector.shape_cast %168 : vector<1x6x10x128xbf16> to vector<6x10x128xbf16>
        %170 = arith.extf %169 : vector<6x10x128xbf16> to vector<6x10x128xf32>
        %171 = vector.extract_strided_slice %170 {offsets = [0, 0, 0], sizes = [4, 10, 128], strides = [1, 1, 1]} : vector<6x10x128xf32> to vector<4x10x128xf32>
        %172 = vector.broadcast %46 : vector<1x1x128xf32> to vector<4x10x128xf32>
        %173 = arith.mulf %171, %172 : vector<4x10x128xf32>
        %174 = vector.extract_strided_slice %170 {offsets = [1, 0, 0], sizes = [4, 10, 128], strides = [1, 1, 1]} : vector<6x10x128xf32> to vector<4x10x128xf32>
        %175 = vector.broadcast %55 : vector<1x1x128xf32> to vector<4x10x128xf32>
        %176 = arith.mulf %174, %175 : vector<4x10x128xf32>
        %177 = arith.addf %173, %176 : vector<4x10x128xf32>
        %178 = vector.extract_strided_slice %170 {offsets = [2, 0, 0], sizes = [4, 10, 128], strides = [1, 1, 1]} : vector<6x10x128xf32> to vector<4x10x128xf32>
        %179 = vector.broadcast %64 : vector<1x1x128xf32> to vector<4x10x128xf32>
        %180 = arith.mulf %178, %179 : vector<4x10x128xf32>
        %181 = arith.addf %177, %180 : vector<4x10x128xf32>
        %182 = vector.extract_strided_slice %181 {offsets = [0, 0, 0], sizes = [4, 8, 128], strides = [1, 1, 1]} : vector<4x10x128xf32> to vector<4x8x128xf32>
        %183 = vector.extract_strided_slice %170 {offsets = [0, 0, 0], sizes = [4, 10, 128], strides = [1, 1, 1]} : vector<6x10x128xf32> to vector<4x10x128xf32>
        %184 = vector.broadcast %49 : vector<1x1x128xf32> to vector<4x10x128xf32>
        %185 = arith.mulf %183, %184 : vector<4x10x128xf32>
        %186 = vector.extract_strided_slice %170 {offsets = [1, 0, 0], sizes = [4, 10, 128], strides = [1, 1, 1]} : vector<6x10x128xf32> to vector<4x10x128xf32>
        %187 = vector.broadcast %58 : vector<1x1x128xf32> to vector<4x10x128xf32>
        %188 = arith.mulf %186, %187 : vector<4x10x128xf32>
        %189 = arith.addf %185, %188 : vector<4x10x128xf32>
        %190 = vector.extract_strided_slice %170 {offsets = [2, 0, 0], sizes = [4, 10, 128], strides = [1, 1, 1]} : vector<6x10x128xf32> to vector<4x10x128xf32>
        %191 = vector.broadcast %67 : vector<1x1x128xf32> to vector<4x10x128xf32>
        %192 = arith.mulf %190, %191 : vector<4x10x128xf32>
        %193 = arith.addf %189, %192 : vector<4x10x128xf32>
        %194 = vector.extract_strided_slice %193 {offsets = [0, 1, 0], sizes = [4, 8, 128], strides = [1, 1, 1]} : vector<4x10x128xf32> to vector<4x8x128xf32>
        %195 = arith.addf %182, %194 : vector<4x8x128xf32>
        %196 = vector.extract_strided_slice %170 {offsets = [0, 0, 0], sizes = [4, 10, 128], strides = [1, 1, 1]} : vector<6x10x128xf32> to vector<4x10x128xf32>
        %197 = vector.broadcast %52 : vector<1x1x128xf32> to vector<4x10x128xf32>
        %198 = arith.mulf %196, %197 : vector<4x10x128xf32>
        %199 = vector.extract_strided_slice %170 {offsets = [1, 0, 0], sizes = [4, 10, 128], strides = [1, 1, 1]} : vector<6x10x128xf32> to vector<4x10x128xf32>
        %200 = vector.broadcast %61 : vector<1x1x128xf32> to vector<4x10x128xf32>
        %201 = arith.mulf %199, %200 : vector<4x10x128xf32>
        %202 = arith.addf %198, %201 : vector<4x10x128xf32>
        %203 = vector.extract_strided_slice %170 {offsets = [2, 0, 0], sizes = [4, 10, 128], strides = [1, 1, 1]} : vector<6x10x128xf32> to vector<4x10x128xf32>
        %204 = vector.broadcast %70 : vector<1x1x128xf32> to vector<4x10x128xf32>
        %205 = arith.mulf %203, %204 : vector<4x10x128xf32>
        %206 = arith.addf %202, %205 : vector<4x10x128xf32>
        %207 = vector.extract_strided_slice %206 {offsets = [0, 2, 0], sizes = [4, 8, 128], strides = [1, 1, 1]} : vector<4x10x128xf32> to vector<4x8x128xf32>
        %208 = arith.addf %195, %207 : vector<4x8x128xf32>
        %209 = vector.broadcast %73 : vector<1x1x128xf32> to vector<4x8x128xf32>
        %210 = arith.addf %208, %209 : vector<4x8x128xf32>
        %211 = vector.shape_cast %210 : vector<4x8x128xf32> to vector<32x128xf32>
        %212 = arith.truncf %211 : vector<32x128xf32> to vector<32x128xbf16>
        %c64 = arith.constant 64 : index
        %213 = arith.index_cast %27 : i32 to index
        %214 = vector.load %arg9[%c64, %213] : memref<128x256xbf16, #tpu.memory_space<vmem>>, vector<32x128xbf16>
        tpu.vector_store %arg9[%c64, %213], %212 {strides = array<i32>} : memref<128x256xbf16, #tpu.memory_space<vmem>>, vector<32x128xbf16>,
        %c1_41 = arith.constant 1 : index
        %c4_42 = arith.constant 4 : index
        %c0_43 = arith.constant 0 : index
        %c0_44 = arith.constant 0 : index
        %215 = vector.load %arg8[%c1_41, %c4_42, %c0_43, %c0_44] : memref<2x10x10x128xbf16, #tpu.memory_space<vmem>>, vector<1x6x10x128xbf16>
        %216 = vector.shape_cast %215 : vector<1x6x10x128xbf16> to vector<6x10x128xbf16>
        %217 = arith.extf %216 : vector<6x10x128xbf16> to vector<6x10x128xf32>
        %218 = vector.extract_strided_slice %217 {offsets = [0, 0, 0], sizes = [4, 10, 128], strides = [1, 1, 1]} : vector<6x10x128xf32> to vector<4x10x128xf32>
        %219 = vector.broadcast %46 : vector<1x1x128xf32> to vector<4x10x128xf32>
        %220 = arith.mulf %218, %219 : vector<4x10x128xf32>
        %221 = vector.extract_strided_slice %217 {offsets = [1, 0, 0], sizes = [4, 10, 128], strides = [1, 1, 1]} : vector<6x10x128xf32> to vector<4x10x128xf32>
        %222 = vector.broadcast %55 : vector<1x1x128xf32> to vector<4x10x128xf32>
        %223 = arith.mulf %221, %222 : vector<4x10x128xf32>
        %224 = arith.addf %220, %223 : vector<4x10x128xf32>
        %225 = vector.extract_strided_slice %217 {offsets = [2, 0, 0], sizes = [4, 10, 128], strides = [1, 1, 1]} : vector<6x10x128xf32> to vector<4x10x128xf32>
        %226 = vector.broadcast %64 : vector<1x1x128xf32> to vector<4x10x128xf32>
        %227 = arith.mulf %225, %226 : vector<4x10x128xf32>
        %228 = arith.addf %224, %227 : vector<4x10x128xf32>
        %229 = vector.extract_strided_slice %228 {offsets = [0, 0, 0], sizes = [4, 8, 128], strides = [1, 1, 1]} : vector<4x10x128xf32> to vector<4x8x128xf32>
        %230 = vector.extract_strided_slice %217 {offsets = [0, 0, 0], sizes = [4, 10, 128], strides = [1, 1, 1]} : vector<6x10x128xf32> to vector<4x10x128xf32>
        %231 = vector.broadcast %49 : vector<1x1x128xf32> to vector<4x10x128xf32>
        %232 = arith.mulf %230, %231 : vector<4x10x128xf32>
        %233 = vector.extract_strided_slice %217 {offsets = [1, 0, 0], sizes = [4, 10, 128], strides = [1, 1, 1]} : vector<6x10x128xf32> to vector<4x10x128xf32>
        %234 = vector.broadcast %58 : vector<1x1x128xf32> to vector<4x10x128xf32>
        %235 = arith.mulf %233, %234 : vector<4x10x128xf32>
        %236 = arith.addf %232, %235 : vector<4x10x128xf32>
        %237 = vector.extract_strided_slice %217 {offsets = [2, 0, 0], sizes = [4, 10, 128], strides = [1, 1, 1]} : vector<6x10x128xf32> to vector<4x10x128xf32>
        %238 = vector.broadcast %67 : vector<1x1x128xf32> to vector<4x10x128xf32>
        %239 = arith.mulf %237, %238 : vector<4x10x128xf32>
        %240 = arith.addf %236, %239 : vector<4x10x128xf32>
        %241 = vector.extract_strided_slice %240 {offsets = [0, 1, 0], sizes = [4, 8, 128], strides = [1, 1, 1]} : vector<4x10x128xf32> to vector<4x8x128xf32>
        %242 = arith.addf %229, %241 : vector<4x8x128xf32>
        %243 = vector.extract_strided_slice %217 {offsets = [0, 0, 0], sizes = [4, 10, 128], strides = [1, 1, 1]} : vector<6x10x128xf32> to vector<4x10x128xf32>
        %244 = vector.broadcast %52 : vector<1x1x128xf32> to vector<4x10x128xf32>
        %245 = arith.mulf %243, %244 : vector<4x10x128xf32>
        %246 = vector.extract_strided_slice %217 {offsets = [1, 0, 0], sizes = [4, 10, 128], strides = [1, 1, 1]} : vector<6x10x128xf32> to vector<4x10x128xf32>
        %247 = vector.broadcast %61 : vector<1x1x128xf32> to vector<4x10x128xf32>
        %248 = arith.mulf %246, %247 : vector<4x10x128xf32>
        %249 = arith.addf %245, %248 : vector<4x10x128xf32>
        %250 = vector.extract_strided_slice %217 {offsets = [2, 0, 0], sizes = [4, 10, 128], strides = [1, 1, 1]} : vector<6x10x128xf32> to vector<4x10x128xf32>
        %251 = vector.broadcast %70 : vector<1x1x128xf32> to vector<4x10x128xf32>
        %252 = arith.mulf %250, %251 : vector<4x10x128xf32>
        %253 = arith.addf %249, %252 : vector<4x10x128xf32>
        %254 = vector.extract_strided_slice %253 {offsets = [0, 2, 0], sizes = [4, 8, 128], strides = [1, 1, 1]} : vector<4x10x128xf32> to vector<4x8x128xf32>
        %255 = arith.addf %242, %254 : vector<4x8x128xf32>
        %256 = vector.broadcast %73 : vector<1x1x128xf32> to vector<4x8x128xf32>
        %257 = arith.addf %255, %256 : vector<4x8x128xf32>
        %258 = vector.shape_cast %257 : vector<4x8x128xf32> to vector<32x128xf32>
        %259 = arith.truncf %258 : vector<32x128xf32> to vector<32x128xbf16>
        %c96 = arith.constant 96 : index
        %260 = arith.index_cast %27 : i32 to index
        %261 = vector.load %arg9[%c96, %260] : memref<128x256xbf16, #tpu.memory_space<vmem>>, vector<32x128xbf16>
        tpu.vector_store %arg9[%c96, %260], %259 {strides = array<i32>} : memref<128x256xbf16, #tpu.memory_space<vmem>>, vector<32x128xbf16>,
      }
      %c2_i32_18 = arith.constant 2 : i32
    } else {
    }
    %c0 = arith.constant 0 : index
    %c0_1 = arith.constant 0 : index
    %3 = vector.load %arg9[%c0, %c0_1] : memref<128x256xbf16, #tpu.memory_space<vmem>>, vector<128x256xbf16>
    %c0_2 = arith.constant 0 : index
    %c0_3 = arith.constant 0 : index
    %4 = vector.load %arg4[%c0_2, %c0_3] : memref<256x256xbf16, #tpu.memory_space<vmem>>, vector<256x256xbf16>
    %cst = arith.constant dense<0.000000e+00> : vector<128x256xf32>
    %5 = tpu.matmul %3, %4, %cst {dimension_numbers = #tpu.dot_dimension_numbers<[1], [0], [0], [1], [0, 0, 1, 1], [], []>} : vector<128x256xbf16>, vector<256x256xbf16>, vector<128x256xf32> -> vector<128x256xf32>
    %c0_4 = arith.constant 0 : index
    %c0_5 = arith.constant 0 : index
    %6 = vector.load %arg5[%c0_4, %c0_5] : memref<1x256xf32, #tpu.memory_space<vmem>>, vector<1x256xf32>
    %7 = vector.broadcast %6 : vector<1x256xf32> to vector<128x256xf32>
    %8 = arith.addf %5, %7 : vector<128x256xf32>
    %cst_6 = arith.constant 2.000000e+01 : f32
    %9 = vector.broadcast %cst_6 : f32 to vector<128x256xf32>
    %10 = arith.cmpf ogt, %8, %9 : vector<128x256xf32>
    %cst_7 = arith.constant 2.000000e+01 : f32
    %11 = vector.broadcast %cst_7 : f32 to vector<128x256xf32>
    %12 = arith.minimumf %8, %11 : vector<128x256xf32>
    %13 = math.exp %12 : vector<128x256xf32>
    %14 = math.log1p %13 : vector<128x256xf32>
    %15 = arith.select %10, %8, %14 : vector<128x256xi1>, vector<128x256xf32>
    %16 = math.tanh %15 : vector<128x256xf32>
    %17 = arith.mulf %8, %16 : vector<128x256xf32>
    %c0_8 = arith.constant 0 : index
    %c0_9 = arith.constant 0 : index
    %18 = vector.load %arg6[%c0_8, %c0_9] : memref<128x256xbf16, #tpu.memory_space<vmem>>, vector<128x256xbf16>
    %19 = arith.extf %18 : vector<128x256xbf16> to vector<128x256xf32>
    %20 = arith.addf %17, %19 : vector<128x256xf32>
    %21 = arith.truncf %20 : vector<128x256xf32> to vector<128x256xbf16>
    %c0_10 = arith.constant 0 : index
    %c0_11 = arith.constant 0 : index
    %22 = vector.load %arg7[%c0_10, %c0_11] : memref<128x256xbf16, #tpu.memory_space<vmem>>, vector<128x256xbf16>
    tpu.vector_store %arg7[%c0_10, %c0_11], %21 {strides = array<i32>} : memref<128x256xbf16, #tpu.memory_space<vmem>>, vector<128x256xbf16>,
    return
  }
  func.func @transform_0(%arg0: i32) -> (i32, i32, i32, i32) {
    %c0_i32 = arith.constant 0 : i32
    %c0_i32_0 = arith.constant 0 : i32
    %c0_i32_1 = arith.constant 0 : i32
    %c0_i32_2 = arith.constant 0 : i32
    %c0_i32_3 = arith.constant 0 : i32
    return %c0_i32, %c0_i32_0, %c0_i32_1, %c0_i32_2 : i32, i32, i32, i32
  }
  func.func @transform_1(%arg0: i32) -> (i32, i32) {
    %c0_i32 = arith.constant 0 : i32
    %c0_i32_0 = arith.constant 0 : i32
    %c0_i32_1 = arith.constant 0 : i32
    return %c0_i32, %c0_i32_0 : i32, i32
  }
  func.func @transform_2(%arg0: i32) -> (i32, i32) {
    %c0_i32 = arith.constant 0 : i32
    %c0_i32_0 = arith.constant 0 : i32
    %c0_i32_1 = arith.constant 0 : i32
    return %c0_i32, %c0_i32_0 : i32, i32
  }
  func.func @transform_3(%arg0: i32) -> (i32, i32) {
    %c0_i32 = arith.constant 0 : i32
    %c0_i32_0 = arith.constant 0 : i32
    return %c0_i32, %arg0 : i32, i32
  }
  func.func @transform_4(%arg0: i32) -> (i32, i32) {
    %c0_i32 = arith.constant 0 : i32
    %c0_i32_0 = arith.constant 0 : i32
    return %c0_i32, %arg0 : i32, i32
  }
  func.func @transform_5(%arg0: i32) -> (i32, i32) {
    %c0_i32 = arith.constant 0 : i32
    %c0_i32_0 = arith.constant 0 : i32
    return %c0_i32, %arg0 : i32, i32
  }
  func.func @transform_6(%arg0: i32) -> (i32, i32) {
    %c0_i32 = arith.constant 0 : i32
    %c0_i32_0 = arith.constant 0 : i32
    return %c0_i32, %arg0 : i32, i32
  }
}

</mosaic_0001>

<bundles_post_ra>
// kernel: tpu_custom_call.1
= control target key start
LH: loop header
LB: loop body
LE: loop exit
PB: predicated region body
PF: predicated region fallthrough
CT: control target
= control target key end

     0   :  { %s6209_s0 = inlined_call_operand.hbm [shape: bf16[2,8,8,256], index: 0, kind: input, shape index: {}]   ;;  %s6210_s1 = inlined_call_operand.hbm [shape: f32[9,256], index: 1, kind: input, shape index: {}]   ;;  %s6211_s2 = inlined_call_operand.vmem [shape: f32[1,256], index: 2, kind: input, shape index: {}]   ;;  %s6212_s3 = inlined_call_operand.hbm [shape: bf16[256,1024], index: 3, kind: input, shape index: {}]   ;;  %s6213_s4 = inlined_call_operand.hbm [shape: f32[1,1024], index: 4, kind: input, shape index: {}]   ;;  %s6214_s5 = inlined_call_operand.hbm [shape: bf16[128,1024], index: 5, kind: input, shape index: {}]   ;;  %s6215_s6 = inlined_call_operand.hbm [shape: bf16[128,1024], index: 6, kind: output, shape index: {}]  }
   0x1   :  { %6235 = sst [smem:[#allocation23_spill]] %s6209_s0 }
   0x2   :  { %6236 = sst [smem:[#allocation24_spill]] %s6212_s3 }
   0x3   :  { %11 = vsyncpa [#allocation5], 0 }
   0x4   :  { %12 = vsyncpa [#allocation8], 0 }
   0x5   :  { %13 = vsyncpa [#allocation6], 0 }
   0x6   :  { %15 = vsyncpa [#allocation6 + $0x1], 0  ;;  %s4127_s21 = smov 0   ;;  %s4129_s22 = smov 0  }
   0x7   :  { %s4131_s23 = smov 0   ;;  %s4133_s24 = smov 0  }
   0x8 LB: > { %6237 = sst [smem:[#allocation17_spill]] %s4059_s21  ;;  %s4148_s25 = sadd.s32 4294967295, %s4071_s24   ;;  %s4071_s24 = sphi %s4133_s24, %s6358_s24   ;;  %s4067_s23 = sphi %s4131_s23, %s6360_s23   ;;  %s4063_s22 = sphi %s4129_s22, %s6362_s22   ;;  %s4059_s21 = sphi %s4127_s21, %s6361_s21  }
   0x9   : > { %6238 = sst [smem:[#allocation18_spill]] %s4067_s23  ;;  %s3190_s26 = sadd.s32 4294967294, %s4071_s24  }
   0xa   : > { %s4152_s27 = sadd.s32 1, %s4071_s24   ;;  %s91_s28 = sadd.s32 1, %s4067_s23 }
   0xb   : > { %6239 = sst [smem:[#allocation19_spill]] %s4152_s27  ;;  %s88_s29 = ssub.s32 %s4071_s24, %s4152_s27 }
   0xc   : > { %p98_p0 = scmp.ne.s32.totalorder %s4067_s23, %s4063_s22  ;;  %p89_p1 = scmp.eq.s32.totalorder %s88_s29, 0 }
   0xd   : > { %p99_p2 = scmp.eq.s32.totalorder %s4071_s24, 0  ;;  %p104_p3 = scmp.ne.s32.totalorder %s4063_s22, %s4059_s21 }
   0xe   : > { %p6225_p4 = scmp.eq.s32.totalorder %s4148_s25, 0  ;;  %p180_p7 = scmp.eq.s32.totalorder %s4148_s25, 3 }
   0xf   : > { %s4164_s30 = scalar_select %p89_p1, %s4067_s23, %s91_s28  }
  0x10   : > { %p4166_p5 = por %p99_p2, %p98_p0  ;;  %p4172_p6 = por %p6225_p4, %p104_p3 }
  0x11   : > { %6240 = sst [smem:[#allocation20_spill]] %s4164_s30  ;;  %p186_p8 = scmp.eq.s32.totalorder %s3190_s26, 3 }
  0x12   : > { %s6242_s8 = scalar_select %p4172_p6, 1, 0 }
  0x13   : > { %p3191_p9 = scmp.ge.s32.totalorder %s4071_s24, 1  ;;  %p193_p10 = scmp.lt.s32.totalorder %s4071_s24, 5 }
  0x14   : > { %p4179_p11 = por %p180_p7, %p98_p0  ;;  %p4183_p12 = por %p186_p8, %p104_p3 }
  0x15   : > { %p4187_p13 = pnand %p3191_p9, %p193_p10  ;;  %s4077_s12 = smov [#allocation4]  }
  0x16   : > { %s6243_s9 = scalar_select %p4179_p11, 1, 0 }
  0x17   : > { %s6244_s10 = scalar_select %p4183_p12, 1, 0 }
  0x18   : > { %s6246_s11 = scalar_select %p4187_p13, 1, 0 }
  0x19   : > { %6245 = sst [smem:[#allocation21_spill]] %s6244_s10  ;;  %p3419_p2 = pneg %p4187_p13 }
  0x1a   : > { %s205_s13 = sshll.u32 %s4077_s12, 4  ;;  %p3442_p3 = scmp.lt.s32.totalorder %s4071_s24, 4  ;;  %s206_s13 = int_to_ptr.vmem [resolvable:$true] %s205_s13 }
  0x1b   : > { %p4196_p0 = pnand %p3419_p2, %p6225_p4  ;;  %s235_s15 = sand.u32 1, %s4071_s24  }
  0x1c   : > { %s3870_s16 = scalar_lea.vmem %s206_s13, 2048  ;;  %p3878_p1 = scmp.lt.s32.totalorder %s206_s13, %s206_s13 }
  0x1d   : > { %s6247_s14 = scalar_select %p4196_p0, 1, 0 }
  0x1e   : > { %p6226_p7 = pneg %p4196_p0  ;;  %p3871_p8 = scmp.ne.s32.totalorder %s206_s13, %s3870_s16 }
  0x1f   : > { %p3879_p12 = scmp.lt.s32.totalorder %s3870_s16, %s3870_s16 }
  0x20   : > { %p3873_p9 = pnand %p3871_p8, %p6226_p7 }
  0x21   : > { %p3880_p11 = por %p3879_p12, %p3878_p1 }
  0x22   : > { %p3874_p10 = pneg %p3873_p9 }
  0x24   : > { %p3881_p6 = pnand %p3880_p11, %p3874_p10 }
  0x26   : > { %3884 = shalt.err (!%p3881_p6)
}
  0x27   : > { %s6220_s17 = smov 128   ;;  %s6223_s18 = smov 8  }
  0x28   : > { %s6248_s0 = sld [smem:[#allocation23_spill]]  ;;  %p4219_p11 = pnand %p3442_p3, %p4166_p5 }
  0x29   : > { %s4224_s28 = sand.u32 1, %s4067_s23   ;;  %s6222_s12 = sshll.u32 %s4071_s24, 7 }
  0x2a   : > { %s3195_s29 = sshll.u32 %s4224_s28, 8  ;;  %s6250_s3 = sld [smem:[#allocation24_spill]] }
  0x2b   : > { %s239_s7 = scalar_lea.vmem [#allocation9], %s3195_s29  ;;  %s4237_s19 = scalar_lea.sflag [#allocation5], %s235_s15 }
  0x2c   : > { %p4243_p6 = pneg %p4219_p11 }
  0x2e   : > { %3422 = dma.hbm_to_vmem [thread:$0]  (!%p4196_p0), %s6248_s0, 2048, %s206_s13, [#allocation5], %s6220_s17, %s6220_s17, %s6223_s18  }
  0x2f   : > { %s246_s13 = sshll.u32 %s239_s7, 4  ;;  %s4235_s13 = int_to_ptr.vmem [resolvable:$true] %s246_s13 }
  0x30   : > { %s4233_s27 = scalar_lea.hbm %s6250_s3, %s6222_s12  ;;  %s3890_s29 = scalar_lea.hbm %s6250_s3, 16384 }
  0x31   : > { %s3885_s20 = scalar_lea.hbm %s4233_s27, 4096  ;;  %p3891_p2 = scmp.lt.s32.totalorder %s4233_s27, %s6250_s3 }
  0x32   : > { %p3886_p5 = scmp.ne.s32.totalorder %s4233_s27, %s3885_s20  ;;  %p3892_p3 = scmp.lt.s32.totalorder %s3890_s29, %s3885_s20 }
  0x34   : > { %p3888_p12 = pnand %p4243_p6, %p3886_p5  ;;  %p3893_p8 = por %p3892_p3, %p3891_p2 }
  0x36   : > { %p3889_p1 = pneg %p3888_p12 }
  0x38   : > { %p3894_p9 = pnand %p3893_p8, %p3889_p1 }
  0x3a   : > { %3897 = shalt.err (!%p3894_p9)
}
  0x3b   : > { %s3898_s15 = scalar_lea.vmem %s4235_s13, 4096  ;;  %s4080_s18 = smov [#allocation9]  }
  0x3c   : > { %p3899_p10 = scmp.ne.s32.totalorder %s4235_s13, %s3898_s15  ;;  %s3903_s30 = sshll.u32 %s4080_s18, 4  ;;  %s3904_s30 = int_to_ptr.vmem [resolvable:$false] %s3903_s30 }
  0x3d   : > { %s3905_s16 = scalar_lea.vmem %s3904_s30, 8192  ;;  %p3906_p4 = scmp.lt.s32.totalorder %s4235_s13, %s3904_s30 }
  0x3e   : > { %p3901_p5 = pnand %p3899_p10, %p4243_p6  ;;  %p3907_p7 = scmp.lt.s32.totalorder %s3905_s16, %s3898_s15 }
  0x40   : > { %p3902_p12 = pneg %p3901_p5  ;;  %p3908_p13 = por %p3907_p7, %p3906_p4 }
  0x42   : > { %p3909_p0 = pnand %p3908_p13, %p3902_p12 }
  0x44   : > { %3912 = shalt.err (!%p3909_p0)
}
  0x45   : > { %s6233_s12 = smov 512   ;;  %s6252_s20 = smov 8  }
  0x46   : > { %s6253_s29 = smov 128   ;;  %s3198_s18 = sshll.u32 %s4224_s28, 1 }
  0x47   : > { %3429 = dma.hbm_to_vmem [thread:$0]  (!%p4219_p11), %s4233_s27, 4096, %s4235_s13, %s4237_s19, %s6233_s12, %s6253_s29, %s6252_s20  }
  0x48   : > { %s3320_s7 = sshll.u32 %s4071_s24, 5  ;;  %s260_s0 = scalar_lea.vmem [#allocation10], %s3198_s18 }
  0x49   : > { %s4274_s16 = scalar_lea.hbm %s6213_s4, %s3320_s7  ;;  %s268_s3 = sshll.u32 %s260_s0, 4  ;;  %s269_s3 = int_to_ptr.vmem [resolvable:$true] %s268_s3 }
  0x4a   : > { %s4082_s23 = smov [#allocation7]   ;;  %s3913_s21 = scalar_lea.hbm %s4274_s16, 32 }
  0x4b   : > { %s218_s10 = sshll.u32 %s4082_s23, 4  ;;  %p3914_p4 = scmp.ne.s32.totalorder %s4274_s16, %s3913_s21  ;;  %s219_s10 = int_to_ptr.vmem [resolvable:$true] %s218_s10 }
  0x4c   : > { %s3918_s12 = scalar_lea.hbm %s6213_s4, 128  ;;  %p3919_p7 = scmp.lt.s32.totalorder %s4274_s16, %s6213_s4 }
  0x4d   : > { %p3916_p13 = pnand %p3914_p4, %p4243_p6  ;;  %p3920_p1 = scmp.lt.s32.totalorder %s3918_s12, %s3913_s21 }
  0x4f   : > { %p3917_p0 = pneg %p3916_p13  ;;  %p3921_p2 = por %p3920_p1, %p3919_p7 }
  0x51   : > { %p3922_p3 = pnand %p3921_p2, %p3917_p0 }
  0x53   : > { %3925 = shalt.err (!%p3922_p3)
}
  0x54   : > { %s3926_s0 = scalar_lea.vmem %s269_s3, 32  ;;  %s4083_s23 = smov [#allocation10]  }
  0x55   : > { %p3927_p8 = scmp.ne.s32.totalorder %s269_s3, %s3926_s0  ;;  %s3931_s18 = sshll.u32 %s4083_s23, 4  ;;  %s3932_s18 = int_to_ptr.vmem [resolvable:$false] %s3931_s18 }
  0x56   : > { %s3933_s15 = scalar_lea.vmem %s3932_s18, 64  ;;  %p3934_p5 = scmp.lt.s32.totalorder %s269_s3, %s3932_s18 }
  0x57   : > { %p3929_p9 = pnand %p3927_p8, %p4243_p6  ;;  %p3935_p12 = scmp.lt.s32.totalorder %s3933_s15, %s3926_s0 }
  0x59   : > { %p3930_p10 = pneg %p3929_p9  ;;  %p3936_p4 = por %p3935_p12, %p3934_p5 }
  0x5b   : > { %p3937_p13 = pnand %p3936_p4, %p3930_p10 }
  0x5d   : > { %3940 = shalt.err (!%p3937_p13)
}
  0x5e   : > { %3432 = dma.hbm_to_vmem [thread:$0]  (!%p4219_p11), %s4274_s16, 32, %s269_s3, %s4237_s19  }
  0x5f   : > { %s3201_s21 = sshll.u32 %s4224_s28, 7  ;;  %s3952_s12 = scalar_lea.vmem %s219_s10, 512 }
  0x60   : > { %p3953_p0 = scmp.ne.s32.totalorder %s219_s10, %s3952_s12  ;;  %p6254_p7 = scmp.ne.s32.totalorder %s6247_s14, 0 }
  0x61   : > { %p3960_p8 = scmp.lt.s32.totalorder %s219_s10, %s219_s10  ;;  %p3961_p9 = scmp.lt.s32.totalorder %s3952_s12, %s3952_s12 }
  0x62   : > { %p6255_p1 = pneg %p6254_p7 }
  0x63   : > { %p3962_p5 = por %p3961_p9, %p3960_p8 }
  0x64   : > { %p3955_p2 = pnand %p3953_p0, %p6255_p1 }
  0x66   : > { %p3956_p3 = pneg %p3955_p2 }
  0x68   : > { %p3963_p10 = pnand %p3962_p5, %p3956_p3 }
  0x6a   : > { %3966 = shalt.err (!%p3963_p10)
}
  0x6b   : > { %s4084_s27 = smov 256   ;;  %s4085_s13 = smov 16  }
  0x6c   : > { %3425 = dma.hbm_to_vmem [thread:$0]  (!%p6254_p7), %s6210_s1, 512, %s219_s10, [#allocation8], %s4084_s27, %s4084_s27, %s4085_s13  }
  0x6d   : > { %s6256_s28 = sshll.u32 %s4071_s24, 7  ;;  %s279_s23 = scalar_lea.vmem [#allocation11], %s3201_s21 }
  0x6e   : > { %s4307_s0 = scalar_lea.hbm %s6214_s5, %s6256_s28  ;;  %s286_s18 = sshll.u32 %s279_s23, 4  ;;  %s287_s18 = int_to_ptr.vmem [resolvable:$true] %s286_s18 }
  0x6f   : > { %s3967_s15 = scalar_lea.hbm %s4307_s0, 2048  ;;  %s3972_s10 = scalar_lea.hbm %s6214_s5, 8192 }
  0x70   : > { %p3968_p12 = scmp.ne.s32.totalorder %s4307_s0, %s3967_s15  ;;  %p3973_p0 = scmp.lt.s32.totalorder %s4307_s0, %s6214_s5 }
  0x71   : > { %p3974_p7 = scmp.lt.s32.totalorder %s3972_s10, %s3967_s15 }
  0x72   : > { %p3970_p4 = pnand %p3968_p12, %p4243_p6 }
  0x73   : > { %p3975_p1 = por %p3974_p7, %p3973_p0 }
  0x74   : > { %p3971_p13 = pneg %p3970_p4 }
  0x76   : > { %p3976_p2 = pnand %p3975_p1, %p3971_p13 }
  0x78   : > { %3979 = shalt.err (!%p3976_p2)
}
  0x79   : > { %s3980_s21 = scalar_lea.vmem %s287_s18, 2048  ;;  %s4086_s3 = smov [#allocation11]  }
  0x7a   : > { %p3981_p3 = scmp.ne.s32.totalorder %s287_s18, %s3980_s21  ;;  %s3985_s16 = sshll.u32 %s4086_s3, 4  ;;  %s3986_s16 = int_to_ptr.vmem [resolvable:$false] %s3985_s16 }
  0x7b   : > { %s3987_s28 = scalar_lea.vmem %s3986_s16, 4096  ;;  %p3988_p5 = scmp.lt.s32.totalorder %s287_s18, %s3986_s16 }
  0x7c   : > { %p3983_p8 = pnand %p3981_p3, %p4243_p6  ;;  %p3989_p10 = scmp.lt.s32.totalorder %s3987_s28, %s3980_s21 }
  0x7e   : > { %p3984_p9 = pneg %p3983_p8  ;;  %p3990_p12 = por %p3989_p10, %p3988_p5 }
  0x80   : > { %p3991_p4 = pnand %p3990_p12, %p3984_p9 }
  0x82   : > { %3994 = shalt.err (!%p3991_p4)
}
  0x83   : > { %s6257_s30 = smov 512   ;;  %p6258_p6 = scmp.ne.s32.totalorder %s6246_s11, 0 }
  0x84   : > { %3435 = dma.hbm_to_vmem [thread:$0]  (!%p4219_p11), %s4307_s0, 2048, %s287_s18, %s4237_s19, %s6257_s30, %s6253_s29, %s6252_s20  }
  0x85   : > { %298 = sbr.rel (%p6258_p6) target bundleno = 913 (0x391), region = 44  ;;  %p6259_p13 = scmp.eq.s32.totalorder (!%p6258_p6), %s4148_s25, 0 }
  0x8a   : > { %4042 = dma.done.wait (%p6259_p13), [#allocation5], 2048   ;;  %p6260_p0 = pmov %p6259_p13 }
  0x8c   : > { %4044 = vsyncadd (%p6260_p0), [#allocation5], 4294965248  ;;  %p6261_p7 = pmov %p6260_p0 }
  0x8d   : > { %p6262_p1 = pmov %p6260_p0 }
  0x8e   : > { %4046 = dma.done.wait (%p6261_p7), [#allocation8], 512  }
  0x8f   : > { %4048 = vsyncadd (%p6262_p1), [#allocation8], 4294966784  ;;  %s308_s17 = sand.u32 1, %s4148_s25   ;;  %s4341_s26 = sand.u32 1, %s4063_s22  }
  0x90   : > { %s3207_s11 = sshll.u32 %s4341_s26, 8  ;;  %s309_s19 = scalar_lea.sflag [#allocation5], %s308_s17 }
  0x91   : > { %s4344_s20 = scalar_lea.vmem [#allocation9], %s3207_s11  ;;  %p6263_p11 = scmp.ne.s32.totalorder %s6242_s8, 0 }
  0x93   : > { %4050 = dma.done.wait (%p6263_p11), %s309_s19, 6176  }
  0x94   : > { %4052 = vsyncadd (%p6263_p11), %s309_s19, 4294961120  ;;  %s3208_s29 = sshll.u32 %s4341_s26, 1  ;;  %s3209_s7 = sshll.u32 %s4341_s26, 7 }
  0x95   : > { %s4352_s0 = scalar_lea.vmem [#allocation10], %s3208_s29  ;;  %s4354_s23 = scalar_lea.vmem [#allocation11], %s3209_s7 }
  0x96   : > { %s4356_s18 = scalar_lea.vmem [#allocation12], %s3209_s7  ;;  %p6264_p2 = scmp.ne.s32.totalorder %s4148_s25, 0 }
  0x97   : > { %s4360_s8 = smov (!%p6264_p2), 0  }
  0x98   : > { %377 = sbr.rel (%p6264_p2) target bundleno = 452 (0x1c4), region = 68 }
  0x9d   : > { %v4087_v0 = vmov 0  }
  0x9e   : > { %378 = vst [vmem:[#allocation2] sm:$0xf] %v4087_v0  ;;  %379 = vst [vmem:[#allocation2 + $0x4] sm:$0x1] %v4087_v0 }
  0x9f   : > { %380 = vst [vmem:[#allocation2 + $0x8] sm:$0xf] %v4087_v0  ;;  %381 = vst [vmem:[#allocation2 + $0xc] sm:$0x1] %v4087_v0 }
  0xa0   : > { %382 = vst [vmem:[#allocation2 + $0x10] sm:$0xf] %v4087_v0  ;;  %383 = vst [vmem:[#allocation2 + $0x14] sm:$0x1] %v4087_v0 }
  0xa1   : > { %384 = vst [vmem:[#allocation2 + $0x18] sm:$0xf] %v4087_v0  ;;  %385 = vst [vmem:[#allocation2 + $0x1c] sm:$0x1] %v4087_v0 }
  0xa2   : > { %386 = vst [vmem:[#allocation2 + $0x20] sm:$0xf] %v4087_v0  ;;  %387 = vst [vmem:[#allocation2 + $0x24] sm:$0x1] %v4087_v0 }
  0xa3   : > { %388 = vst [vmem:[#allocation2 + $0x28] sm:$0xf] %v4087_v0  ;;  %389 = vst [vmem:[#allocation2 + $0x2c] sm:$0x1] %v4087_v0 }
  0xa4   : > { %390 = vst [vmem:[#allocation2 + $0x30] sm:$0xf] %v4087_v0  ;;  %391 = vst [vmem:[#allocation2 + $0x34] sm:$0x1] %v4087_v0 }
  0xa5   : > { %392 = vst [vmem:[#allocation2 + $0x38] sm:$0xf] %v4087_v0  ;;  %393 = vst [vmem:[#allocation2 + $0x3c] sm:$0x1] %v4087_v0 }
  0xa6   : > { %394 = vst [vmem:[#allocation2 + $0x40] sm:$0xf] %v4087_v0  ;;  %395 = vst [vmem:[#allocation2 + $0x44] sm:$0x1] %v4087_v0 }
  0xa7   : > { %396 = vst [vmem:[#allocation2 + $0x48] sm:$0xf] %v4087_v0  ;;  %397 = vst [vmem:[#allocation2 + $0x4c] sm:$0x1] %v4087_v0 }
  0xa8   : > { %398 = vst [vmem:[#allocation2 + $0x50] sm:$0xf] %v4087_v0  ;;  %399 = vst [vmem:[#allocation2 + $0x54] sm:$0x1] %v4087_v0 }
  0xa9   : > { %400 = vst [vmem:[#allocation2 + $0x58] sm:$0xf] %v4087_v0  ;;  %401 = vst [vmem:[#allocation2 + $0x5c] sm:$0x1] %v4087_v0 }
  0xaa   : > { %402 = vst [vmem:[#allocation2 + $0x60] sm:$0xf] %v4087_v0  ;;  %403 = vst [vmem:[#allocation2 + $0x64] sm:$0x1] %v4087_v0 }
  0xab   : > { %404 = vst [vmem:[#allocation2 + $0x68] sm:$0xf] %v4087_v0  ;;  %405 = vst [vmem:[#allocation2 + $0x6c] sm:$0x1] %v4087_v0 }
  0xac   : > { %406 = vst [vmem:[#allocation2 + $0x70] sm:$0xf] %v4087_v0  ;;  %407 = vst [vmem:[#allocation2 + $0x74] sm:$0x1] %v4087_v0 }
  0xad   : > { %408 = vst [vmem:[#allocation2 + $0x78] sm:$0xf] %v4087_v0  ;;  %409 = vst [vmem:[#allocation2 + $0x7c] sm:$0x1] %v4087_v0 }
  0xae   : > { %410 = vst [vmem:[#allocation2 + $0x80] sm:$0xf] %v4087_v0  ;;  %411 = vst [vmem:[#allocation2 + $0x84] sm:$0x1] %v4087_v0 }
  0xaf   : > { %412 = vst [vmem:[#allocation2 + $0x88] sm:$0xf] %v4087_v0  ;;  %413 = vst [vmem:[#allocation2 + $0x8c] sm:$0x1] %v4087_v0 }
  0xb0   : > { %414 = vst [vmem:[#allocation2 + $0x90] sm:$0xf] %v4087_v0  ;;  %415 = vst [vmem:[#allocation2 + $0x94] sm:$0x1] %v4087_v0 }
  0xb1   : > { %416 = vst [vmem:[#allocation2 + $0x98] sm:$0xf] %v4087_v0  ;;  %417 = vst [vmem:[#allocation2 + $0x9c] sm:$0x1] %v4087_v0 }
  0xb2 LB: >> { %s3212_s15 = sshll.u32 %s4075_s8, 7  ;;  %v1074_v13 = vlaneseq  ;;  %s423_s8 = sadd.s32 1, %s4075_s8   ;;  %s4075_s8 = sphi %s4360_s8, %s423_s8  }
  0xb3   : >> { %s4366_s14 = sshra.s32 %s3212_s15, 7  ;;  %p420_p3 = scmp.ge.s32.totalorder %s423_s8, 2  }
  0xb4   : >> { %s3213_s12 = sshll.u32 %s4366_s14, 2  ;;  %v1075_v24 = vshrl.u32 %v1074_v13, 7  ;;  %s3230_s27 = sshll.u32 %s4366_s14, 3 }
  0xb5   : >> { %s4371_s10 = scalar_lea.vmem [#allocation4], %s3213_s12  ;;  %s4417_s13 = scalar_lea.vmem [#allocation7], %s3230_s27 }
  0xb6   : >> { %v429_v1 = vld [vmem:[%s4371_s10] ss:$8 sps:$4 sm:$0xff]   ;;  %v431_v3 = vld [vmem:[%s4371_s10 + $0x10] ss:$8 sps:$4 sm:$0xff]   ;;  %v1076_v36 = vsub.s32 0, %v1075_v24  ;;  %v1084_v41 = vsub.s32 3, %v1075_v24  ;;  %s4909_s16 = scalar_lea.vmem %s6211_s2, %s4366_s14 }
  0xb7   : >> { %v4374_v2 = vunpack.c.l.bf16 %v429_v1  ;;  %v433_v4 = vld [vmem:[%s4371_s10 + $0x20] ss:$8 sps:$4 sm:$0xff]   ;;  %v4379_v6 = vunpack.c.h.bf16 %v429_v1  ;;  %v435_v7 = vld [vmem:[%s4371_s10 + $0x30] ss:$8 sps:$4 sm:$0xff]   ;;  %v4382_v8 = vunpack.c.l.bf16 %v431_v3  ;;  %v4384_v9 = vunpack.c.h.bf16 %v431_v3  ;;  %s4953_s28 = scalar_lea.vmem [#allocation3], %s3213_s12 }
  0xb8   : >> { %v4386_v10 = vunpack.c.l.bf16 %v433_v4  ;;  %v4388_v11 = vunpack.c.h.bf16 %v433_v4  ;;  %v4391_v15 = vunpack.c.l.bf16 %v435_v7  ;;  %v437_v20 = vld [vmem:[%s4371_s10 + $0x40] ss:$8 sps:$4 sm:$0xff]   ;;  %v4400_v28 = vunpack.c.h.bf16 %v435_v7  ;;  %v439_v32 = vld [vmem:[%s4371_s10 + $0x50] ss:$8 sps:$4 sm:$0xff]  }
  0xb9   : >> { %v477_v5 = vmin.f32 %v4374_v2, 20.0  ;;  %v478_v14 = vmin.f32 %v4379_v6, 20.0  ;;  %v479_v16 = vmin.f32 %v4382_v8, 20.0  ;;  %v480_v17 = vmin.f32 %v4384_v9, 20.0  ;;  %v441_v40 = vld [vmem:[%s4371_s10 + $0x60] ss:$8 sps:$4 sm:$0xff]  }
  0xba   : >> { %v481_v19 = vmin.f32 %v4386_v10, 20.0  ;;  %v482_v23 = vmin.f32 %v4388_v11, 20.0  ;;  %v483_v26 = vmin.f32 %v4391_v15, 20.0  ;;  %v4402_v29 = vunpack.c.l.bf16 %v437_v20  ;;  %v1046_v44 = vld [vmem:[%s4417_s13] sm:$0xff]  ;;  %v443_v3 = vld [vmem:[%s4371_s10 + $0x70] ss:$8 sps:$4 sm:$0xff]  }
  0xbb   : >> { %v493_v12 = vmul.f32 1.442695, %v477_v5  ;;  %v495_v18 = vmul.f32 1.442695, %v478_v14  ;;  %v497_v21 = vmul.f32 1.442695, %v479_v16  ;;  %v4404_v31 = vunpack.c.h.bf16 %v437_v20 }
  0xbc   : >> { %v499_v22 = vmul.f32 1.442695, %v480_v17  ;;  %v501_v25 = vmul.f32 1.442695, %v481_v19  ;;  %v503_v27 = vmul.f32 1.442695, %v482_v23  ;;  %v4410_v38 = vunpack.c.l.bf16 %v439_v32 }
  0xbd   : >> { %3497 = vpow2.f32 %v493_v12  ;;  %v505_v30 = vmul.f32 1.442695, %v483_v26  ;;  %v484_v33 = vmin.f32 %v4400_v28, 20.0  ;;  %v485_v34 = vmin.f32 %v4402_v29, 20.0 }
  0xbe   : >> { %3499 = vpow2.f32 %v495_v18  ;;  %v486_v35 = vmin.f32 %v4404_v31, 20.0  ;;  %v4412_v39 = vunpack.c.h.bf16 %v439_v32  ;;  %v4415_v43 = vunpack.c.l.bf16 %v441_v40 }
  0xbf   : >> { %3501 = vpow2.f32 %v497_v21  ;;  %v507_v37 = vmul.f32 1.442695, %v484_v33  ;;  %v509_v42 = vmul.f32 1.442695, %v485_v34  ;;  %v1096_v45 = vsub.s32 6, %v1075_v24 }
  0xc0   : >> { %3503 = vpow2.f32 %v499_v22  ;;  %v1108_v46 = vsub.s32 1, %v1075_v24  ;;  %v1120_v47 = vsub.s32 4, %v1075_v24  ;;  %v487_v48 = vmin.f32 %v4410_v38, 20.0 }
  0xc1   : >> { %3505 = vpow2.f32 %v501_v25  ;;  %v1140_v49 = vsub.s32 7, %v1075_v24  ;;  %v511_v50 = vmul.f32 1.442695, %v486_v35  ;;  %v488_v51 = vmin.f32 %v4412_v39, 20.0 }
  0xc2   : >> { %3507 = vpow2.f32 %v503_v27  ;;  %v1189_v52 = vsub.s32 2, %v1075_v24  ;;  %v513_v53 = vmul.f32 1.442695, %v487_v48  ;;  %v4422_v54 = vunpack.c.h.bf16 %v441_v40 }
  0xc3   : >> { %3509 = vpow2.f32 %v505_v30  ;;  %v4424_v55 = vrot.slane %v1046_v44, %v1076_v36  ;;  %v1201_v56 = vsub.s32 5, %v1075_v24  ;;  %v489_v57 = vmin.f32 %v4415_v43, 20.0 }
  0xc4   : >> { %3511 = vpow2.f32 %v507_v37  ;;  %v4427_v59 = vrot.slane %v1046_v44, %v1084_v41  ;;  %v4429_v60 = vrot.slane %v1046_v44, %v1096_v45  ;;  %v4431_v61 = vrot.slane %v1046_v44, %v1108_v46 }
  0xc5   : >> { %3513 = vpow2.f32 %v509_v42  ;;  %v515_v62 = vmul.f32 1.442695, %v488_v51  ;;  %v4433_v1 = vrot.slane %v1046_v44, %v1120_v47  ;;  %v4436_v5 = vrot.slane %v1046_v44, %v1140_v49 }
  0xc6   : >> { %3515 = vpow2.f32 %v511_v50  ;;  %v4438_v7 = vrot.slane %v1046_v44, %v1189_v52  ;;  %v490_v12 = vmin.f32 %v4422_v54, 20.0  ;;  %v4441_v14 = vrot.slane %v1046_v44, %v1201_v56 }
  0xc7   : >> { %3517 = vpow2.f32 %v513_v53  ;;  %v517_v17 = vmul.f32 1.442695, %v489_v57  ;;  %v4443_v21 = vunpack.c.l.bf16 %v443_v3  ;;  %v4447_v35 = vunpack.c.h.bf16 %v443_v3 }
  0xc8   : >> { %v4445_v32 = vmul.f32 1.442695, %v490_v12  ;;  %vm461_vm0 = vcmp.gt.f32.partialorder %v4374_v2, 20.0  ;;  %vm462_vm3 = vcmp.gt.f32.partialorder %v4379_v6, 20.0  ;;  %vm463_vm5 = vcmp.gt.f32.partialorder %v4382_v8, 20.0 }
  0xc9   : >> { %v491_v46 = vmin.f32 %v4443_v21, 20.0  ;;  %vm464_vm6 = vcmp.gt.f32.partialorder %v4384_v9, 20.0  ;;  %vm465_vm8 = vcmp.gt.f32.partialorder %v4386_v10, 20.0  ;;  %vm466_vm10 = vcmp.gt.f32.partialorder %v4388_v11, 20.0 }
  0xca   : >> { %v3498_v58 = vpop.eup %3497  ;;  %vm467_vm13 = vcmp.gt.f32.partialorder %v4391_v15, 20.0  ;;  %vm468_vm15 = vcmp.gt.f32.partialorder %v4400_v28, 20.0 }
  0xcb   : >> { %v525_v63 = vadd.f32 1.0, %v3498_v58  ;;  %v528_v0 = vmul.f32 -0.5, %v3498_v58  ;;  %v3500_v4 = vpop.eup %3499  ;;  %v531_v24 = vand.u32 2147483647, %v3498_v58 }
  0xcc   : >> { %v3502_v13 = vpop.eup %3501  ;;  %v534_v16 = vadd.f32 1.0, %v3500_v4  ;;  %v537_v19 = vmul.f32 -0.5, %v3500_v4  ;;  %v540_v27 = vand.u32 2147483647, %v3500_v4 }
  0xcd   : >> { %3519 = vlog2.f32 %v525_v63  ;;  %v3504_v18 = vpop.eup %3503  ;;  %v543_v20 = vadd.f32 1.0, %v3502_v13  ;;  %v529_v23 = vadd.f32 1.0, %v528_v0  ;;  %v546_v30 = vmul.f32 -0.5, %v3502_v13 }
  0xce   : >> { %3521 = vpow2.f32 %v515_v62  ;;  %v3506_v22 = vpop.eup %3505  ;;  %v552_v25 = vadd.f32 1.0, %v3504_v18  ;;  %v549_v33 = vand.u32 2147483647, %v3502_v13  ;;  %v555_v34 = vmul.f32 -0.5, %v3504_v18 }
  0xcf   : >> { %3523 = vlog2.f32 %v534_v16  ;;  %v3508_v26 = vpop.eup %3507  ;;  %v538_v37 = vadd.f32 1.0, %v537_v19  ;;  %v561_v40 = vadd.f32 1.0, %v3506_v22  ;;  %v564_v41 = vmul.f32 -0.5, %v3506_v22 }
  0xd0   : >> { %3525 = vlog2.f32 %v543_v20  ;;  %v4449_v36 = vpop.eup %3509  ;;  %v530_v42 = vmul.f32 %v3498_v58, %v529_v23  ;;  %vm4452_vm1 = vcmp.lt.f32.partialorder %v531_v24, 0.0004427343  ;;  %v570_v45 = vadd.f32 1.0, %v3508_v26 }
  0xd1   : >> { %3527 = vlog2.f32 %v552_v25  ;;  %v4457_v47 = vpop.eup %3511  ;;  %vm4459_vm2 = vcmp.lt.f32.partialorder %v540_v27, 0.0004427343  ;;  %v547_v49 = vadd.f32 1.0, %v546_v30  ;;  %v573_v50 = vmul.f32 -0.5, %v3508_v26 }
  0xd2   : >> { %3529 = vpow2.f32 %v517_v17  ;;  %v4463_v51 = vpop.eup %3513  ;;  %vm4466_vm4 = vcmp.lt.f32.partialorder %v549_v33, 0.0004427343  ;;  %v556_v53 = vadd.f32 1.0, %v555_v34  ;;  %v558_v56 = vand.u32 2147483647, %v3504_v18 }
  0xd3   : >> { %3531 = vlog2.f32 %v561_v40  ;;  %v579_v57 = vadd.f32 1.0, %v4449_v36  ;;  %v539_v58 = vmul.f32 %v3500_v4, %v538_v37  ;;  %v565_v62 = vadd.f32 1.0, %v564_v41  ;;  %v4475_v17 = vpop.eup %3515 }
  0xd4   : >> { %3533 = vlog2.f32 %v570_v45  ;;  %v567_v63 = vand.u32 2147483647, %v3506_v22  ;;  %v582_v0 = vmul.f32 -0.5, %v4449_v36  ;;  %v574_v3 = vadd.f32 1.0, %v573_v50  ;;  %v4480_v24 = vpop.eup %3517 }
  0xd5   : >> { %v576_v12 = vand.u32 2147483647, %v3508_v26  ;;  %3535 = vlog2.f32 %v579_v57  ;;  %v588_v16 = vadd.f32 1.0, %v4457_v47  ;;  %v548_v19 = vmul.f32 %v3502_v13, %v547_v49 }
  0xd6   : >> { %v585_v20 = vand.u32 2147483647, %v4449_v36  ;;  %v591_v4 = vmul.f32 -0.5, %v4457_v47  ;;  %v597_v23 = vadd.f32 1.0, %v4463_v51  ;;  %v557_v25 = vmul.f32 %v3504_v18, %v556_v53 }
  0xd7   : >> { %vm4482_vm7 = vcmp.lt.f32.partialorder %v558_v56, 0.0004427343  ;;  %v583_v30 = vadd.f32 1.0, %v582_v0  ;;  %3537 = vlog2.f32 %v588_v16  ;;  %v566_v34 = vmul.f32 %v3506_v22, %v565_v62 }
  0xd8   : >> { %vm4487_vm9 = vcmp.lt.f32.partialorder %v567_v63, 0.0004427343  ;;  %v594_v37 = vand.u32 2147483647, %v4457_v47  ;;  %3539 = vlog2.f32 %v597_v23  ;;  %v575_v41 = vmul.f32 %v3508_v26, %v574_v3 }
  0xd9   : >> { %vm4495_vm11 = vcmp.lt.f32.partialorder %v576_v12, 0.0004427343  ;;  %v606_v49 = vadd.f32 1.0, %v4475_v17  ;;  %vm4500_vm12 = vcmp.lt.f32.partialorder %v585_v20, 0.0004427343  ;;  %v592_v53 = vadd.f32 1.0, %v591_v4 }
  0xda   : >> { %v3520_v33 = vpop.eup %3519  ;;  %v600_v56 = vmul.f32 -0.5, %v4463_v51  ;;  %v615_v57 = vadd.f32 1.0, %v4480_v24  ;;  %v584_v0 = vmul.f32 %v4449_v36, %v583_v30  ;;  %vm4513_vm14 = vcmp.lt.f32.partialorder %v594_v37, 0.0004427343 }
  0xdb   : >> { %v4492_v40 = vpop.eup %3521  ;;  %v527_v18 = vmul.f32 0.6931472, %v3520_v33  ;;  %3541 = vlog2.f32 %v606_v49  ;;  %v603_v4 = vand.u32 2147483647, %v4463_v51  ;;  %v609_v23 = vmul.f32 -0.5, %v4475_v17 }
  0xdc   : >> { %v3524_v22 = vpop.eup %3523  ;;  %v618_v37 = vmul.f32 -0.5, %v4480_v24  ;;  %v593_v49 = vmul.f32 %v4457_v47, %v592_v53 }
  0xdd   : >> { %v3526_v62 = vpop.eup %3525  ;;  %v533_v26 = vsel %vm4452_vm1, %v530_v42, %v527_v18  ;;  %v536_v63 = vmul.f32 0.6931472, %v3524_v22  ;;  %vm4540_vm1 = vcmp.lt.f32.partialorder %v603_v4, 0.0004427343  ;;  %v610_v53 = vadd.f32 1.0, %v609_v23 }
  0xde   : >> { %v3528_v3 = vpop.eup %3527  ;;  %v669_v12 = vsel %vm461_vm0, %v4374_v2, %v533_v26  ;;  %v545_v16 = vmul.f32 0.6931472, %v3526_v62  ;;  %vm469_vm0 = vcmp.gt.f32.partialorder %v4402_v29, 20.0  ;;  %v627_v4 = vmul.f32 -0.5, %v4492_v40 }
  0xdf   : >> { %v4518_v44 = vpop.eup %3529  ;;  %3543 = vtanh.f32 %v669_v12  ;;  %v542_v42 = vsel %vm4459_vm2, %v539_v58, %v536_v63  ;;  %v554_v36 = vmul.f32 0.6931472, %v3528_v3  ;;  %vm470_vm2 = vcmp.gt.f32.partialorder %v4404_v31, 20.0 }
  0xe0   : >> { %v670_v30 = vsel %vm462_vm3, %v4379_v6, %v542_v42  ;;  %v551_v33 = vsel %vm4466_vm4, %v548_v19, %v545_v16  ;;  %3545 = vlog2.f32 %v615_v57  ;;  %v3532_v18 = vpop.eup %3531  ;;  %v601_v57 = vadd.f32 1.0, %v600_v56 }
  0xe1   : >> { %3547 = vtanh.f32 %v670_v30  ;;  %v671_v48 = vsel %vm463_vm5, %v4382_v8, %v551_v33  ;;  %v560_v58 = vsel %vm4482_vm7, %v557_v25, %v554_v36  ;;  %v3534_v22 = vpop.eup %3533  ;;  %v563_v19 = vmul.f32 0.6931472, %v3532_v18 }
  0xe2   : >> { %3549 = vtanh.f32 %v671_v48  ;;  %v672_v52 = vsel %vm464_vm6, %v4384_v9, %v560_v58  ;;  %v572_v62 = vmul.f32 0.6931472, %v3534_v22  ;;  %v612_v25 = vand.u32 2147483647, %v4475_v17  ;;  %v3536_v27 = vpop.eup %3535 }
  0xe3   : >> { %3551 = vtanh.f32 %v672_v52  ;;  %v569_v47 = vsel %vm4487_vm9, %v566_v34, %v563_v19  ;;  %v619_v63 = vadd.f32 1.0, %v618_v37  ;;  %v624_v3 = vadd.f32 1.0, %v4492_v40 }
  0xe4   : >> { %v673_v56 = vsel %vm465_vm8, %v4386_v10, %v569_v47  ;;  %v578_v12 = vsel %vm4495_vm11, %v575_v41, %v572_v62  ;;  %v581_v16 = vmul.f32 0.6931472, %v3536_v27  ;;  %v3538_v42 = vpop.eup %3537  ;;  %v602_v13 = vmul.f32 %v4463_v51, %v601_v57 }
  0xe5   : >> { %3553 = vtanh.f32 %v673_v56  ;;  %v674_v34 = vsel %vm466_vm10, %v4388_v11, %v578_v12  ;;  %v621_v36 = vand.u32 2147483647, %v4480_v24  ;;  %v3540_v23 = vpop.eup %3539  ;;  %v590_v45 = vmul.f32 0.6931472, %v3538_v42  ;;  %v4604_v42 = vld [vmem:[#allocation2 + $0x4] sm:$0x1] }
  0xe6   : >> { %3555 = vtanh.f32 %v674_v34  ;;  %v587_v30 = vsel %vm4500_vm12, %v584_v0, %v581_v16  ;;  %vm4562_vm3 = vcmp.lt.f32.partialorder %v612_v25, 0.0004427343  ;;  %vm471_vm4 = vcmp.gt.f32.partialorder %v4410_v38, 20.0 }
  0xe7   : >> { %vm942_vm5 = vcmask 1043456   ;;  %vm943_vm6 = vsmask.f32 7938  ;;  %v675_v51 = vsel %vm467_vm13, %v4391_v15, %v587_v30  ;;  %v599_v33 = vmul.f32 0.6931472, %v3540_v23 }
  0xe8   : >> { %v611_v37 = vmul.f32 %v4475_v17, %v610_v53  ;;  %v620_v18 = vmul.f32 %v4480_v24, %v619_v63  ;;  %vm948_vm7 = vcmask 1040384   ;;  %vm949_vm8 = vsmask.f32 256  ;;  %v3542_v58 = vpop.eup %3541  ;;  %vm4618_vm10 = vmand %vm942_vm5, %vm943_vm6 }
  0xe9   : >> { %v596_v50 = vsel %vm4513_vm14, %v593_v49, %v590_v45  ;;  %3557 = vlog2.f32 %v624_v3  ;;  %v628_v0 = vadd.f32 1.0, %v627_v4  ;;  %v633_v48 = vadd.f32 1.0, %v4518_v44  ;;  %vm4624_vm11 = vmand %vm948_vm7, %vm949_vm8 }
  0xea   : >> { %3559 = vtanh.f32 %v675_v51  ;;  %v676_v22 = vsel %vm468_vm15, %v4400_v28, %v596_v50  ;;  %v605_v17 = vsel %vm4540_vm1, %v602_v13, %v599_v33  ;;  %vm4580_vm9 = vcmp.lt.f32.partialorder %v621_v36, 0.0004427343 }
  0xeb   : >> { %3561 = vtanh.f32 %v676_v22  ;;  %v677_v20 = vsel %vm469_vm0, %v4402_v29, %v605_v17  ;;  %v608_v49 = vmul.f32 0.6931472, %v3542_v58  ;;  %v630_v52 = vand.u32 2147483647, %v4492_v40  ;;  %v945_v58 = vld [vmem:[#allocation2 + $0x8] sm:$0xf] }
  0xec   : >> { %v3544_v19 = vpop.eup %3543  ;;  %3563 = vtanh.f32 %v677_v20  ;;  %v636_v57 = vmul.f32 -0.5, %v4518_v44  ;;  %v521_v62 = vmul.f32 1.442695, %v491_v46  ;;  %v492_v26 = vmin.f32 %v4447_v35, 20.0  ;;  %v951_v17 = vld [vmem:[#allocation2 + $0xc] sm:$0x1] }
  0xed   : >> { %v3546_v25 = vpop.eup %3545  ;;  %v701_v27 = vmul.f32 %v3544_v19, %v4374_v2  ;;  %v614_v47 = vsel %vm4562_vm3, %v611_v37, %v608_v49  ;;  %v4596_v53 = vmul.f32 %v4492_v40, %v628_v0  ;;  %3565 = vlog2.f32 %v633_v48 }
  0xee   : >> { %v3548_v63 = vpop.eup %3547  ;;  %v678_v3 = vsel %vm470_vm2, %v4404_v31, %v614_v47  ;;  %v617_v56 = vmul.f32 0.6931472, %v3546_v25  ;;  %3567 = vpow2.f32 %v4445_v32  ;;  %v523_v46 = vmul.f32 1.442695, %v492_v26  ;;  %v957_v47 = vld [vmem:[#allocation2 + $0x14] sm:$0x1] }
  0xef   : >> { %v3550_v12 = vpop.eup %3549  ;;  %v3322_v16 = vpack.c.bf16 %v701_v27, %v701_v27  ;;  %v702_v2 = vmul.f32 %v3548_v63, %v4379_v6  ;;  %3569 = vtanh.f32 %v678_v3  ;;  %v639_v4 = vand.u32 2147483647, %v4518_v44  ;;  %v954_v27 = vld [vmem:[#allocation2 + $0x10] sm:$0xf] }
  0xf0   : >> { %v3552_v34 = vpop.eup %3551  ;;  %v703_v13 = vmul.f32 %v3550_v12, %v4382_v8  ;;  %v623_v36 = vsel %vm4580_vm9, %v620_v18, %v617_v56  ;;  %v4609_v23 = vadd.f32 1.0, %v636_v57  ;;  %3571 = vpow2.f32 %v521_v62 }
  0xf1   : >> { %v782_v32 = vshrl.u32 %v3322_v16, 16  ;;  %v785_v30 = vshll.u32 %v3322_v16, 16  ;;  %v3323_v45 = vpack.c.bf16 %v702_v2, %v702_v2  ;;  %v704_v41 = vmul.f32 %v3552_v34, %v4384_v9 }
  0xf2   : >> { %v3324_v6 = vpack.c.bf16 %v703_v13, %v703_v13  ;;  %v679_v51 = vsel %vm471_vm4, %v4410_v38, %v623_v36  ;;  %3573 = vpow2.f32 %v523_v46  ;;  %v1063_v33 = vunpack.c.l.bf16 %v4604_v42  ;;  %v3554_v8 = vpop.eup %3553  ;;  %v960_v13 = vld [vmem:[#allocation2 + $0x18] sm:$0xf]  ;;  %v963_v36 = vld [vmem:[#allocation2 + $0x1c] sm:$0x1] }
  0xf3   : >> { %v784_v37 = vrot.slane %v782_v32, 7  ;;  %v790_v50 = vshrl.u32 %v3323_v45, 16  ;;  %v793_v0 = vshll.u32 %v3323_v45, 16  ;;  %v3325_v48 = vpack.c.bf16 %v704_v41, %v704_v41  ;;  %v3556_v9 = vpop.eup %3555 }
  0xf4   : >> { %v798_v24 = vshrl.u32 %v3324_v6, 16  ;;  %v801_v20 = vshll.u32 %v3324_v6, 16  ;;  %v705_v49 = vmul.f32 %v3554_v8, %v4386_v10  ;;  %3575 = vtanh.f32 %v679_v51 }
  0xf5   : >> { %v787_v19 = vor.u32 %v785_v30, %v784_v37  ;;  %v788_v57 = vrot.slane %v784_v37, 4  ;;  %v792_v62 = vrot.slane %v790_v50, 7  ;;  %v806_v26 = vshrl.u32 %v3325_v48, 16  ;;  %v966_v50 = vld [vmem:[#allocation2 + $0x20] sm:$0xf] }
  0xf6   : >> { %v4629_v25 = vpop.eup %3557  ;;  %v800_v63 = vrot.slane %v798_v24, 7  ;;  %v809_v3 = vshll.u32 %v3325_v48, 16  ;;  %v3326_v56 = vpack.c.bf16 %v705_v49, %v705_v49  ;;  %v706_v46 = vmul.f32 %v3556_v9, %v4388_v11 }
  0xf7   : >> { %v3560_v12 = vpop.eup %3559  ;;  %v946_v16 = vsel %vm4618_vm10, %v787_v19, %v945_v58  ;;  %v952_v10 = vsel %vm4624_vm11, %v788_v57, %v951_v17  ;;  %v795_v2 = vor.u32 %v793_v0, %v792_v62  ;;  %v796_v34 = vrot.slane %v792_v62, 4  ;;  %v969_v0 = vld [vmem:[#allocation2 + $0x24] sm:$0x1] }
  0xf8   : >> { %v3562_v32 = vpop.eup %3561  ;;  %947 = vst [vmem:[#allocation2 + $0x8] sm:$0xf] %v946_v16  ;;  %953 = vst [vmem:[#allocation2 + $0xc] sm:$0x1] %v952_v10  ;;  %v803_v30 = vor.u32 %v801_v20, %v800_v63  ;;  %v804_v45 = vrot.slane %v800_v63, 4  ;;  %v808_v41 = vrot.slane %v806_v26, 7  ;;  %v3327_v9 = vpack.c.bf16 %v706_v46, %v706_v46 }
  0xf9   : >> { %v814_v6 = vshrl.u32 %v3326_v56, 16  ;;  %vm4638_vm12 = vcmp.lt.f32.partialorder %v630_v52, 0.0004427343  ;;  %v3564_v51 = vpop.eup %3563  ;;  %v955_v8 = vsel %vm4618_vm10, %v795_v2, %v954_v27  ;;  %v958_v37 = vsel %vm4624_vm11, %v796_v34, %v957_v47  ;;  %v972_v63 = vld [vmem:[#allocation2 + $0x28] sm:$0xf] }
  0xfa   : >> { %v817_v48 = vshll.u32 %v3326_v56, 16  ;;  %v4646_v58 = vpop.eup %3565  ;;  %956 = vst [vmem:[#allocation2 + $0x10] sm:$0xf] %v955_v8  ;;  %959 = vst [vmem:[#allocation2 + $0x14] sm:$0x1] %v958_v37  ;;  %v961_v40 = vsel %vm4618_vm10, %v803_v30, %v960_v13  ;;  %v964_v52 = vsel %vm4624_vm11, %v804_v45, %v963_v36  ;;  %v811_v17 = vor.u32 %v809_v3, %v808_v41 }
  0xfb   : >> { %v812_v24 = vrot.slane %v808_v41, 4  ;;  %v4652_v20 = vpop.eup %3567  ;;  %962 = vst [vmem:[#allocation2 + $0x18] sm:$0xf] %v961_v40  ;;  %965 = vst [vmem:[#allocation2 + $0x1c] sm:$0x1] %v964_v52  ;;  %v816_v49 = vrot.slane %v814_v6, 7  ;;  %v707_v62 = vmul.f32 %v3560_v12, %v4391_v15  ;;  %v708_v3 = vmul.f32 %v3562_v32, %v4400_v28 }
  0xfc   : >> { %v822_v19 = vshrl.u32 %v3327_v9, 16  ;;  %v825_v57 = vshll.u32 %v3327_v9, 16  ;;  %v3570_v26 = vpop.eup %3569  ;;  %v967_v27 = vsel %vm4618_vm10, %v811_v17, %v966_v50  ;;  %v975_v56 = vld [vmem:[#allocation2 + $0x2c] sm:$0x1]  ;;  %v709_v46 = vmul.f32 %v3564_v51, %v4402_v29  ;;  %v978_v34 = vld [vmem:[#allocation2 + $0x30] sm:$0xf] }
  0xfd   : >> { %v970_v47 = vsel %vm4624_vm11, %v812_v24, %v969_v0  ;;  %v4661_v16 = vpop.eup %3571  ;;  %968 = vst [vmem:[#allocation2 + $0x20] sm:$0xf] %v967_v27  ;;  %v819_v10 = vor.u32 %v817_v48, %v816_v49  ;;  %v820_v2 = vrot.slane %v816_v49, 4  ;;  %v3328_v12 = vpack.c.bf16 %v707_v62, %v707_v62  ;;  %v981_v13 = vld [vmem:[#allocation2 + $0x34] sm:$0x1] }
  0xfe   : >> { %971 = vst [vmem:[#allocation2 + $0x24] sm:$0x1] %v970_v47  ;;  %v824_v15 = vrot.slane %v822_v19, 7  ;;  %vm472_vm13 = vcmp.gt.f32.partialorder %v4412_v39, 20.0  ;;  %v3329_v36 = vpack.c.bf16 %v708_v3, %v708_v3  ;;  %v3330_v30 = vpack.c.bf16 %v709_v46, %v709_v46  ;;  %v984_v17 = vld [vmem:[#allocation2 + $0x38] sm:$0xf] }
  0xff   : >> { %v710_v45 = vmul.f32 %v3570_v26, %v4404_v31  ;;  %v626_v28 = vmul.f32 0.6931472, %v4629_v25  ;;  %v4666_v32 = vpop.eup %3573  ;;  %v973_v29 = vsel %vm4618_vm10, %v819_v10, %v972_v63  ;;  %v976_v41 = vsel %vm4624_vm11, %v820_v2, %v975_v56  ;;  %v987_v24 = vld [vmem:[#allocation2 + $0x3c] sm:$0x1]  ;;  %v990_v62 = vld [vmem:[#allocation2 + $0x40] sm:$0xf] }
 0x100   : >> { %v827_v6 = vor.u32 %v825_v57, %v824_v15  ;;  %v828_v51 = vrot.slane %v824_v15, 4  ;;  %vm4674_vm14 = vcmp.lt.f32.partialorder %v639_v4, 0.0004427343  ;;  %974 = vst [vmem:[#allocation2 + $0x28] sm:$0xf] %v973_v29  ;;  %v830_v31 = vshrl.u32 %v3328_v12, 16 }
 0x101   : >> { %977 = vst [vmem:[#allocation2 + $0x2c] sm:$0x1] %v976_v41  ;;  %v833_v25 = vshll.u32 %v3328_v12, 16  ;;  %v838_v37 = vshrl.u32 %v3329_v36, 16  ;;  %v841_v50 = vshll.u32 %v3329_v36, 16  ;;  %vm473_vm15 = vcmp.gt.f32.partialorder %v4415_v43, 20.0  ;;  %v3576_v0 = vpop.eup %3575 }
 0x102   : >> { %v979_v48 = vsel %vm4618_vm10, %v827_v6, %v978_v34  ;;  %v982_v9 = vsel %vm4624_vm11, %v828_v51, %v981_v13  ;;  %v846_v40 = vshrl.u32 %v3330_v30, 16  ;;  %v849_v4 = vshll.u32 %v3330_v30, 16  ;;  %v993_v26 = vld [vmem:[#allocation2 + $0x44] sm:$0x1]  ;;  %v996_v15 = vld [vmem:[#allocation2 + $0x58] sm:$0xf] }
 0x103   : >> { %980 = vst [vmem:[#allocation2 + $0x30] sm:$0xf] %v979_v48  ;;  %983 = vst [vmem:[#allocation2 + $0x34] sm:$0x1] %v982_v9  ;;  %v832_v52 = vrot.slane %v830_v31, 7  ;;  %v840_v49 = vrot.slane %v838_v37, 7  ;;  %v3331_v19 = vpack.c.bf16 %v710_v45, %v710_v45  ;;  %v638_v57 = vmul.f32 %v4518_v44, %v4609_v23 }
 0x104   : >> { %v848_v27 = vrot.slane %v846_v40, 7  ;;  %v711_v47 = vmul.f32 %v3576_v0, %v4410_v38  ;;  %v632_v63 = vsel %vm4638_vm12, %v4596_v53, %v626_v28  ;;  %v4692_v56 = vmul.f32 %v4431_v61, %v1063_v33  ;;  %v999_v44 = vld [vmem:[#allocation2 + $0x5c] sm:$0x1]  ;;  %v1002_v29 = vld [vmem:[#allocation2 + $0x60] sm:$0xf] }
 0x105   : >> { %v835_v3 = vor.u32 %v833_v25, %v832_v52  ;;  %v836_v46 = vrot.slane %v832_v52, 4  ;;  %v843_v10 = vor.u32 %v841_v50, %v840_v49  ;;  %v844_v2 = vrot.slane %v840_v49, 4  ;;  %v1005_v41 = vld [vmem:[#allocation2 + $0x64] sm:$0x1]  ;;  %v4712_v50 = vld [vmem:[#allocation2 + $0x48] ss:$8 sps:$4 sm:$0xff]  }
 0x106   : >> { %v851_v23 = vor.u32 %v849_v4, %v848_v27  ;;  %v852_v12 = vrot.slane %v848_v27, 4  ;;  %v854_v34 = vshrl.u32 %v3331_v19, 16  ;;  %v857_v13 = vshll.u32 %v3331_v19, 16  ;;  %v1054_v0 = vld [vmem:[#allocation2 + $0x10] sm:$0xf] }
 0x107   : >> { %v985_v38 = vsel %vm4618_vm10, %v835_v3, %v984_v17  ;;  %v988_v53 = vsel %vm4624_vm11, %v836_v46, %v987_v24  ;;  %v991_v11 = vsel %vm4618_vm10, %v843_v10, %v990_v62  ;;  %v994_v36 = vsel %vm4624_vm11, %v844_v2, %v993_v26  ;;  %v1008_v52 = vld [vmem:[#allocation2 + $0x68] sm:$0xf]  ;;  %v1056_v49 = vld [vmem:[#allocation2 + $0x18] sm:$0xf]  ;;  %v1011_v27 = vld [vmem:[#allocation2 + $0x6c] sm:$0x1] }
 0x108   : >> { %986 = vst [vmem:[#allocation2 + $0x38] sm:$0xf] %v985_v38  ;;  %989 = vst [vmem:[#allocation2 + $0x3c] sm:$0x1] %v988_v53  ;;  %v997_v30 = vsel %vm4618_vm10, %v851_v23, %v996_v15  ;;  %v1000_v45 = vsel %vm4624_vm11, %v852_v12, %v999_v44  ;;  %v856_v28 = vrot.slane %v854_v34, 7  ;;  %v3332_v6 = vpack.c.bf16 %v711_v47, %v711_v47 }
 0x109   : >> { %992 = vst [vmem:[#allocation2 + $0x40] sm:$0xf] %v991_v11  ;;  %995 = vst [vmem:[#allocation2 + $0x44] sm:$0x1] %v994_v36  ;;  %v680_v51 = vsel %vm472_vm13, %v4412_v39, %v632_v63  ;;  %v635_v31 = vmul.f32 0.6931472, %v4646_v58  ;;  %v4719_v58 = vmul.f32 %v4438_v7, %v1063_v33  ;;  %v4722_v24 = vunpack.c.l.bf16 %v4712_v50 }
 0x10a   : >> { %998 = vst [vmem:[#allocation2 + $0x58] sm:$0xf] %v997_v30  ;;  %1001 = vst [vmem:[#allocation2 + $0x5c] sm:$0x1] %v1000_v45  ;;  %v642_v25 = vadd.f32 1.0, %v4652_v20  ;;  %v645_v37 = vmul.f32 -0.5, %v4652_v20  ;;  %v859_v48 = vor.u32 %v857_v13, %v856_v28  ;;  %3577 = vtanh.f32 %v680_v51 }
 0x10b   : >> { %v860_v9 = vrot.slane %v856_v28, 4  ;;  %v862_v40 = vshrl.u32 %v3332_v6, 16  ;;  %v865_v4 = vshll.u32 %v3332_v6, 16  ;;  %v641_v17 = vsel %vm4674_vm14, %v638_v57, %v635_v31  ;;  %v4731_v57 = vld [vmem:[#allocation2 + $0x8] ss:$24 sps:$4 sm:$0xff]  }
 0x10c   : >> { %v1003_v19 = vsel %vm4618_vm10, %v859_v48, %v1002_v29  ;;  %v681_v8 = vsel %vm473_vm15, %v4415_v43, %v641_v17  ;;  %v4733_v42 = vunpack.c.l.bf16 %v1054_v0  ;;  %v1305_v33 = vld [vmem:[#allocation2 + $0x30] sm:$0xf]  ;;  %v646_v47 = vadd.f32 1.0, %v645_v37  ;;  %v1053_v2 = vld [vmem:[#allocation2 + $0xc] sm:$0x1] }
 0x10d   : >> { %v1006_v62 = vsel %vm4624_vm11, %v860_v9, %v1005_v41  ;;  %v864_v26 = vrot.slane %v862_v40, 7  ;;  %1004 = vst [vmem:[#allocation2 + $0x60] sm:$0xf] %v1003_v19  ;;  %3579 = vtanh.f32 %v681_v8  ;;  %v651_v63 = vadd.f32 1.0, %v4661_v16  ;;  %v1055_v12 = vld [vmem:[#allocation2 + $0x14] sm:$0x1] }
 0x10e   : >> { %1007 = vst [vmem:[#allocation2 + $0x64] sm:$0x1] %v1006_v62  ;;  %3581 = vlog2.f32 %v642_v25  ;;  %v654_v10 = vmul.f32 -0.5, %v4661_v16  ;;  %v4737_v15 = vunpack.c.l.bf16 %v1056_v49  ;;  %v648_v23 = vand.u32 2147483647, %v4652_v20 }
 0x10f   : >> { %v867_v3 = vor.u32 %v865_v4, %v864_v26  ;;  %v868_v46 = vrot.slane %v864_v26, 4  ;;  %v1307_v44 = vld [vmem:[#allocation2 + $0x38] sm:$0xf]  ;;  %3583 = vlog2.f32 %v651_v63  ;;  %v4741_v34 = vunpack.c.l.bf16 %v4731_v57  ;;  %v4763_v31 = vld [vmem:[%s4417_s13 + $0x10] ss:$0 sm:$0xff] }
 0x110   : >> { %v4743_v13 = vunpack.c.l.bf16 %v1305_v33  ;;  %v655_v11 = vadd.f32 1.0, %v654_v10  ;;  %v4750_v36 = vmul.f32 %v4652_v20, %v646_v47  ;;  %v657_v30 = vand.u32 2147483647, %v4661_v16 }
 0x111   : >> { %v1009_v38 = vsel %vm4618_vm10, %v867_v3, %v1008_v52  ;;  %v1012_v53 = vsel %vm4624_vm11, %v868_v46, %v1011_v27  ;;  %v660_v45 = vadd.f32 1.0, %v4666_v32  ;;  %v663_v28 = vmul.f32 -0.5, %v4666_v32  ;;  %v1057_v52 = vld [vmem:[#allocation2 + $0x1c] sm:$0x1] }
 0x112   : >> { %1010 = vst [vmem:[#allocation2 + $0x68] sm:$0xf] %v1009_v38  ;;  %1013 = vst [vmem:[#allocation2 + $0x6c] sm:$0x1] %v1012_v53  ;;  %v4755_v29 = vunpack.c.l.bf16 %v1307_v44  ;;  %v666_v41 = vand.u32 2147483647, %v4666_v32  ;;  %v4758_v6 = vunpack.c.l.bf16 %v1053_v2  ;;  %v4760_v51 = vunpack.c.l.bf16 %v1055_v12 }
 0x113   : >> { %vm4765_vm0 = vcmp.lt.f32.partialorder %v648_v23, 0.0004427343  ;;  %v4770_v20 = vmul.f32 %v4661_v16, %v655_v11  ;;  %3585 = vlog2.f32 %v660_v45  ;;  %v664_v37 = vadd.f32 1.0, %v663_v28 }
 0x114   : >> { %v4774_v0 = vmul.f32 %v4427_v59, %v4741_v34  ;;  %v1510_v48 = vld [vmem:[#allocation2 + $0x60] sm:$0xf]  ;;  %vm474_vm1 = vcmp.gt.f32.partialorder %v4422_v54, 20.0  ;;  %v4779_v9 = vmul.f32 %v4429_v60, %v4733_v42  ;;  %v4783_v40 = vmul.f32 %v4433_v1, %v4741_v34 }
 0x115   : >> { %v1123_v16 = vmul.f32 %v4433_v1, %v4758_v6  ;;  %v4789_v4 = vmul.f32 %v4436_v5, %v4733_v42  ;;  %v4791_v17 = vunpack.c.l.bf16 %v1510_v48  ;;  %vm4793_vm2 = vcmp.lt.f32.partialorder %v657_v30, 0.0004427343 }
 0x116   : >> { %v4798_v19 = vmul.f32 %v4666_v32, %v664_v37  ;;  %v1143_v62 = vmul.f32 %v4436_v5, %v4760_v51  ;;  %v1204_v26 = vmul.f32 %v4441_v14, %v4758_v6  ;;  %vm475_vm3 = vcmp.gt.f32.partialorder %v4443_v21, 20.0 }
 0x117   : >> { %v1131_v8 = vadd.f32 %v1123_v16, %v4692_v56  ;;  %v4808_v33 = vmul.f32 %v4441_v14, %v4741_v34  ;;  %v4812_v27 = vmul.f32 %v4763_v31, %v4733_v42  ;;  %v1224_v32 = vmul.f32 %v4763_v31, %v4760_v51  ;;  %v3578_v46 = vpop.eup %3577 }
 0x118   : >> { %vm1166_vm4 = vcmask 1046528   ;;  %v1212_v47 = vadd.f32 %v1204_v26, %v4719_v58  ;;  %v4817_v63 = vunpack.c.l.bf16 %v1057_v52  ;;  %v1079_v3 = vmul.f32 %v4424_v55, %v4741_v34 }
 0x119   : >> { %v1087_v56 = vmul.f32 %v4427_v59, %v4733_v42  ;;  %v1512_v10 = vld [vmem:[#allocation2 + $0x68] sm:$0xf]  ;;  %v4823_v2 = vadd.f32 %v1143_v62, %v1131_v8  ;;  %v1112_v44 = vmul.f32 %v4431_v61, %v4741_v34  ;;  %v1113_v23 = vmul.f32 %v4431_v61, %v4758_v6 }
 0x11a   : >> { %v1124_v58 = vmul.f32 %v4433_v1, %v4733_v42  ;;  %v4831_v12 = vunpack.c.l.bf16 %v1512_v10  ;;  %v712_v38 = vmul.f32 %v3578_v46, %v4412_v39  ;;  %vm4834_vm5 = vcmp.lt.f32.partialorder %v666_v41, 0.0004427343  ;;  %v3580_v45 = vpop.eup %3579 }
 0x11b   : >> { %v1091_v11 = vadd.f32 %v1087_v56, %v1079_v3  ;;  %v1099_v30 = vmul.f32 %v4429_v60, %v4737_v15  ;;  %vm476_vm6 = vcmp.gt.f32.partialorder %v4447_v35, 20.0  ;;  %v4841_v28 = vadd.f32 %v1224_v32, %v1212_v47  ;;  %v3582_v41 = vpop.eup %3581 }
 0x11c   : >> { %6299 = vst [vmem:[#allocation22_spill] sm:$0xff] %v4831_v12  ;;  %v1125_v37 = vmul.f32 %v4433_v1, %v4760_v51  ;;  %v1132_v48 = vadd.f32 %v1124_v58, %v1112_v44  ;;  %v1144_v39 = vmul.f32 %v4436_v5, %v4737_v15  ;;  %v3333_v16 = vpack.c.bf16 %v712_v38, %v712_v38  ;;  %v3584_v8 = vpop.eup %3583 }
 0x11d   : >> { %v713_v52 = vmul.f32 %v3580_v45, %v4415_v43  ;;  %v1168_v62 = vrot.slane %v4823_v2, 1  ;;  %v1103_v26 = vadd.f32 %v1099_v30, %v1091_v11  ;;  %v644_v3 = vmul.f32 0.6931472, %v3582_v41  ;;  %v1017_v41 = vld [vmem:[#allocation2 + $0x74] sm:$0x1] }
 0x11e   : >> { %v1133_v56 = vadd.f32 %v1125_v37, %v1113_v23  ;;  %v1145_v32 = vmul.f32 %v4436_v5, %v4817_v63  ;;  %v1152_v47 = vadd.f32 %v1144_v39, %v1132_v48  ;;  %v870_v46 = vshrl.u32 %v3333_v16, 16  ;;  %v1014_v39 = vld [vmem:[#allocation2 + $0x70] sm:$0xf] }
 0x11f   : >> { %v873_v10 = vshll.u32 %v3333_v16, 16  ;;  %v3334_v44 = vpack.c.bf16 %v713_v52, %v713_v52  ;;  %v653_v58 = vmul.f32 0.6931472, %v3584_v8  ;;  %v650_v38 = vsel %vm4765_vm0, %v4750_v36, %v644_v3 }
 0x120   : >> { %v1153_v12 = vadd.f32 %v1145_v32, %v1133_v56  ;;  %v1170_v43 = vrot.slane %v1152_v47, 1  ;;  %v1193_v11 = vmul.f32 %v4438_v7, %v4741_v34  ;;  %v872_v30 = vrot.slane %v870_v46, 7  ;;  %v3586_v48 = vpop.eup %3585  ;;  %v1020_v56 = vld [vmem:[#allocation2 + $0x78] sm:$0xf]  ;;  %v1023_v32 = vld [vmem:[#allocation2 + $0x7c] sm:$0x1] }
 0x121   : >> { %v878_v45 = vshrl.u32 %v3334_v44, 16  ;;  %v881_v23 = vshll.u32 %v3334_v44, 16  ;;  %v682_v37 = vsel %vm474_vm1, %v4422_v54, %v650_v38  ;;  %v659_v36 = vsel %vm4793_vm2, %v4770_v20, %v653_v58 }
 0x122   : >> { %3587 = vtanh.f32 %v682_v37  ;;  %v1171_v25 = vrot.slane %v1153_v12, 1  ;;  %v1194_v16 = vmul.f32 %v4438_v7, %v4758_v6  ;;  %v875_v34 = vor.u32 %v873_v10, %v872_v30 }
 0x123   : >> { %v876_v52 = vrot.slane %v872_v30, 4  ;;  %v880_v8 = vrot.slane %v878_v45, 7  ;;  %v683_v3 = vsel %vm475_vm3, %v4443_v21, %v659_v36  ;;  %vm1247_vm7 = vcmask 1045504   ;;  %v1059_v30 = vld [vmem:[#allocation2 + $0x24] sm:$0x1] }
 0x124   : >> { %3589 = vtanh.f32 %v683_v3  ;;  %v662_v47 = vmul.f32 0.6931472, %v3586_v48  ;;  %v1172_v46 = vsel %vm1166_vm4, %v1170_v43, %v1171_v25  ;;  %v1205_v20 = vmul.f32 %v4441_v14, %v4733_v42 }
 0x125   : >> { %v1015_v6 = vsel %vm4618_vm10, %v875_v34, %v1014_v39  ;;  %v1018_v49 = vsel %vm4624_vm11, %v876_v52, %v1017_v41  ;;  %v883_v12 = vor.u32 %v881_v23, %v880_v8  ;;  %v884_v10 = vrot.slane %v880_v8, 4 }
 0x126   : >> { %1016 = vst [vmem:[#allocation2 + $0x70] sm:$0xf] %v1015_v6  ;;  %1019 = vst [vmem:[#allocation2 + $0x74] sm:$0x1] %v1018_v49  ;;  %v668_v44 = vsel %vm4834_vm5, %v4798_v19, %v662_v47  ;;  %v1184_v58 = vadd.f32 %v1172_v46, %v1103_v26  ;;  %v1206_v38 = vmul.f32 %v4441_v14, %v4760_v51  ;;  %v4893_v39 = vunpack.c.l.bf16 %v1059_v30 }
 0x127   : >> { %v1213_v43 = vadd.f32 %v1205_v20, %v1193_v11  ;;  %v1021_v45 = vsel %vm4618_vm10, %v883_v12, %v1020_v56  ;;  %v1024_v37 = vsel %vm4624_vm11, %v884_v10, %v1023_v32  ;;  %v684_v23 = vsel %vm476_vm6, %v4447_v35, %v668_v44  ;;  %v4923_v44 = vld [vmem:[#allocation2 + $0x20] ss:$8 sps:$4 sm:$0xff]  }
 0x128   : >> { %v1225_v19 = vmul.f32 %v4763_v31, %v4737_v15  ;;  %1022 = vst [vmem:[#allocation2 + $0x78] sm:$0xf] %v1021_v45  ;;  %1025 = vst [vmem:[#allocation2 + $0x7c] sm:$0x1] %v1024_v37  ;;  %3591 = vtanh.f32 %v684_v23  ;;  %v1214_v53 = vadd.f32 %v1206_v38, %v1194_v16  ;;  %v1226_v26 = vmul.f32 %v4763_v31, %v4817_v63  ;;  %v4926_v38 = vld [vmem:[%s4909_s16] ss:$0 sm:$0xff] }
 0x129   : >> { %v4891_v11 = vunpack.c.h.bf16 %v4731_v57  ;;  %v1080_v41 = vmul.f32 %v4424_v55, %v4733_v42  ;;  %v1088_v36 = vmul.f32 %v4427_v59, %v4737_v15  ;;  %v1114_v16 = vmul.f32 %v4431_v61, %v4733_v42  ;;  %v4935_v37 = vld [vmem:[#allocation2 + $0x2c] sm:$0x1] }
 0x12a   : >> { %v1233_v48 = vadd.f32 %v1225_v19, %v1213_v43  ;;  %v1234_v25 = vadd.f32 %v1226_v26, %v1214_v53  ;;  %v1115_v57 = vmul.f32 %v4431_v61, %v4760_v51  ;;  %v1126_v3 = vmul.f32 %v4433_v1, %v4737_v15 }
 0x12b   : >> { %v1100_v34 = vmul.f32 %v4429_v60, %v4891_v11  ;;  %v1092_v8 = vadd.f32 %v1088_v36, %v1080_v41  ;;  %v1127_v56 = vmul.f32 %v4433_v1, %v4817_v63  ;;  %v1146_v47 = vmul.f32 %v4436_v5, %v4891_v11 }
 0x12c   : >> { %v1251_v52 = vrot.slane %v1233_v48, 2  ;;  %v1252_v32 = vrot.slane %v1234_v25, 2  ;;  %v1147_v46 = vmul.f32 %v4436_v5, %v4893_v39  ;;  %v1195_v20 = vmul.f32 %v4438_v7, %v4733_v42 }
 0x12d   : >> { %v1104_v6 = vadd.f32 %v1100_v34, %v1092_v8  ;;  %v1134_v49 = vadd.f32 %v1126_v3, %v1114_v16  ;;  %v1135_v12 = vadd.f32 %v1127_v56, %v1115_v57  ;;  %v1196_v10 = vmul.f32 %v4438_v7, %v4760_v51 }
 0x12e   : >> { %v1253_v43 = vsel %vm1247_vm7, %v1251_v52, %v1252_v32  ;;  %v1207_v30 = vmul.f32 %v4441_v14, %v4737_v15  ;;  %v1208_v45 = vmul.f32 %v4441_v14, %v4817_v63  ;;  %v1227_v42 = vmul.f32 %v4763_v31, %v4891_v11 }
 0x12f   : >> { %v3588_v23 = vpop.eup %3587  ;;  %v1265_v19 = vadd.f32 %v1253_v43, %v1184_v58  ;;  %v1154_v51 = vadd.f32 %v1146_v47, %v1134_v49  ;;  %v1155_v53 = vadd.f32 %v1147_v46, %v1135_v12  ;;  %v1228_v26 = vmul.f32 %v4763_v31, %v4893_v39 }
 0x130   : >> { %v714_v48 = vmul.f32 %v3588_v23, %v4422_v54  ;;  %v1215_v41 = vadd.f32 %v1207_v30, %v1195_v20  ;;  %v1216_v36 = vadd.f32 %v1208_v45, %v1196_v10  ;;  %v4941_v25 = vunpack.c.h.bf16 %v4923_v44 }
 0x131   : >> { %v3590_v34 = vpop.eup %3589  ;;  %v1275_v16 = vadd.f32 %v4926_v38, %v1265_v19  ;;  %v1173_v57 = vrot.slane %v1154_v51, 1  ;;  %v1174_v52 = vrot.slane %v1155_v53, 1  ;;  %v1073_v58 = vunpack.c.l.bf16 %v4935_v37 }
 0x132   : >> { %v3335_v8 = vpack.c.bf16 %v714_v48, %v714_v48  ;;  %v715_v3 = vmul.f32 %v3590_v34, %v4443_v21  ;;  %v1235_v56 = vadd.f32 %v1227_v42, %v1215_v41  ;;  %v1236_v32 = vadd.f32 %v1228_v26, %v1216_v36  ;;  %v1026_v48 = vld [vmem:[#allocation2 + $0x80] sm:$0xf]  ;;  %v1029_v41 = vld [vmem:[#allocation2 + $0x84] sm:$0x1] }
 0x133   : >> { %v3339_v47 = vpack.c.bf16 %v1275_v16, %v1275_v16  ;;  %v1175_v54 = vsel %vm1166_vm4, %v1173_v57, %v1174_v52  ;;  %v1081_v46 = vmul.f32 %v4424_v55, %v4737_v15  ;;  %v1089_v20 = vmul.f32 %v4427_v59, %v4891_v11 }
 0x134   : >> { %v886_v49 = vshrl.u32 %v3335_v8, 16  ;;  %v889_v12 = vshll.u32 %v3335_v8, 16  ;;  %v3336_v10 = vpack.c.bf16 %v715_v3, %v715_v3  ;;  %v1185_v43 = vadd.f32 %v1175_v54, %v1104_v6 }
 0x135   : >> { %v3592_v30 = vpop.eup %3591  ;;  %1297 = vst [vmem:[%s4953_s28 + $0x8] sm:$0xf] %v3339_v47  ;;  %v1254_v21 = vrot.slane %v1235_v56, 2  ;;  %v1255_v45 = vrot.slane %v1236_v32, 2  ;;  %v1093_v42 = vadd.f32 %v1089_v20, %v1081_v46  ;;  %v1101_v23 = vmul.f32 %v4429_v60, %v4941_v25  ;;  %v1032_v56 = vld [vmem:[#allocation2 + $0x88] sm:$0xf] }
 0x136   : >> { %v888_v19 = vrot.slane %v886_v49, 7  ;;  %v894_v51 = vshrl.u32 %v3336_v10, 16  ;;  %v897_v53 = vshll.u32 %v3336_v10, 16  ;;  %v716_v26 = vmul.f32 %v3592_v30, %v4447_v35  ;;  %v1035_v32 = vld [vmem:[#allocation2 + $0x8c] sm:$0x1] }
 0x137   : >> { %v1256_v6 = vsel %vm1247_vm7, %v1254_v21, %v1255_v45  ;;  %v4960_v36 = vadd.f32 %v1101_v23, %v1093_v42  ;;  %v1116_v34 = vmul.f32 %v4431_v61, %v4737_v15  ;;  %v1117_v16 = vmul.f32 %v4431_v61, %v4817_v63 }
 0x138   : >> { %v891_v57 = vor.u32 %v889_v12, %v888_v19  ;;  %v892_v52 = vrot.slane %v888_v19, 4  ;;  %v896_v8 = vrot.slane %v894_v51, 7  ;;  %v3337_v3 = vpack.c.bf16 %v716_v26, %v716_v26 }
 0x139   : >> { %v1266_v47 = vadd.f32 %v1256_v6, %v1185_v43  ;;  %v1128_v35 = vmul.f32 %v4433_v1, %v4891_v11  ;;  %v1129_v54 = vmul.f32 %v4433_v1, %v4893_v39  ;;  %v1148_v46 = vmul.f32 %v4436_v5, %v4941_v25  ;;  %v1038_v6 = vld [vmem:[#allocation2 + $0x90] sm:$0xf] }
 0x13a   : >> { %v1027_v20 = vsel %vm4618_vm10, %v891_v57, %v1026_v48  ;;  %v1030_v49 = vsel %vm4624_vm11, %v892_v52, %v1029_v41  ;;  %v899_v12 = vor.u32 %v897_v53, %v896_v8  ;;  %v900_v10 = vrot.slane %v896_v8, 4 }
 0x13b   : >> { %1028 = vst [vmem:[#allocation2 + $0x80] sm:$0xf] %v1027_v20  ;;  %1031 = vst [vmem:[#allocation2 + $0x84] sm:$0x1] %v1030_v49  ;;  %v902_v43 = vshrl.u32 %v3337_v3, 16  ;;  %v905_v30 = vshll.u32 %v3337_v3, 16  ;;  %v1276_v21 = vadd.f32 %v4926_v38, %v1266_v47  ;;  %v1136_v45 = vadd.f32 %v1128_v35, %v1116_v34 }
 0x13c   : >> { %v1033_v42 = vsel %vm4618_vm10, %v899_v12, %v1032_v56  ;;  %v1036_v23 = vsel %vm4624_vm11, %v900_v10, %v1035_v32  ;;  %v1137_v19 = vadd.f32 %v1129_v54, %v1117_v16  ;;  %v1149_v51 = vmul.f32 %v4436_v5, %v1073_v58  ;;  %v1041_v34 = vld [vmem:[#allocation2 + $0x94] sm:$0x1]  ;;  %v4992_v3 = vld [vmem:[#allocation2 + $0x24] sm:$0x1]  ;;  %v4997_v35 = vld [vmem:[#allocation2 + $0x28] ss:$24 sps:$4 sm:$0xff]  }
 0x13d   : >> { %1034 = vst [vmem:[#allocation2 + $0x88] sm:$0xf] %v1033_v42  ;;  %1037 = vst [vmem:[#allocation2 + $0x8c] sm:$0x1] %v1036_v23  ;;  %v904_v53 = vrot.slane %v902_v43, 7  ;;  %v3340_v26 = vpack.c.bf16 %v1276_v21, %v1276_v21  ;;  %v1156_v48 = vadd.f32 %v1148_v46, %v1136_v45  ;;  %v1197_v41 = vmul.f32 %v4438_v7, %v4737_v15 }
 0x13e   : >> { %v1157_v57 = vadd.f32 %v1149_v51, %v1137_v19  ;;  %v1198_v52 = vmul.f32 %v4438_v7, %v4817_v63  ;;  %v1209_v16 = vmul.f32 %v4441_v14, %v4891_v11  ;;  %v1210_v8 = vmul.f32 %v4441_v14, %v4893_v39  ;;  %v1304_v20 = vld [vmem:[#allocation2 + $0x2c] sm:$0x1]  ;;  %v1306_v21 = vld [vmem:[#allocation2 + $0x34] sm:$0x1] }
 0x13f   : >> { %v907_v56 = vor.u32 %v905_v30, %v904_v53  ;;  %v908_v32 = vrot.slane %v904_v53, 4  ;;  %1298 = vst [vmem:[%s4953_s28 + $0x10] sm:$0xf] %v3340_v26  ;;  %v1176_v47 = vrot.slane %v1156_v48, 1  ;;  %v1229_v15 = vmul.f32 %v4763_v31, %v4941_v25 }
 0x140   : >> { %v1177_v54 = vrot.slane %v1157_v57, 1  ;;  %v1217_v46 = vadd.f32 %v1209_v16, %v1197_v41  ;;  %v1218_v63 = vadd.f32 %v1210_v8, %v1198_v52  ;;  %v1230_v11 = vmul.f32 %v4763_v31, %v1073_v58 }
 0x141   : >> { %v1039_v39 = vsel %vm4618_vm10, %v907_v56, %v1038_v6  ;;  %v1042_v49 = vsel %vm4624_vm11, %v908_v32, %v1041_v34  ;;  %v1313_v12 = vunpack.c.l.bf16 %v4923_v44  ;;  %v1314_v25 = vunpack.c.l.bf16 %v4992_v3 }
 0x142   : >> { %v1715_v10 = vld [vmem:[#allocation2 + $0x80] sm:$0xf]  ;;  %1040 = vst [vmem:[#allocation2 + $0x90] sm:$0xf] %v1039_v39  ;;  %1043 = vst [vmem:[#allocation2 + $0x94] sm:$0x1] %v1042_v49  ;;  %v1178_v43 = vsel %vm1166_vm4, %v1176_v47, %v1177_v54  ;;  %v1237_v30 = vadd.f32 %v1229_v15, %v1217_v46  ;;  %v1238_v37 = vadd.f32 %v1230_v11, %v1218_v63  ;;  %v5010_v58 = vunpack.c.l.bf16 %v4997_v35 }
 0x143   : >> { %v5012_v18 = vunpack.c.l.bf16 %v1715_v10  ;;  %v1249_v22 = vrot.slane %v4841_v28, 2  ;;  %v1186_v45 = vadd.f32 %v1178_v43, %v4960_v36  ;;  %v5016_v44 = vunpack.c.l.bf16 %v1304_v20 }
 0x144   : >> { %v5018_v42 = vld [vmem:[#allocation2] ss:$136 sps:$4 sm:$0xff]   ;;  %v1257_v23 = vrot.slane %v1237_v30, 2  ;;  %v1258_v19 = vrot.slane %v1238_v37, 2  ;;  %v1325_v51 = vmul.f32 %v1313_v12, %v4424_v55  ;;  %v1329_v53 = vmul.f32 %v5010_v58, %v4427_v59 }
 0x145   : >> { %v1062_v26 = vunpack.c.l.bf16 %v5018_v42  ;;  %v5024_v48 = vunpack.c.l.bf16 %v1306_v21  ;;  %v1337_v28 = vmul.f32 %v4743_v13, %v4429_v60  ;;  %v1345_v36 = vmul.f32 %v1313_v12, %v4431_v61 }
 0x146   : >> { %v1259_v41 = vsel %vm1247_vm7, %v1257_v23, %v1258_v19  ;;  %v1333_v6 = vadd.f32 %v1329_v53, %v1325_v51  ;;  %v1346_v34 = vmul.f32 %v1314_v25, %v4431_v61  ;;  %v1353_v57 = vmul.f32 %v5010_v58, %v4433_v1 }
 0x147   : >> { %v1078_v52 = vmul.f32 %v4424_v55, %v1062_v26  ;;  %v1110_v16 = vmul.f32 %v4431_v61, %v1062_v26  ;;  %v1191_v8 = vmul.f32 %v4438_v7, %v1062_v26  ;;  %v1267_v3 = vadd.f32 %v1259_v41, %v1186_v45 }
 0x148   : >> { %v1341_v56 = vadd.f32 %v1337_v28, %v1333_v6  ;;  %v1354_v32 = vmul.f32 %v5016_v44, %v4433_v1  ;;  %v1361_v47 = vadd.f32 %v1353_v57, %v1345_v36  ;;  %v1369_v15 = vmul.f32 %v4743_v13, %v4436_v5 }
 0x149   : >> { %v1090_v54 = vadd.f32 %v4774_v0, %v1078_v52  ;;  %v1130_v46 = vadd.f32 %v4783_v40, %v1110_v16  ;;  %v1211_v63 = vadd.f32 %v4808_v33, %v1191_v8  ;;  %v1277_v11 = vadd.f32 %v4926_v38, %v1267_v3  ;;  %v1308_v40 = vld [vmem:[#allocation2 + $0x3c] sm:$0x1] }
 0x14a   : >> { %v1362_v20 = vadd.f32 %v1354_v32, %v1346_v34  ;;  %v1370_v39 = vmul.f32 %v5024_v48, %v4436_v5  ;;  %v1377_v49 = vadd.f32 %v1369_v15, %v1361_v47  ;;  %v1413_v10 = vmul.f32 %v1313_v12, %v4438_v7 }
 0x14b   : >> { %v1102_v43 = vadd.f32 %v4779_v9, %v1090_v54  ;;  %v1150_v30 = vadd.f32 %v4789_v4, %v1130_v46  ;;  %v1231_v0 = vadd.f32 %v4812_v27, %v1211_v63  ;;  %v3341_v37 = vpack.c.bf16 %v1277_v11, %v1277_v11 }
 0x14c   : >> { %v1378_v21 = vadd.f32 %v1370_v39, %v1362_v20  ;;  %v1393_v33 = vrot.slane %v1377_v49, 1  ;;  %v1414_v45 = vmul.f32 %v1314_v25, %v4438_v7  ;;  %v1421_v23 = vmul.f32 %v5010_v58, %v4441_v14 }
 0x14d   : >> { %v1167_v19 = vrot.slane %v1150_v30, 1  ;;  %v1248_v51 = vrot.slane %v1231_v0, 2  ;;  %1299 = vst [vmem:[%s4953_s28 + $0x18] sm:$0xf] %v3341_v37  ;;  %v1422_v12 = vmul.f32 %v5016_v44, %v4441_v14  ;;  %v1437_v9 = vmul.f32 %v4763_v31, %v4743_v13 }
 0x14e   : >> { %v1394_v4 = vrot.slane %v1378_v21, 1  ;;  %v1429_v27 = vadd.f32 %v1421_v23, %v1413_v10  ;;  %v1438_v53 = vmul.f32 %v4763_v31, %v5024_v48  ;;  %v5060_v26 = vunpack.c.l.bf16 %v1308_v40 }
 0x14f   : >> { %v1169_v25 = vsel %vm1166_vm4, %v1167_v19, %v1168_v62  ;;  %v1250_v28 = vsel %vm1247_vm7, %v1248_v51, %v1249_v22  ;;  %v1430_v36 = vadd.f32 %v1422_v12, %v1414_v45  ;;  %v1326_v41 = vmul.f32 %v5010_v58, %v4424_v55 }
 0x150   : >> { %v1183_v6 = vadd.f32 %v1169_v25, %v1102_v43  ;;  %v1395_v34 = vsel %vm1166_vm4, %v1393_v33, %v1394_v4  ;;  %v1445_v57 = vadd.f32 %v1437_v9, %v1429_v27  ;;  %v1330_v52 = vmul.f32 %v4743_v13, %v4427_v59  ;;  %v1310_v33 = vld [vmem:[#allocation2 + $0x44] sm:$0x1] }
 0x151   : >> { %v1409_v16 = vadd.f32 %v1395_v34, %v1341_v56  ;;  %v1446_v8 = vadd.f32 %v1438_v53, %v1430_v36  ;;  %v1338_v2 = vmul.f32 %v4755_v29, %v4429_v60  ;;  %v1347_v62 = vmul.f32 %v5010_v58, %v4431_v61 }
 0x152   : >> { %v1264_v22 = vadd.f32 %v1250_v28, %v1183_v6  ;;  %v1461_v3 = vrot.slane %v1445_v57, 2  ;;  %v1334_v32 = vadd.f32 %v1330_v52, %v1326_v41  ;;  %v1348_v47 = vmul.f32 %v5016_v44, %v4431_v61 }
 0x153   : >> { %v1462_v15 = vrot.slane %v1446_v8, 2  ;;  %v1355_v54 = vmul.f32 %v4743_v13, %v4433_v1  ;;  %v1356_v56 = vmul.f32 %v5024_v48, %v4433_v1  ;;  %v1371_v46 = vmul.f32 %v4755_v29, %v4436_v5 }
 0x154   : >> { %v1274_v63 = vadd.f32 %v4926_v38, %v1264_v22  ;;  %v1342_v11 = vadd.f32 %v1338_v2, %v1334_v32  ;;  %v1372_v20 = vmul.f32 %v5060_v26, %v4436_v5  ;;  %v1415_v39 = vmul.f32 %v5010_v58, %v4438_v7 }
 0x155   : >> { %v1463_v49 = vsel %vm1247_vm7, %v1461_v3, %v1462_v15  ;;  %v1363_v10 = vadd.f32 %v1355_v54, %v1347_v62  ;;  %v1364_v43 = vadd.f32 %v1356_v56, %v1348_v47  ;;  %v1416_v30 = vmul.f32 %v5016_v44, %v4438_v7  ;;  %v1312_v15 = vld [vmem:[#allocation2 + $0x4c] sm:$0x1] }
 0x156   : >> { %v3338_v0 = vpack.c.bf16 %v1274_v63, %v1274_v63  ;;  %v1477_v37 = vadd.f32 %v1463_v49, %v1409_v16  ;;  %v1423_v40 = vmul.f32 %v4743_v13, %v4441_v14  ;;  %v1424_v21 = vmul.f32 %v5024_v48, %v4441_v14 }
 0x157   : >> { %v1379_v45 = vadd.f32 %v1371_v46, %v1363_v10  ;;  %v1380_v23 = vadd.f32 %v1372_v20, %v1364_v43  ;;  %v1439_v58 = vmul.f32 %v4763_v31, %v4755_v29  ;;  %v1440_v19 = vmul.f32 %v4763_v31, %v5060_v26 }
 0x158   : >> { %1296 = vst [vmem:[%s4953_s28] sm:$0xf] %v3338_v0  ;;  %v1481_v44 = vadd.f32 %v4926_v38, %v1477_v37  ;;  %v1431_v51 = vadd.f32 %v1423_v40, %v1415_v39  ;;  %v1432_v12 = vadd.f32 %v1424_v21, %v1416_v30  ;;  %v5102_v9 = vunpack.c.h.bf16 %v4997_v35 }
 0x159   : >> { %v1396_v4 = vrot.slane %v1379_v45, 1  ;;  %v1397_v27 = vrot.slane %v1380_v23, 1  ;;  %v5104_v53 = vunpack.c.l.bf16 %v1310_v33  ;;  %v1327_v25 = vmul.f32 %v4743_v13, %v4424_v55 }
 0x15a   : >> { %v3342_v28 = vpack.c.bf16 %v1481_v44, %v1481_v44  ;;  %v1447_v36 = vadd.f32 %v1439_v58, %v1431_v51  ;;  %v1448_v41 = vadd.f32 %v1440_v19, %v1432_v12  ;;  %v1331_v6 = vmul.f32 %v4755_v29, %v4427_v59 }
 0x15b   : >> { %v1398_v34 = vsel %vm1166_vm4, %v1396_v4, %v1397_v27  ;;  %v1339_v57 = vmul.f32 %v5102_v9, %v4429_v60  ;;  %v1349_v35 = vmul.f32 %v4743_v13, %v4431_v61  ;;  %v1350_v52 = vmul.f32 %v5024_v48, %v4431_v61 }
 0x15c   : >> { %1501 = vst [vmem:[%s4953_s28 + $0x20] sm:$0xf] %v3342_v28  ;;  %v1410_v16 = vadd.f32 %v1398_v34, %v1342_v11  ;;  %v1464_v8 = vrot.slane %v1447_v36, 2  ;;  %v1465_v2 = vrot.slane %v1448_v41, 2  ;;  %v1335_v62 = vadd.f32 %v1331_v6, %v1327_v25 }
 0x15d   : >> { %v1357_v22 = vmul.f32 %v4755_v29, %v4433_v1  ;;  %v1358_v3 = vmul.f32 %v5060_v26, %v4433_v1  ;;  %v1373_v32 = vmul.f32 %v5102_v9, %v4436_v5  ;;  %v1374_v47 = vmul.f32 %v5104_v53, %v4436_v5 }
 0x15e   : >> { %v1466_v54 = vsel %vm1247_vm7, %v1464_v8, %v1465_v2  ;;  %v1343_v56 = vadd.f32 %v1339_v57, %v1335_v62  ;;  %v1417_v46 = vmul.f32 %v4743_v13, %v4438_v7  ;;  %v1418_v63 = vmul.f32 %v5024_v48, %v4438_v7 }
 0x15f   : >> { %v1478_v11 = vadd.f32 %v1466_v54, %v1410_v16  ;;  %v1365_v20 = vadd.f32 %v1357_v22, %v1349_v35  ;;  %v1366_v39 = vadd.f32 %v1358_v3, %v1350_v52  ;;  %v1425_v49 = vmul.f32 %v4755_v29, %v4441_v14 }
 0x160   : >> { %v1426_v10 = vmul.f32 %v5060_v26, %v4441_v14  ;;  %v1441_v43 = vmul.f32 %v4763_v31, %v5102_v9  ;;  %v1442_v30 = vmul.f32 %v4763_v31, %v5104_v53  ;;  %v1324_v0 = vunpack.c.l.bf16 %v1312_v15  ;;  %v1507_v15 = vld [vmem:[#allocation2 + $0x54] sm:$0x1] }
 0x161   : >> { %v1482_v13 = vadd.f32 %v4926_v38, %v1478_v11  ;;  %v1381_v48 = vadd.f32 %v1373_v32, %v1365_v20  ;;  %v1382_v37 = vadd.f32 %v1374_v47, %v1366_v39  ;;  %v1433_v40 = vadd.f32 %v1425_v49, %v1417_v46  ;;  %v5170_v11 = vld [vmem:[#allocation2 + $0x58] ss:$24 sps:$4 sm:$0xff]   ;;  %v1511_v49 = vld [vmem:[#allocation2 + $0x64] sm:$0x1] }
 0x162   : >> { %v1434_v21 = vadd.f32 %v1426_v10, %v1418_v63  ;;  %v1328_v33 = vmul.f32 %v4755_v29, %v4424_v55  ;;  %v1332_v45 = vmul.f32 %v5102_v9, %v4427_v59  ;;  %v1340_v23 = vmul.f32 %v4722_v24, %v4429_v60 }
 0x163   : >> { %v3343_v58 = vpack.c.bf16 %v1482_v13, %v1482_v13  ;;  %v1399_v19 = vrot.slane %v1381_v48, 1  ;;  %v1400_v44 = vrot.slane %v1382_v37, 1  ;;  %v1449_v51 = vadd.f32 %v1441_v43, %v1433_v40 }
 0x164   : >> { %v1450_v12 = vadd.f32 %v1442_v30, %v1434_v21  ;;  %v1336_v4 = vadd.f32 %v1332_v45, %v1328_v33  ;;  %v1351_v27 = vmul.f32 %v4755_v29, %v4431_v61  ;;  %v1352_v25 = vmul.f32 %v5060_v26, %v4431_v61 }
 0x165   : >> { %1502 = vst [vmem:[%s4953_s28 + $0x28] sm:$0xf] %v3343_v58  ;;  %v1401_v28 = vsel %vm1166_vm4, %v1399_v19, %v1400_v44  ;;  %v1467_v36 = vrot.slane %v1449_v51, 2  ;;  %v1359_v41 = vmul.f32 %v5102_v9, %v4433_v1  ;;  %v1360_v6 = vmul.f32 %v5104_v53, %v4433_v1 }
 0x166   : >> { %v1411_v34 = vadd.f32 %v1401_v28, %v1343_v56  ;;  %v1468_v57 = vrot.slane %v1450_v12, 2  ;;  %v1344_v35 = vadd.f32 %v1340_v23, %v1336_v4  ;;  %v1375_v52 = vmul.f32 %v4722_v24, %v4436_v5 }
 0x167   : >> { %v1367_v16 = vadd.f32 %v1359_v41, %v1351_v27  ;;  %v1368_v8 = vadd.f32 %v1360_v6, %v1352_v25  ;;  %v1376_v2 = vmul.f32 %v1324_v0, %v4436_v5  ;;  %v1419_v62 = vmul.f32 %v4755_v29, %v4438_v7  ;;  %v1509_v29 = vld [vmem:[#allocation2 + $0x5c] sm:$0x1] }
 0x168   : >> { %v1469_v22 = vsel %vm1247_vm7, %v1467_v36, %v1468_v57  ;;  %v1420_v3 = vmul.f32 %v5060_v26, %v4438_v7  ;;  %v1427_v32 = vmul.f32 %v5102_v9, %v4441_v14  ;;  %v1428_v47 = vmul.f32 %v5104_v53, %v4441_v14 }
 0x169   : >> { %v1479_v54 = vadd.f32 %v1469_v22, %v1411_v34  ;;  %v1383_v56 = vadd.f32 %v1375_v52, %v1367_v16  ;;  %v1384_v46 = vadd.f32 %v1376_v2, %v1368_v8  ;;  %v1443_v63 = vmul.f32 %v4763_v31, %v4722_v24  ;;  %v1513_v22 = vld [vmem:[#allocation2 + $0x6c] sm:$0x1] }
 0x16a   : >> { %v1435_v20 = vadd.f32 %v1427_v32, %v1419_v62  ;;  %v1436_v39 = vadd.f32 %v1428_v47, %v1420_v3  ;;  %v1444_v26 = vmul.f32 %v4763_v31, %v1324_v0  ;;  %v1518_v9 = vunpack.c.h.bf16 %v4712_v50 }
 0x16b   : >> { %v1483_v10 = vadd.f32 %v4926_v38, %v1479_v54  ;;  %v1402_v53 = vrot.slane %v1383_v56, 1  ;;  %v1403_v43 = vrot.slane %v1384_v46, 1  ;;  %v1519_v30 = vunpack.c.l.bf16 %v1507_v15 }
 0x16c   : >> { %v1451_v13 = vadd.f32 %v1443_v63, %v1435_v20  ;;  %v1452_v48 = vadd.f32 %v1444_v26, %v1436_v39  ;;  %v1520_v24 = vunpack.c.l.bf16 %v5170_v11  ;;  %v1521_v37 = vunpack.c.l.bf16 %v1509_v29 }
 0x16d   : >> { %v3344_v40 = vpack.c.bf16 %v1483_v10, %v1483_v10  ;;  %v1404_v21 = vsel %vm1166_vm4, %v1402_v53, %v1403_v43  ;;  %v5177_v33 = vunpack.c.l.bf16 %v1511_v49  ;;  %v1530_v0 = vmul.f32 %v1518_v9, %v4424_v55 }
 0x16e   : >> { %v1412_v45 = vadd.f32 %v1404_v21, %v1344_v35  ;;  %v1470_v50 = vrot.slane %v1451_v13, 2  ;;  %v1471_v23 = vrot.slane %v1452_v48, 2  ;;  %v1534_v58 = vmul.f32 %v1520_v24, %v4427_v59 }
 0x16f   : >> { %v5182_v19 = vunpack.c.h.bf16 %v5018_v42  ;;  %1503 = vst [vmem:[%s4953_s28 + $0x30] sm:$0xf] %v3344_v40  ;;  %v1550_v44 = vmul.f32 %v1518_v9, %v4431_v61  ;;  %v1551_v51 = vmul.f32 %v1519_v30, %v4431_v61  ;;  %v1558_v12 = vmul.f32 %v1520_v24, %v4433_v1 }
 0x170   : >> { %v1472_v4 = vsel %vm1247_vm7, %v1470_v50, %v1471_v23  ;;  %v1538_v27 = vadd.f32 %v1534_v58, %v1530_v0  ;;  %v1542_v25 = vmul.f32 %v4791_v17, %v4429_v60  ;;  %v1559_v28 = vmul.f32 %v1521_v37, %v4433_v1 }
 0x171   : >> { %v1480_v36 = vadd.f32 %v1472_v4, %v1412_v45  ;;  %v1566_v41 = vadd.f32 %v1558_v12, %v1550_v44  ;;  %v1574_v42 = vmul.f32 %v4791_v17, %v4436_v5  ;;  %v1618_v6 = vmul.f32 %v1518_v9, %v4438_v7  ;;  %v6302_v45 = vld [vmem:[#allocation22_spill] sm:$0xff] }
 0x172   : >> { %v1567_v34 = vadd.f32 %v1559_v28, %v1551_v51  ;;  %v1575_v57 = vmul.f32 %v5177_v33, %v4436_v5  ;;  %v1619_v35 = vmul.f32 %v1519_v30, %v4438_v7  ;;  %v1626_v52 = vmul.f32 %v1520_v24, %v4441_v14 }
 0x173   : >> { %v1484_v16 = vadd.f32 %v4926_v38, %v1480_v36  ;;  %v1546_v8 = vadd.f32 %v1542_v25, %v1538_v27  ;;  %v1582_v2 = vadd.f32 %v1574_v42, %v1566_v41  ;;  %v1627_v62 = vmul.f32 %v1521_v37, %v4441_v14 }
 0x174   : >> { %v1583_v3 = vadd.f32 %v1575_v57, %v1567_v34  ;;  %v1634_v32 = vadd.f32 %v1626_v52, %v1618_v6  ;;  %v1642_v47 = vmul.f32 %v4763_v31, %v4791_v17  ;;  %v1643_v15 = vmul.f32 %v4763_v31, %v5177_v33  ;;  %v1515_v6 = vld [vmem:[#allocation2 + $0x74] sm:$0x1] }
 0x175   : >> { %v3345_v54 = vpack.c.bf16 %v1484_v16, %v1484_v16  ;;  %v1598_v56 = vrot.slane %v1582_v2, 1  ;;  %v1635_v46 = vadd.f32 %v1627_v62, %v1619_v35  ;;  %v1531_v63 = vmul.f32 %v1520_v24, %v4424_v55 }
 0x176   : >> { %v1599_v29 = vrot.slane %v1583_v3, 1  ;;  %v1650_v20 = vadd.f32 %v1642_v47, %v1634_v32  ;;  %v5206_v39 = vunpack.c.l.bf16 %v1513_v22  ;;  %v1535_v26 = vmul.f32 %v4791_v17, %v4427_v59 }
 0x177   : >> { %1504 = vst [vmem:[%s4953_s28 + $0x38] sm:$0xf] %v3345_v54  ;;  %v1651_v49 = vadd.f32 %v1643_v15, %v1635_v46  ;;  %v1552_v9 = vmul.f32 %v1520_v24, %v4431_v61  ;;  %v1553_v10 = vmul.f32 %v1521_v37, %v4431_v61  ;;  %v1560_v53 = vmul.f32 %v4791_v17, %v4433_v1 }
 0x178   : >> { %v1600_v43 = vsel %vm1166_vm4, %v1598_v56, %v1599_v29  ;;  %v1666_v30 = vrot.slane %v1650_v20, 2  ;;  %v1539_v13 = vadd.f32 %v1535_v26, %v1531_v63  ;;  %v1561_v48 = vmul.f32 %v5177_v33, %v4433_v1 }
 0x179   : >> { %v1614_v40 = vadd.f32 %v1600_v43, %v1546_v8  ;;  %v1667_v21 = vrot.slane %v1651_v49, 2  ;;  %v1568_v0 = vadd.f32 %v1560_v53, %v1552_v9  ;;  %v1576_v50 = vmul.f32 %v6302_v45, %v4436_v5  ;;  %v1516_v43 = vld [vmem:[#allocation2 + $0x70] ss:$8 sps:$4 sm:$0xff]  }
 0x17a   : >> { %v1543_v23 = vmul.f32 %v6302_v45, %v4429_v60  ;;  %v1569_v58 = vadd.f32 %v1561_v48, %v1553_v10  ;;  %v1577_v44 = vmul.f32 %v5206_v39, %v4436_v5  ;;  %v1620_v51 = vmul.f32 %v1520_v24, %v4438_v7 }
 0x17b   : >> { %v1668_v12 = vsel %vm1247_vm7, %v1666_v30, %v1667_v21  ;;  %v1584_v4 = vadd.f32 %v1576_v50, %v1568_v0  ;;  %v1621_v27 = vmul.f32 %v1521_v37, %v4438_v7  ;;  %v1628_v25 = vmul.f32 %v4791_v17, %v4441_v14  ;;  %v1517_v21 = vld [vmem:[#allocation2 + $0x7c] sm:$0x1] }
 0x17c   : >> { %v1682_v28 = vadd.f32 %v1668_v12, %v1614_v40  ;;  %v1547_v36 = vadd.f32 %v1543_v23, %v1539_v13  ;;  %v1585_v41 = vadd.f32 %v1577_v44, %v1569_v58  ;;  %v1629_v42 = vmul.f32 %v5177_v33, %v4441_v14  ;;  %v5271_v23 = vld [vmem:[%s4417_s13 + $0x10] ss:$0 sm:$0xff] }
 0x17d   : >> { %v1601_v34 = vrot.slane %v1584_v4, 1  ;;  %v1636_v57 = vadd.f32 %v1628_v25, %v1620_v51  ;;  %v1644_v24 = vmul.f32 %v4763_v31, %v6302_v45  ;;  %v5234_v35 = vunpack.c.h.bf16 %v5170_v11 }
 0x17e   : >> { %v1686_v37 = vadd.f32 %v4926_v38, %v1682_v28  ;;  %v1602_v52 = vrot.slane %v1585_v41, 1  ;;  %v1637_v16 = vadd.f32 %v1629_v42, %v1621_v27  ;;  %v1645_v8 = vmul.f32 %v4763_v31, %v5206_v39 }
 0x17f   : >> { %v1652_v2 = vadd.f32 %v1644_v24, %v1636_v57  ;;  %v5239_v62 = vunpack.c.l.bf16 %v1515_v6  ;;  %v1532_v22 = vmul.f32 %v4791_v17, %v4424_v55  ;;  %v1536_v3 = vmul.f32 %v6302_v45, %v4427_v59 }
 0x180   : >> { %v3346_v32 = vpack.c.bf16 %v1686_v37, %v1686_v37  ;;  %v1603_v11 = vsel %vm1166_vm4, %v1601_v34, %v1602_v52  ;;  %v1653_v47 = vadd.f32 %v1645_v8, %v1637_v16  ;;  %v1554_v15 = vmul.f32 %v4791_v17, %v4431_v61 }
 0x181   : >> { %v1615_v54 = vadd.f32 %v1603_v11, %v1547_v36  ;;  %v1669_v56 = vrot.slane %v1652_v2, 2  ;;  %v1544_v31 = vmul.f32 %v5234_v35, %v4429_v60  ;;  %v1555_v46 = vmul.f32 %v5177_v33, %v4431_v61 }
 0x182   : >> { %1706 = vst [vmem:[%s4953_s28 + $0x40] sm:$0xf] %v3346_v32  ;;  %v1670_v63 = vrot.slane %v1653_v47, 2  ;;  %v1540_v29 = vadd.f32 %v1536_v3, %v1532_v22  ;;  %v1562_v20 = vmul.f32 %v6302_v45, %v4433_v1  ;;  %v1563_v26 = vmul.f32 %v5206_v39, %v4433_v1 }
 0x183   : >> { %v1578_v49 = vmul.f32 %v5234_v35, %v4436_v5  ;;  %v1579_v9 = vmul.f32 %v5239_v62, %v4436_v5  ;;  %v1622_v10 = vmul.f32 %v4791_v17, %v4438_v7  ;;  %v1623_v53 = vmul.f32 %v5177_v33, %v4438_v7 }
 0x184   : >> { %v1671_v30 = vsel %vm1247_vm7, %v1669_v56, %v1670_v63  ;;  %v1570_v13 = vadd.f32 %v1562_v20, %v1554_v15  ;;  %v1571_v48 = vadd.f32 %v1563_v26, %v1555_v46  ;;  %v1630_v40 = vmul.f32 %v6302_v45, %v4441_v14  ;;  %v1712_v20 = vld [vmem:[#allocation2 + $0x74] sm:$0x1] }
 0x185   : >> { %v1683_v0 = vadd.f32 %v1671_v30, %v1615_v54  ;;  %v1631_v50 = vmul.f32 %v5206_v39, %v4441_v14  ;;  %v1646_v17 = vmul.f32 %v5271_v23, %v5234_v35  ;;  %v1647_v33 = vmul.f32 %v5271_v23, %v5239_v62 }
 0x186   : >> { %v1586_v58 = vadd.f32 %v1578_v49, %v1570_v13  ;;  %v1587_v44 = vadd.f32 %v1579_v9, %v1571_v48  ;;  %v1638_v51 = vadd.f32 %v1630_v40, %v1622_v10  ;;  %v1528_v12 = vunpack.c.h.bf16 %v1516_v43 }
 0x187   : >> { %v1687_v4 = vadd.f32 %v4926_v38, %v1683_v0  ;;  %v1639_v27 = vadd.f32 %v1631_v50, %v1623_v53  ;;  %v1529_v25 = vunpack.c.l.bf16 %v1517_v21  ;;  %v1533_v28 = vmul.f32 %v6302_v45, %v4424_v55  ;;  %v5305_v53 = vld [vmem:[#allocation2 + $0x78] ss:$24 sps:$4 sm:$0xff]   ;;  %v1716_v50 = vld [vmem:[#allocation2 + $0x84] sm:$0x1] }
 0x188   : >> { %v1604_v36 = vrot.slane %v1586_v58, 1  ;;  %v1605_v41 = vrot.slane %v1587_v44, 1  ;;  %v1654_v42 = vadd.f32 %v1646_v17, %v1638_v51  ;;  %v1537_v6 = vmul.f32 %v5234_v35, %v4427_v59 }
 0x189   : >> { %v3347_v34 = vpack.c.bf16 %v1687_v4, %v1687_v4  ;;  %v1548_v57 = vadd.f32 %v1544_v31, %v1540_v29  ;;  %v1655_v24 = vadd.f32 %v1647_v33, %v1639_v27  ;;  %v1556_v37 = vmul.f32 %v6302_v45, %v4431_v61 }
 0x18a   : >> { %v1606_v52 = vsel %vm1166_vm4, %v1604_v36, %v1605_v41  ;;  %v1672_v16 = vrot.slane %v1654_v42, 2  ;;  %v1545_v8 = vmul.f32 %v1528_v12, %v4429_v60  ;;  %v1557_v2 = vmul.f32 %v5206_v39, %v4431_v61 }
 0x18b   : >> { %1707 = vst [vmem:[%s4953_s28 + $0x48] sm:$0xf] %v3347_v34  ;;  %v1616_v22 = vadd.f32 %v1606_v52, %v1548_v57  ;;  %v1673_v3 = vrot.slane %v1655_v24, 2  ;;  %v1564_v32 = vmul.f32 %v5234_v35, %v4433_v1  ;;  %v1565_v11 = vmul.f32 %v5239_v62, %v4433_v1 }
 0x18c   : >> { %v1541_v47 = vadd.f32 %v1537_v6, %v1533_v28  ;;  %v1580_v15 = vmul.f32 %v1528_v12, %v4436_v5  ;;  %v1581_v54 = vmul.f32 %v1529_v25, %v4436_v5  ;;  %v1624_v56 = vmul.f32 %v6302_v45, %v4438_v7  ;;  %v1714_v45 = vld [vmem:[#allocation2 + $0x7c] sm:$0x1] }
 0x18d   : >> { %v1674_v31 = vsel %vm1247_vm7, %v1672_v16, %v1673_v3  ;;  %v1572_v46 = vadd.f32 %v1564_v32, %v1556_v37  ;;  %v1573_v63 = vadd.f32 %v1565_v11, %v1557_v2  ;;  %v1625_v29 = vmul.f32 %v5206_v39, %v4438_v7 }
 0x18e   : >> { %v1684_v26 = vadd.f32 %v1674_v31, %v1616_v22  ;;  %v1632_v49 = vmul.f32 %v5234_v35, %v4441_v14  ;;  %v1633_v9 = vmul.f32 %v5239_v62, %v4441_v14  ;;  %v1648_v10 = vmul.f32 %v5271_v23, %v1528_v12 }
 0x18f   : >> { %v1588_v30 = vadd.f32 %v1580_v15, %v1572_v46  ;;  %v1589_v13 = vadd.f32 %v1581_v54, %v1573_v63  ;;  %v1649_v48 = vmul.f32 %v5271_v23, %v1529_v25  ;;  %v1723_v40 = vunpack.c.l.bf16 %v1516_v43 }
 0x190   : >> { %v1688_v39 = vadd.f32 %v4926_v38, %v1684_v26  ;;  %v1640_v21 = vadd.f32 %v1632_v49, %v1624_v56  ;;  %v1641_v0 = vadd.f32 %v1633_v9, %v1625_v29  ;;  %v1724_v35 = vunpack.c.l.bf16 %v1712_v20 }
 0x191   : >> { %v1607_v17 = vrot.slane %v1588_v30, 1  ;;  %v1608_v33 = vrot.slane %v1589_v13, 1  ;;  %v5310_v62 = vunpack.c.l.bf16 %v5305_v53  ;;  %v5312_v58 = vunpack.c.l.bf16 %v1714_v45 }
 0x192   : >> { %v3348_v44 = vpack.c.bf16 %v1688_v39, %v1688_v39  ;;  %v1549_v51 = vadd.f32 %v1545_v8, %v1541_v47  ;;  %v1656_v12 = vadd.f32 %v1648_v10, %v1640_v21  ;;  %v1657_v4 = vadd.f32 %v1649_v48, %v1641_v0  ;;  %v1718_v47 = vld [vmem:[#allocation2 + $0x8c] sm:$0x1] }
 0x193   : >> { %v1609_v43 = vsel %vm1166_vm4, %v1607_v17, %v1608_v33  ;;  %v5315_v27 = vunpack.c.l.bf16 %v1716_v50  ;;  %v1735_v25 = vmul.f32 %v1723_v40, %v4424_v55  ;;  %v1739_v28 = vmul.f32 %v5310_v62, %v4427_v59 }
 0x194   : >> { %1708 = vst [vmem:[%s4953_s28 + $0x50] sm:$0xf] %v3348_v44  ;;  %v1617_v36 = vadd.f32 %v1609_v43, %v1549_v51  ;;  %v1675_v41 = vrot.slane %v1656_v12, 2  ;;  %v1676_v42 = vrot.slane %v1657_v4, 2  ;;  %v1755_v6 = vmul.f32 %v1723_v40, %v4431_v61 }
 0x195   : >> { %v1747_v34 = vmul.f32 %v5012_v18, %v4429_v60  ;;  %v1756_v57 = vmul.f32 %v1724_v35, %v4431_v61  ;;  %v1763_v24 = vmul.f32 %v5310_v62, %v4433_v1  ;;  %v1764_v37 = vmul.f32 %v5312_v58, %v4433_v1 }
 0x196   : >> { %v1677_v52 = vsel %vm1247_vm7, %v1675_v41, %v1676_v42  ;;  %v1743_v16 = vadd.f32 %v1739_v28, %v1735_v25  ;;  %v1779_v8 = vmul.f32 %v5012_v18, %v4436_v5  ;;  %v1823_v2 = vmul.f32 %v1723_v40, %v4438_v7 }
 0x197   : >> { %v1685_v22 = vadd.f32 %v1677_v52, %v1617_v36  ;;  %v1771_v3 = vadd.f32 %v1763_v24, %v1755_v6  ;;  %v1772_v32 = vadd.f32 %v1764_v37, %v1756_v57  ;;  %v1780_v11 = vmul.f32 %v5315_v27, %v4436_v5  ;;  %v1720_v52 = vld [vmem:[#allocation2 + $0x94] sm:$0x1] }
 0x198   : >> { %v1824_v15 = vmul.f32 %v1724_v35, %v4438_v7  ;;  %v1831_v54 = vmul.f32 %v5310_v62, %v4441_v14  ;;  %v1832_v56 = vmul.f32 %v5312_v58, %v4441_v14  ;;  %v1847_v31 = vmul.f32 %v5271_v23, %v5012_v18 }
 0x199   : >> { %v1689_v46 = vadd.f32 %v4926_v38, %v1685_v22  ;;  %v1787_v63 = vadd.f32 %v1779_v8, %v1771_v3  ;;  %v1788_v29 = vadd.f32 %v1780_v11, %v1772_v32  ;;  %v1848_v20 = vmul.f32 %v5271_v23, %v5315_v27 }
 0x19a   : >> { %v1839_v26 = vadd.f32 %v1831_v54, %v1823_v2  ;;  %v1840_v49 = vadd.f32 %v1832_v56, %v1824_v15  ;;  %v5345_v9 = vunpack.c.l.bf16 %v1718_v47  ;;  %v1736_v10 = vmul.f32 %v5310_v62, %v4424_v55 }
 0x19b   : >> { %v3349_v45 = vpack.c.bf16 %v1689_v46, %v1689_v46  ;;  %v1803_v30 = vrot.slane %v1787_v63, 1  ;;  %v1804_v13 = vrot.slane %v1788_v29, 1  ;;  %v1740_v48 = vmul.f32 %v5012_v18, %v4427_v59 }
 0x19c   : >> { %v1751_v38 = vadd.f32 %v1747_v34, %v1743_v16  ;;  %v1855_v40 = vadd.f32 %v1847_v31, %v1839_v26  ;;  %v1856_v39 = vadd.f32 %v1848_v20, %v1840_v49  ;;  %v1757_v21 = vmul.f32 %v5310_v62, %v4431_v61 }
 0x19d   : >> { %1709 = vst [vmem:[%s4953_s28 + $0x58] sm:$0xf] %v3349_v45  ;;  %v1805_v0 = vsel %vm1166_vm4, %v1803_v30, %v1804_v13  ;;  %v1748_v50 = vmul.f32 %v5182_v19, %v4429_v60  ;;  %v1758_v35 = vmul.f32 %v5312_v58, %v4431_v61  ;;  %v1765_v17 = vmul.f32 %v5012_v18, %v4433_v1 }
 0x19e   : >> { %v1819_v33 = vadd.f32 %v1805_v0, %v1751_v38  ;;  %v1871_v44 = vrot.slane %v1855_v40, 2  ;;  %v1872_v51 = vrot.slane %v1856_v39, 2  ;;  %v1766_v12 = vmul.f32 %v5315_v27, %v4433_v1 }
 0x19f   : >> { %v1744_v4 = vadd.f32 %v1740_v48, %v1736_v10  ;;  %v1773_v43 = vadd.f32 %v1765_v17, %v1757_v21  ;;  %v1781_v25 = vmul.f32 %v5182_v19, %v4436_v5  ;;  %v1782_v28 = vmul.f32 %v5345_v9, %v4436_v5  ;;  %v1721_v21 = vld [vmem:[#allocation2 + $0x98] sm:$0xf] }
 0x1a0   : >> { %v1873_v36 = vsel %vm1247_vm7, %v1871_v44, %v1872_v51  ;;  %v1774_v41 = vadd.f32 %v1766_v12, %v1758_v35  ;;  %v1825_v42 = vmul.f32 %v5310_v62, %v4438_v7  ;;  %v1826_v6 = vmul.f32 %v5312_v58, %v4438_v7  ;;  %v5384_v58 = vld [vmem:[%s4909_s16] ss:$0 sm:$0xff] }
 0x1a1   : >> { %v1887_v34 = vadd.f32 %v1873_v36, %v1819_v33  ;;  %v1789_v57 = vadd.f32 %v1781_v25, %v1773_v43  ;;  %v1833_v24 = vmul.f32 %v5012_v18, %v4441_v14  ;;  %v1834_v37 = vmul.f32 %v5315_v27, %v4441_v14 }
 0x1a2   : >> { %v1790_v16 = vadd.f32 %v1782_v28, %v1774_v41  ;;  %v1849_v8 = vmul.f32 %v5271_v23, %v5182_v19  ;;  %v1850_v2 = vmul.f32 %v5271_v23, %v5345_v9  ;;  %v5381_v62 = vunpack.c.h.bf16 %v5305_v53 }
 0x1a3   : >> { %v1891_v22 = vadd.f32 %v5384_v58, %v1887_v34  ;;  %v1806_v3 = vrot.slane %v1789_v57, 1  ;;  %v1841_v32 = vadd.f32 %v1833_v24, %v1825_v42  ;;  %v1842_v11 = vadd.f32 %v1834_v37, %v1826_v6 }
 0x1a4   : >> { %v1807_v47 = vrot.slane %v1790_v16, 1  ;;  %v5387_v15 = vunpack.c.l.bf16 %v1720_v52  ;;  %v1737_v54 = vmul.f32 %v5012_v18, %v4424_v55  ;;  %v1741_v56 = vmul.f32 %v5182_v19, %v4427_v59 }
 0x1a5   : >> { %v3350_v31 = vpack.c.bf16 %v1891_v22, %v1891_v22  ;;  %v1752_v53 = vadd.f32 %v1748_v50, %v1744_v4  ;;  %v1857_v46 = vadd.f32 %v1849_v8, %v1841_v32  ;;  %v1858_v63 = vadd.f32 %v1850_v2, %v1842_v11  ;;  %v1722_v4 = vld [vmem:[#allocation2 + $0x9c] sm:$0x1] }
 0x1a6   : >> { %v1808_v29 = vsel %vm1166_vm4, %v1806_v3, %v1807_v47  ;;  %v1749_v20 = vmul.f32 %v5381_v62, %v4429_v60  ;;  %v1759_v26 = vmul.f32 %v5012_v18, %v4431_v61  ;;  %v1760_v49 = vmul.f32 %v5315_v27, %v4431_v61 }
 0x1a7   : >> { %1911 = vst [vmem:[%s4953_s28 + $0x60] sm:$0xf] %v3350_v31  ;;  %v1820_v10 = vadd.f32 %v1808_v29, %v1752_v53  ;;  %v1874_v45 = vrot.slane %v1857_v46, 2  ;;  %v1875_v30 = vrot.slane %v1858_v63, 2  ;;  %v1767_v13 = vmul.f32 %v5182_v19, %v4433_v1 }
 0x1a8   : >> { %v1745_v48 = vadd.f32 %v1741_v56, %v1737_v54  ;;  %v1768_v38 = vmul.f32 %v5345_v9, %v4433_v1  ;;  %v1783_v40 = vmul.f32 %v5381_v62, %v4436_v5  ;;  %v1784_v39 = vmul.f32 %v5387_v15, %v4436_v5 }
 0x1a9   : >> { %v1876_v0 = vsel %vm1247_vm7, %v1874_v45, %v1875_v30  ;;  %v1775_v50 = vadd.f32 %v1767_v13, %v1759_v26  ;;  %v1827_v35 = vmul.f32 %v5012_v18, %v4438_v7  ;;  %v1828_v17 = vmul.f32 %v5315_v27, %v4438_v7 }
 0x1aa   : >> { %v1888_v33 = vadd.f32 %v1876_v0, %v1820_v10  ;;  %v1776_v44 = vadd.f32 %v1768_v38, %v1760_v49  ;;  %v1835_v51 = vmul.f32 %v5182_v19, %v4441_v14  ;;  %v1836_v12 = vmul.f32 %v5345_v9, %v4441_v14 }
 0x1ab   : >> { %v1791_v43 = vadd.f32 %v1783_v40, %v1775_v50  ;;  %v1851_v25 = vmul.f32 %v5271_v23, %v5381_v62  ;;  %v1852_v28 = vmul.f32 %v5271_v23, %v5387_v15  ;;  %v1733_v18 = vunpack.c.l.bf16 %v1721_v21 }
 0x1ac   : >> { %v1892_v36 = vadd.f32 %v5384_v58, %v1888_v33  ;;  %v1792_v27 = vadd.f32 %v1784_v39, %v1776_v44  ;;  %v1843_v41 = vadd.f32 %v1835_v51, %v1827_v35  ;;  %v1844_v42 = vadd.f32 %v1836_v12, %v1828_v17 }
 0x1ad   : >> { %v1809_v6 = vrot.slane %v1791_v43, 1  ;;  %v1734_v34 = vunpack.c.l.bf16 %v1722_v4  ;;  %v1738_v57 = vmul.f32 %v5182_v19, %v4424_v55  ;;  %v1742_v24 = vmul.f32 %v5381_v62, %v4427_v59 }
 0x1ae   : >> { %v3351_v37 = vpack.c.bf16 %v1892_v36, %v1892_v36  ;;  %v1810_v52 = vrot.slane %v1792_v27, 1  ;;  %v1859_v16 = vadd.f32 %v1851_v25, %v1843_v41  ;;  %v1860_v8 = vadd.f32 %v1852_v28, %v1844_v42 }
 0x1af   : >> { %v1753_v2 = vadd.f32 %v1749_v20, %v1745_v48  ;;  %v1746_v22 = vadd.f32 %v1742_v24, %v1738_v57  ;;  %v1761_v3 = vmul.f32 %v5182_v19, %v4431_v61  ;;  %v1762_v32 = vmul.f32 %v5345_v9, %v4431_v61 }
 0x1b0   : >> { %1912 = vst [vmem:[%s4953_s28 + $0x68] sm:$0xf] %v3351_v37  ;;  %v1811_v11 = vsel %vm1166_vm4, %v1809_v6, %v1810_v52  ;;  %v1877_v47 = vrot.slane %v1859_v16, 2  ;;  %v1878_v55 = vrot.slane %v1860_v8, 2  ;;  %v1769_v59 = vmul.f32 %v5381_v62, %v4433_v1 }
 0x1b1   : >> { %v1821_v54 = vadd.f32 %v1811_v11, %v1753_v2  ;;  %v1750_v56 = vmul.f32 %v1733_v18, %v4429_v60  ;;  %v1770_v31 = vmul.f32 %v5387_v15, %v4433_v1  ;;  %v1785_v53 = vmul.f32 %v1733_v18, %v4436_v5 }
 0x1b2   : >> { %v1879_v46 = vsel %vm1247_vm7, %v1877_v47, %v1878_v55  ;;  %v1777_v63 = vadd.f32 %v1769_v59, %v1761_v3  ;;  %v1786_v61 = vmul.f32 %v1734_v34, %v4436_v5  ;;  %v1829_v29 = vmul.f32 %v5182_v19, %v4438_v7 }
 0x1b3   : >> { %v1889_v20 = vadd.f32 %v1879_v46, %v1821_v54  ;;  %v1778_v26 = vadd.f32 %v1770_v31, %v1762_v32  ;;  %v1830_v49 = vmul.f32 %v5345_v9, %v4438_v7  ;;  %v1837_v60 = vmul.f32 %v5381_v62, %v4441_v14 }
 0x1b4   : >> { %v1793_v1 = vadd.f32 %v1785_v53, %v1777_v63  ;;  %v1838_v10 = vmul.f32 %v5387_v15, %v4441_v14  ;;  %v1853_v45 = vmul.f32 %v5271_v23, %v1733_v18  ;;  %v1854_v5 = vmul.f32 %v5271_v23, %v1734_v34 }
 0x1b5   : >> { %v1893_v30 = vadd.f32 %v5384_v58, %v1889_v20  ;;  %v1794_v19 = vadd.f32 %v1786_v61, %v1778_v26  ;;  %v1845_v13 = vadd.f32 %v1837_v60, %v1829_v29  ;;  %v1754_v39 = vadd.f32 %v1750_v56, %v1746_v22 }
 0x1b6   : >> { %v1812_v48 = vrot.slane %v1793_v1, 1  ;;  %v1846_v38 = vadd.f32 %v1838_v10, %v1830_v49 }
 0x1b7   : >> { %v3352_v7 = vpack.c.bf16 %v1893_v30, %v1893_v30  ;;  %v1813_v9 = vrot.slane %v1794_v19, 1  ;;  %v1861_v40 = vadd.f32 %v1853_v45, %v1845_v13 }
 0x1b8   : >> { %v1862_v62 = vadd.f32 %v1854_v5, %v1846_v38 }
 0x1b9   : >> { %1913 = vst [vmem:[%s4953_s28 + $0x70] sm:$0xf] %v3352_v7  ;;  %v1814_v21 = vsel %vm1166_vm4, %v1812_v48, %v1813_v9  ;;  %v1880_v14 = vrot.slane %v1861_v40, 2 }
 0x1ba   : >> { %v1822_v15 = vadd.f32 %v1814_v21, %v1754_v39  ;;  %v1881_v0 = vrot.slane %v1862_v62, 2 }
 0x1bc   : >> { %v1882_v23 = vsel %vm1247_vm7, %v1880_v14, %v1881_v0 }
 0x1bd   : >> { %v1890_v50 = vadd.f32 %v1882_v23, %v1822_v15 }
 0x1bf   : >> { %v1894_v35 = vadd.f32 %v5384_v58, %v1890_v50  ;;  %422 = sbr.rel (!%p420_p3) target bundleno = 178 (0xb2), region = 137 }
 0x1c1   : >> { %v3353_v17 = vpack.c.bf16 %v1894_v35, %v1894_v35 }
 0x1c3   : >> { %1914 = vst [vmem:[%s4953_s28 + $0x78] sm:$0xf] %v3353_v17 }
 0x1c4 PF: > { %v3595_v33 = vld [vmem:[%s4344_s20 + $0x74] ss:$8 sps:$4 sm:$0xff]   ;;  %v3597_v44 = vld [vmem:[%s4344_s20 + $0x70] ss:$8 sps:$4 sm:$0xff]   ;;  %v3598_v58 = vld [vmem:[%s4344_s20 + $0x64] ss:$8 sps:$4 sm:$0xff]   ;;  %v1965_v13 = vlaneseq }
 0x1c5   : > { %2215 = vmatprep.subr.bf16.mxu0 %v3595_v33  ;;  %3371 = vmatprep.subr.bf16.mxu1 %v3595_v33  ;;  %v3600_v51 = vld [vmem:[%s4344_s20 + $0x60] ss:$8 sps:$4 sm:$0xff]   ;;  %v3601_v12 = vld [vmem:[%s4344_s20 + $0x54] ss:$8 sps:$4 sm:$0xff]   ;;  %v3603_v4 = vld [vmem:[%s4344_s20 + $0x50] ss:$8 sps:$4 sm:$0xff]  }
 0x1c6   : > { %2216 = vmatpush1.bf16.msra.mxu0 %v3597_v44  ;;  %3387 = vmatpush1.bf16.msra.mxu1 %v3597_v44  ;;  %v3604_v43 = vld [vmem:[%s4344_s20 + $0x44] ss:$8 sps:$4 sm:$0xff]   ;;  %v3606_v25 = vld [vmem:[%s4344_s20 + $0x40] ss:$8 sps:$4 sm:$0xff]   ;;  %v3607_v28 = vld [vmem:[%s4344_s20 + $0x34] ss:$8 sps:$4 sm:$0xff]  }
 0x1c7   : > { %2217 = vmatprep.subr.bf16.mxu0 %v3598_v58  ;;  %3372 = vmatprep.subr.bf16.mxu1 %v3598_v58  ;;  %v3609_v18 = vld [vmem:[%s4344_s20 + $0x30] ss:$8 sps:$4 sm:$0xff]   ;;  %v3610_v36 = vld [vmem:[%s4344_s20 + $0x24] ss:$8 sps:$4 sm:$0xff]   ;;  %v3612_v27 = vld [vmem:[%s4344_s20 + $0x20] ss:$8 sps:$4 sm:$0xff]  }
 0x1c8   : > { %v3613_v41 = vld [vmem:[%s4344_s20 + $0x14] ss:$8 sps:$4 sm:$0xff]   ;;  %v3615_v6 = vld [vmem:[%s4344_s20 + $0x10] ss:$8 sps:$4 sm:$0xff]   ;;  %v3616_v57 = vld [vmem:[%s4344_s20 + $0x4] ss:$8 sps:$4 sm:$0xff]  }
 0x1c9   : > { %v3618_v24 = vld [vmem:[%s4344_s20] ss:$8 sps:$4 sm:$0xff]   ;;  %v3619_v37 = vld [vmem:[%s4344_s20 + $0xf4] ss:$8 sps:$4 sm:$0xff]   ;;  %v3621_v52 = vld [vmem:[%s4344_s20 + $0xf0] ss:$8 sps:$4 sm:$0xff]  }
 0x1ca   : > { %2218 = vmatpush1.bf16.msra.mxu0 %v3600_v51  ;;  %3388 = vmatpush1.bf16.msra.mxu1 %v3600_v51  ;;  %v3645_v42 = vld [vmem:[#allocation3 + $0x4] ss:$8 sps:$4 sm:$0xff]   ;;  %v3624_v8 = vld [vmem:[%s4344_s20 + $0xe0] ss:$8 sps:$4 sm:$0xff]   ;;  %v3625_v2 = vld [vmem:[%s4344_s20 + $0xd4] ss:$8 sps:$4 sm:$0xff]  }
 0x1cb   : > { %2219 = vmatprep.subr.bf16.mxu0 %v3601_v12  ;;  %3373 = vmatprep.subr.bf16.mxu1 %v3601_v12  ;;  %v3648_v34 = vld [vmem:[#allocation3 + $0x44] ss:$8 sps:$4 sm:$0xff]   ;;  %v3627_v22 = vld [vmem:[%s4344_s20 + $0xd0] ss:$8 sps:$4 sm:$0xff]   ;;  %v3630_v32 = vld [vmem:[%s4344_s20 + $0xc0] ss:$8 sps:$4 sm:$0xff]  }
 0x1cc   : > { %2247 = vmatprep.mubr.bf16.mxu0 %v3645_v42  ;;  %2287 = vmatprep.mubr.bf16.mxu1 %v3648_v34  ;;  %v3622_v16 = vld [vmem:[%s4344_s20 + $0xe4] ss:$8 sps:$4 sm:$0xff]   ;;  %v3631_v11 = vld [vmem:[%s4344_s20 + $0xb4] ss:$8 sps:$4 sm:$0xff]   ;;  %v3633_v47 = vld [vmem:[%s4344_s20 + $0xb0] ss:$8 sps:$4 sm:$0xff]  }
 0x1cd   : > { %v3628_v3 = vld [vmem:[%s4344_s20 + $0xc4] ss:$8 sps:$4 sm:$0xff]   ;;  %v3636_v59 = vld [vmem:[%s4344_s20 + $0xa0] ss:$8 sps:$4 sm:$0xff]   ;;  %v3637_v54 = vld [vmem:[%s4344_s20 + $0x94] ss:$8 sps:$4 sm:$0xff]  }
 0x1ce   : > { %2220 = vmatpush1.bf16.msra.mxu0 %v3603_v4  ;;  %3389 = vmatpush1.bf16.msra.mxu1 %v3603_v4  ;;  %v3634_v55 = vld [vmem:[%s4344_s20 + $0xa4] ss:$8 sps:$4 sm:$0xff]   ;;  %v3639_v56 = vld [vmem:[%s4344_s20 + $0x90] ss:$8 sps:$4 sm:$0xff]   ;;  %v3642_v53 = vld [vmem:[%s4344_s20 + $0x80] ss:$8 sps:$4 sm:$0xff]  }
 0x1cf   : > { %2221 = vmatprep.subr.bf16.mxu0 %v3604_v43  ;;  %3374 = vmatprep.subr.bf16.mxu1 %v3604_v43  ;;  %v3640_v31 = vld [vmem:[%s4344_s20 + $0x84] ss:$8 sps:$4 sm:$0xff]   ;;  %v3643_v46 = vld [vmem:[#allocation3] ss:$8 sps:$4 sm:$0xff]   ;;  %v3649_v61 = vld [vmem:[#allocation3 + $0x14] ss:$8 sps:$4 sm:$0xff]  }
 0x1d0   : > { %v3646_v63 = vld [vmem:[#allocation3 + $0x40] ss:$8 sps:$4 sm:$0xff]   ;;  %v3651_v29 = vld [vmem:[#allocation3 + $0x54] ss:$8 sps:$4 sm:$0xff]   ;;  %v3653_v20 = vld [vmem:[#allocation3 + $0x10] ss:$8 sps:$4 sm:$0xff]  }
 0x1d1   : > { %v3654_v26 = vld [vmem:[#allocation3 + $0x50] ss:$8 sps:$4 sm:$0xff]   ;;  %v3655_v49 = vld [vmem:[#allocation3 + $0x24] ss:$8 sps:$4 sm:$0xff]   ;;  %v3659_v1 = vld [vmem:[#allocation3 + $0x20] ss:$8 sps:$4 sm:$0xff]  }
 0x1d2   : > { %2222 = vmatpush1.bf16.msra.mxu0 %v3606_v25  ;;  %3390 = vmatpush1.bf16.msra.mxu1 %v3606_v25  ;;  %v3657_v60 = vld [vmem:[#allocation3 + $0x64] ss:$8 sps:$4 sm:$0xff]   ;;  %v3660_v10 = vld [vmem:[#allocation3 + $0x60] ss:$8 sps:$4 sm:$0xff]   ;;  %v3661_v45 = vld [vmem:[#allocation3 + $0x34] ss:$8 sps:$4 sm:$0xff]  }
 0x1d3   : > { %2223 = vmatprep.subr.bf16.mxu0 %v3607_v28  ;;  %3375 = vmatprep.subr.bf16.mxu1 %v3607_v28  ;;  %v3663_v5 = vld [vmem:[#allocation3 + $0x74] ss:$8 sps:$4 sm:$0xff]   ;;  %v3665_v30 = vld [vmem:[#allocation3 + $0x30] ss:$8 sps:$4 sm:$0xff]   ;;  %v1966_v48 = vshrl.u32 %v1965_v13, 7  ;;  %s3370_s30 = sshll.u32 %s4148_s25, 7 }
 0x1d4   : > { %v3666_v19 = vld [vmem:[#allocation3 + $0x70] ss:$8 sps:$4 sm:$0xff]   ;;  %v1963_v7 = vld [vmem:[%s4352_s0] sm:$0x3]  ;;  %s3046_s17 = sshll.u32 %s4356_s18, 4  ;;  %s6164_s20 = scalar_lea.hbm %s6215_s6, %s3370_s30  ;;  %s6166_s17 = int_to_ptr.vmem [resolvable:$true] %s3046_s17 }
 0x1d5   : > { %v1967_v38 = vsub.s32 0, %v1966_v48  ;;  %v1971_v9 = vsub.s32 1, %v1966_v48  ;;  %s3033_s25 = scalar_lea.sflag [#allocation6], %s4341_s26  ;;  %s3995_s29 = scalar_lea.vmem %s6166_s17, 2048 }
 0x1d6   : > { %2224 = vmatpush1.bf16.msra.mxu0 %v3609_v18  ;;  %3391 = vmatpush1.bf16.msra.mxu1 %v3609_v18  ;;  %p3996_p8 = scmp.ne.s32.totalorder %s6166_s17, %s3995_s29  ;;  %p6354_p9 = scmp.ne.s32.totalorder %s6243_s9, 0 }
 0x1d7   : > { %2225 = vmatprep.subr.bf16.mxu0 %v3610_v36  ;;  %3376 = vmatprep.subr.bf16.mxu1 %v3610_v36  ;;  %v5493_v40 = vrot.slane %v1963_v7, %v1967_v38  ;;  %v5495_v21 = vrot.slane %v1963_v7, %v1971_v9  ;;  %s4088_s7 = smov [#allocation12]  }
 0x1d8   : > { %p3997_p5 = pnand %p3996_p8, %p6354_p9  ;;  %s3999_s0 = sshll.u32 %s4088_s7, 4  ;;  %s4000_s0 = int_to_ptr.vmem [resolvable:$false] %s3999_s0 }
 0x1d9   : > { %p4002_p12 = scmp.lt.s32.totalorder %s6166_s17, %s4000_s0 }
 0x1da   : > { %2226 = vmatpush1.bf16.msra.mxu0 %v3612_v27  ;;  %3392 = vmatpush1.bf16.msra.mxu1 %v3612_v27  ;;  %p3998_p10 = pneg %p3997_p5 }
 0x1db   : > { %2227 = vmatprep.subr.bf16.mxu0 %v3613_v41  ;;  %3377 = vmatprep.subr.bf16.mxu1 %v3613_v41 }
 0x1de   : > { %2228 = vmatpush1.bf16.msra.mxu0 %v3615_v6  ;;  %3393 = vmatpush1.bf16.msra.mxu1 %v3615_v6 }
 0x1df   : > { %2229 = vmatprep.subr.bf16.mxu0 %v3616_v57  ;;  %3378 = vmatprep.subr.bf16.mxu1 %v3616_v57 }
 0x1e2   : > { %2230 = vmatpush1.bf16.msra.mxu0 %v3618_v24  ;;  %3394 = vmatpush1.bf16.msra.mxu1 %v3618_v24 }
 0x1e3   : > { %2231 = vmatprep.subr.bf16.mxu0 %v3619_v37  ;;  %3379 = vmatprep.subr.bf16.mxu1 %v3619_v37 }
 0x1e6   : > { %2232 = vmatpush2.bf16.msra.mxu0 %v3621_v52  ;;  %3395 = vmatpush2.bf16.msra.mxu1 %v3621_v52 }
 0x1e7   : > { %2233 = vmatprep.subr.bf16.mxu0 %v3622_v16  ;;  %3380 = vmatprep.subr.bf16.mxu1 %v3622_v16 }
 0x1ea   : > { %2234 = vmatpush2.bf16.msra.mxu0 %v3624_v8  ;;  %3396 = vmatpush2.bf16.msra.mxu1 %v3624_v8 }
 0x1eb   : > { %2235 = vmatprep.subr.bf16.mxu0 %v3625_v2  ;;  %3381 = vmatprep.subr.bf16.mxu1 %v3625_v2 }
 0x1ee   : > { %2236 = vmatpush2.bf16.msra.mxu0 %v3627_v22  ;;  %3397 = vmatpush2.bf16.msra.mxu1 %v3627_v22 }
 0x1ef   : > { %2237 = vmatprep.subr.bf16.mxu0 %v3628_v3  ;;  %3382 = vmatprep.subr.bf16.mxu1 %v3628_v3 }
 0x1f2   : > { %2238 = vmatpush2.bf16.msra.mxu0 %v3630_v32  ;;  %3398 = vmatpush2.bf16.msra.mxu1 %v3630_v32 }
 0x1f3   : > { %2239 = vmatprep.subr.bf16.mxu0 %v3631_v11  ;;  %3383 = vmatprep.subr.bf16.mxu1 %v3631_v11 }
 0x1f6   : > { %2240 = vmatpush2.bf16.msra.mxu0 %v3633_v47  ;;  %3399 = vmatpush2.bf16.msra.mxu1 %v3633_v47 }
 0x1f7   : > { %2241 = vmatprep.subr.bf16.mxu0 %v3634_v55  ;;  %3384 = vmatprep.subr.bf16.mxu1 %v3634_v55 }
 0x1fa   : > { %2242 = vmatpush2.bf16.msra.mxu0 %v3636_v59  ;;  %3400 = vmatpush2.bf16.msra.mxu1 %v3636_v59 }
 0x1fb   : > { %2243 = vmatprep.subr.bf16.mxu0 %v3637_v54  ;;  %3385 = vmatprep.subr.bf16.mxu1 %v3637_v54 }
 0x1fe   : > { %2244 = vmatpush2.bf16.msra.mxu0 %v3639_v56  ;;  %3401 = vmatpush2.bf16.msra.mxu1 %v3639_v56 }
 0x1ff   : > { %2245 = vmatprep.subr.bf16.mxu0 %v3640_v31  ;;  %3386 = vmatprep.subr.bf16.mxu1 %v3640_v31 }
 0x202   : > { %2246 = vmatpush2.bf16.msra.mxu0 %v3642_v53  ;;  %3402 = vmatpush2.bf16.msra.mxu1 %v3642_v53 }
 0x205   : > { %2248 = vmatmul.mubr.bf16.vlgmr.msra.gmra.mxu0 %v3643_v46  ;;  %2288 = vmatmul.mubr.bf16.vlgmr.msra.gmra.mxu1 %v3646_v63 }
 0x206   : > { %2257 = vmatprep.mubr.bf16.mxu0 %v3649_v61  ;;  %2297 = vmatprep.mubr.bf16.mxu1 %v3651_v29  ;;  %v5547_v29 = vld [vmem:[%s4354_s23] sm:$0xff] }
 0x207   : > { %v2857_v9 = vunpack.c.h.bf16 %v5547_v29 }
 0x20d   : > { %2258 = vmatmul.mubr.bf16.gmra.mxu0 %v3653_v20  ;;  %2298 = vmatmul.mubr.bf16.gmra.mxu1 %v3654_v26 }
 0x20e   : > { %2267 = vmatprep.mubr.bf16.mxu0 %v3655_v49  ;;  %2307 = vmatprep.mubr.bf16.mxu1 %v3657_v60  ;;  %v5551_v49 = vld [vmem:[%s4354_s23 + $0x40] sm:$0xff] }
 0x20f   : > { %v2872_v7 = vunpack.c.l.bf16 %v5551_v49 }
 0x215   : > { %2268 = vmatmul.mubr.bf16.gmra.mxu0 %v3659_v1  ;;  %2308 = vmatmul.mubr.bf16.gmra.mxu1 %v3660_v10  ;;  %v5557_v1 = vld [vmem:[%s4354_s23 + $0x8] sm:$0xff] }
 0x216   : > { %2277 = vmatprep.mubr.bf16.mxu0 %v3661_v45  ;;  %2317 = vmatprep.mubr.bf16.mxu1 %v3663_v5  ;;  %v5560_v10 = vld [vmem:[%s4354_s23 + $0x48] sm:$0xff] }
 0x21d   : > { %2278 = vmatmul.mubr.bf16.gmra.mxu0 %v3665_v30  ;;  %2318 = vmatmul.mubr.bf16.gmra.mxu1 %v3666_v19  ;;  %v2856_v30 = vunpack.c.l.bf16 %v5547_v29 }
 0x2c5   : > { %v2249_v39 = vpop.f32.mrf.mxu0  ;;  %v2289_v62 = vpop.f32.mrf.mxu1 }
 0x2c6   : > { %v5498_v14 = vadd.f32 %v2249_v39, %v5493_v40  ;;  %v5501_v15 = vadd.f32 %v2289_v62, %v5493_v40  ;;  %v2873_v39 = vunpack.c.h.bf16 %v5551_v49 }
 0x2c7   : > { %v2251_v0 = vpop.f32.mrf.mxu0  ;;  %v2291_v23 = vpop.f32.mrf.mxu1 }
 0x2c8   : > { %v2360_v50 = vmin.f32 %v5498_v14, 20.0  ;;  %v2376_v35 = vmin.f32 %v5501_v15, 20.0  ;;  %v5506_v17 = vadd.f32 %v2251_v0, %v5495_v21  ;;  %v5509_v33 = vadd.f32 %v2291_v23, %v5495_v21 }
 0x2c9   : > { %v2253_v44 = vpop.f32.mrf.mxu0  ;;  %v2293_v58 = vpop.f32.mrf.mxu1  ;;  %v2858_v23 = vunpack.c.l.bf16 %v5557_v1  ;;  %vm2328_vm9 = vcmp.gt.f32.partialorder %v5498_v14, 20.0  ;;  %vm2344_vm11 = vcmp.gt.f32.partialorder %v5501_v15, 20.0 }
 0x2ca   : > { %v2392_v51 = vmul.f32 1.442695, %v2360_v50  ;;  %v2424_v12 = vmul.f32 1.442695, %v2376_v35  ;;  %v5512_v4 = vadd.f32 %v2253_v44, %v5493_v40  ;;  %v5515_v43 = vadd.f32 %v2293_v58, %v5493_v40 }
 0x2cb   : > { %v2361_v25 = vmin.f32 %v5506_v17, 20.0  ;;  %v2377_v28 = vmin.f32 %v5509_v33, 20.0  ;;  %v2255_v18 = vpop.f32.mrf.mxu0  ;;  %v2295_v36 = vpop.f32.mrf.mxu1  ;;  %vm2329_vm13 = vcmp.gt.f32.partialorder %v5506_v17, 20.0  ;;  %vm2345_vm14 = vcmp.gt.f32.partialorder %v5509_v33, 20.0 }
 0x2cc   : > { %3667 = vpow2.f32 %v2392_v51  ;;  %v2362_v27 = vmin.f32 %v5512_v4, 20.0  ;;  %v2378_v6 = vmin.f32 %v5515_v43, 20.0  ;;  %v5522_v37 = vadd.f32 %v2255_v18, %v5495_v21 }
 0x2cd   : > { %3669 = vpow2.f32 %v2424_v12  ;;  %v2394_v41 = vmul.f32 1.442695, %v2361_v25  ;;  %v2426_v42 = vmul.f32 1.442695, %v2377_v28  ;;  %v2259_v34 = vpop.f32.mrf.mxu0  ;;  %v2299_v57 = vpop.f32.mrf.mxu1  ;;  %v5525_v52 = vadd.f32 %v2295_v36, %v5495_v21 }
 0x2ce   : > { %v2396_v24 = vmul.f32 1.442695, %v2362_v27  ;;  %v5528_v16 = vadd.f32 %v2259_v34, %v5493_v40  ;;  %v2428_v8 = vmul.f32 1.442695, %v2378_v6  ;;  %v5531_v2 = vadd.f32 %v2299_v57, %v5493_v40 }
 0x2cf   : > { %3671 = vpow2.f32 %v2394_v41  ;;  %v2261_v22 = vpop.f32.mrf.mxu0  ;;  %v2301_v3 = vpop.f32.mrf.mxu1  ;;  %v2363_v32 = vmin.f32 %v5522_v37, 20.0  ;;  %v2379_v11 = vmin.f32 %v5525_v52, 20.0  ;;  %vm2330_vm1 = vcmp.gt.f32.partialorder %v5512_v4, 20.0 }
 0x2d0   : > { %3673 = vpow2.f32 %v2426_v42  ;;  %v2364_v47 = vmin.f32 %v5528_v16, 20.0  ;;  %v2380_v54 = vmin.f32 %v5531_v2, 20.0  ;;  %v5538_v53 = vadd.f32 %v2261_v22, %v5495_v21 }
 0x2d1   : > { %3675 = vpow2.f32 %v2396_v24  ;;  %v2263_v55 = vpop.f32.mrf.mxu0  ;;  %v2398_v59 = vmul.f32 1.442695, %v2363_v32  ;;  %v2430_v56 = vmul.f32 1.442695, %v2379_v11  ;;  %v2303_v46 = vpop.f32.mrf.mxu1  ;;  %v5541_v63 = vadd.f32 %v2301_v3, %v5495_v21 }
 0x2d2   : > { %3677 = vpow2.f32 %v2428_v8  ;;  %v2400_v31 = vmul.f32 1.442695, %v2364_v47  ;;  %v5544_v61 = vadd.f32 %v2263_v55, %v5493_v40  ;;  %v2432_v20 = vmul.f32 1.442695, %v2380_v54 }
 0x2d3   : > { %3679 = vpow2.f32 %v2398_v59  ;;  %v2365_v26 = vmin.f32 %v5538_v53, 20.0  ;;  %v5554_v60 = vadd.f32 %v2303_v46, %v5493_v40  ;;  %v2265_v5 = vpop.f32.mrf.mxu0  ;;  %v2381_v19 = vmin.f32 %v5541_v63, 20.0  ;;  %v2305_v48 = vpop.f32.mrf.mxu1 }
 0x2d4   : > { %3681 = vpow2.f32 %v2430_v56  ;;  %v2366_v13 = vmin.f32 %v5544_v61, 20.0  ;;  %v5574_v36 = vadd.f32 %v2265_v5, %v5495_v21  ;;  %v5581_v22 = vadd.f32 %v2305_v48, %v5495_v21 }
 0x2d5   : > { %3683 = vpow2.f32 %v2400_v31  ;;  %v2402_v45 = vmul.f32 1.442695, %v2365_v26  ;;  %v2382_v35 = vmin.f32 %v5554_v60, 20.0  ;;  %v2269_v12 = vpop.f32.mrf.mxu0  ;;  %v2434_v28 = vmul.f32 1.442695, %v2381_v19  ;;  %v2309_v27 = vpop.f32.mrf.mxu1 }
 0x2d6   : > { %3685 = vpow2.f32 %v2432_v20  ;;  %v2404_v18 = vmul.f32 1.442695, %v2366_v13  ;;  %v5584_v3 = vadd.f32 %v2269_v12, %v5493_v40  ;;  %v5589_v55 = vadd.f32 %v2309_v27, %v5493_v40 }
 0x2d7   : > { %3687 = vpow2.f32 %v2402_v45  ;;  %v5578_v8 = vmul.f32 1.442695, %v2382_v35  ;;  %vm2346_vm3 = vcmp.gt.f32.partialorder %v5515_v43, 20.0  ;;  %vm2331_vm5 = vcmp.gt.f32.partialorder %v5522_v37, 20.0 }
 0x2d8   : > { %vm2347_vm7 = vcmp.gt.f32.partialorder %v5525_v52, 20.0 }
 0x2d9   : > { %v3668_v38 = vpop.eup %3667 }
 0x2da   : > { %v3670_v62 = vpop.eup %3669  ;;  %v2456_v0 = vadd.f32 1.0, %v3668_v38  ;;  %v2459_v42 = vmul.f32 -0.5, %v3668_v38  ;;  %v2462_v11 = vand.u32 2147483647, %v3668_v38 }
 0x2db   : > { %v2600_v44 = vadd.f32 1.0, %v3670_v62  ;;  %v2603_v6 = vmul.f32 -0.5, %v3670_v62  ;;  %v2606_v59 = vand.u32 2147483647, %v3670_v62 }
 0x2dc   : > { %v3672_v25 = vpop.eup %3671  ;;  %3689 = vlog2.f32 %v2456_v0  ;;  %v2460_v46 = vadd.f32 1.0, %v2459_v42  ;;  %vm5599_vm8 = vcmp.lt.f32.partialorder %v2462_v11, 0.0004427343 }
 0x2dd   : > { %v3674_v41 = vpop.eup %3673  ;;  %3691 = vlog2.f32 %v2600_v44  ;;  %v2465_v34 = vadd.f32 1.0, %v3672_v25  ;;  %v2468_v47 = vmul.f32 -0.5, %v3672_v25  ;;  %v2604_v20 = vadd.f32 1.0, %v2603_v6 }
 0x2de   : > { %v5576_v57 = vpop.eup %3675  ;;  %v2609_v24 = vadd.f32 1.0, %v3674_v41  ;;  %v2612_v54 = vmul.f32 -0.5, %v3674_v41  ;;  %v2471_v26 = vand.u32 2147483647, %v3672_v25  ;;  %v2615_v35 = vand.u32 2147483647, %v3674_v41 }
 0x2df   : > { %v5586_v32 = vpop.eup %3677  ;;  %3693 = vlog2.f32 %v2465_v34  ;;  %v2474_v56 = vadd.f32 1.0, %v5576_v57  ;;  %v2477_v5 = vmul.f32 -0.5, %v5576_v57  ;;  %v2469_v0 = vadd.f32 1.0, %v2468_v47 }
 0x2e0   : > { %3695 = vlog2.f32 %v2609_v24  ;;  %v5592_v31 = vpop.eup %3679  ;;  %v2618_v19 = vadd.f32 1.0, %v5586_v32  ;;  %v2621_v13 = vmul.f32 -0.5, %v5586_v32  ;;  %vm5606_vm10 = vcmp.lt.f32.partialorder %v2606_v59, 0.0004427343 }
 0x2e1   : > { %3697 = vpow2.f32 %v2434_v28  ;;  %v5594_v45 = vpop.eup %3681  ;;  %v2613_v28 = vadd.f32 1.0, %v2612_v54  ;;  %v2483_v27 = vadd.f32 1.0, %v5592_v31  ;;  %v2486_v42 = vmul.f32 -0.5, %v5592_v31 }
 0x2e2   : > { %3699 = vlog2.f32 %v2474_v56  ;;  %v5603_v44 = vpop.eup %3683  ;;  %v2461_v6 = vmul.f32 %v3668_v38, %v2460_v46  ;;  %v2605_v34 = vmul.f32 %v3670_v62, %v2604_v20  ;;  %v2627_v24 = vadd.f32 1.0, %v5594_v45 }
 0x2e3   : > { %3701 = vpow2.f32 %v2404_v18  ;;  %v2480_v18 = vand.u32 2147483647, %v5576_v57  ;;  %v5615_v11 = vpop.eup %3685  ;;  %vm5617_vm12 = vcmp.lt.f32.partialorder %v2471_v26, 0.0004427343  ;;  %v2478_v59 = vadd.f32 1.0, %v2477_v5 }
 0x2e4   : > { %3703 = vlog2.f32 %v2618_v19  ;;  %v2622_v54 = vadd.f32 1.0, %v2621_v13  ;;  %v2624_v38 = vand.u32 2147483647, %v5586_v32  ;;  %v2487_v56 = vadd.f32 1.0, %v2486_v42  ;;  %v5624_v46 = vpop.eup %3687 }
 0x2e5   : > { %3705 = vlog2.f32 %v2483_v27  ;;  %v2492_v62 = vadd.f32 1.0, %v5603_v44  ;;  %v2470_v20 = vmul.f32 %v3672_v25, %v2469_v0  ;;  %v2614_v26 = vmul.f32 %v3674_v41, %v2613_v28 }
 0x2e6   : > { %3707 = vlog2.f32 %v2627_v24  ;;  %vm5627_vm15 = vcmp.lt.f32.partialorder %v2615_v35, 0.0004427343  ;;  %v2630_v5 = vmul.f32 -0.5, %v5594_v45  ;;  %vm5632_vm0 = vcmp.lt.f32.partialorder %v2480_v18, 0.0004427343 }
 0x2e7   : > { %v2489_v42 = vand.u32 2147483647, %v5592_v31  ;;  %3709 = vlog2.f32 %v2492_v62  ;;  %v2636_v24 = vadd.f32 1.0, %v5615_v11  ;;  %v2479_v41 = vmul.f32 %v5576_v57, %v2478_v59 }
 0x2e8   : > { %v2623_v35 = vmul.f32 %v5586_v32, %v2622_v54  ;;  %v2633_v28 = vand.u32 2147483647, %v5594_v45  ;;  %vm5642_vm2 = vcmp.lt.f32.partialorder %v2624_v38, 0.0004427343  ;;  %v5647_v50 = vmul.f32 %v5592_v31, %v2487_v56 }
 0x2e9   : > { %v3690_v13 = vpop.eup %3689  ;;  %v2495_v62 = vmul.f32 -0.5, %v5603_v44  ;;  %3711 = vlog2.f32 %v2636_v24  ;;  %v2631_v57 = vadd.f32 1.0, %v2630_v5  ;;  %v2498_v32 = vand.u32 2147483647, %v5603_v44 }
 0x2ea   : > { %v3692_v25 = vpop.eup %3691  ;;  %v2458_v0 = vmul.f32 0.6931472, %v3690_v13  ;;  %v2501_v59 = vadd.f32 1.0, %v5624_v46  ;;  %vm5660_vm4 = vcmp.lt.f32.partialorder %v2489_v42, 0.0004427343  ;;  %v2639_v48 = vmul.f32 -0.5, %v5615_v11 }
 0x2eb   : > { %v2602_v51 = vmul.f32 0.6931472, %v3692_v25  ;;  %vm5671_vm6 = vcmp.lt.f32.partialorder %v2633_v28, 0.0004427343  ;;  %v2504_v42 = vmul.f32 -0.5, %v5624_v46 }
 0x2ec   : > { %v3694_v13 = vpop.eup %3693  ;;  %v2464_v58 = vsel %vm5599_vm8, %v2461_v6, %v2458_v0  ;;  %vm2332_vm8 = vcmp.gt.f32.partialorder %v5528_v16, 20.0 }
 0x2ed   : > { %v3696_v54 = vpop.eup %3695  ;;  %v2744_v31 = vsel %vm2328_vm9, %v5498_v14, %v2464_v58  ;;  %v2608_v38 = vsel %vm5606_vm10, %v2605_v34, %v2602_v51  ;;  %v2467_v56 = vmul.f32 0.6931472, %v3694_v13  ;;  %v2496_v34 = vadd.f32 1.0, %v2495_v62 }
 0x2ee   : > { %v5665_v6 = vpop.eup %3697  ;;  %3713 = vtanh.f32 %v2744_v31  ;;  %v2760_v5 = vsel %vm2344_vm11, %v5501_v15, %v2608_v38  ;;  %v2611_v25 = vmul.f32 0.6931472, %v3696_v54  ;;  %v2640_v62 = vadd.f32 1.0, %v2639_v48 }
 0x2ef   : > { %v3700_v51 = vpop.eup %3699  ;;  %3715 = vtanh.f32 %v2760_v5  ;;  %v2473_v12 = vsel %vm5617_vm12, %v2470_v20, %v2467_v56  ;;  %v2632_v20 = vmul.f32 %v5594_v45, %v2631_v57  ;;  %v2497_v5 = vmul.f32 %v5603_v44, %v2496_v34 }
 0x2f0   : > { %v5679_v0 = vpop.eup %3701  ;;  %v2745_v13 = vsel %vm2329_vm13, %v5506_v17, %v2473_v12  ;;  %v2617_v28 = vsel %vm5627_vm15, %v2614_v26, %v2611_v25  ;;  %v2476_v54 = vmul.f32 0.6931472, %v3700_v51  ;;  %3717 = vlog2.f32 %v2501_v59 }
 0x2f1   : > { %v3704_v31 = vpop.eup %3703  ;;  %3719 = vtanh.f32 %v2745_v13  ;;  %v2761_v47 = vsel %vm2345_vm14, %v5509_v33, %v2617_v28  ;;  %v2645_v26 = vadd.f32 1.0, %v5665_v6  ;;  %vm5698_vm9 = vcmp.lt.f32.partialorder %v2498_v32, 0.0004427343 }
 0x2f2   : > { %3721 = vtanh.f32 %v2761_v47  ;;  %v2482_v38 = vsel %vm5632_vm0, %v2479_v41, %v2476_v54  ;;  %v2620_v56 = vmul.f32 0.6931472, %v3704_v31  ;;  %v3706_v19 = vpop.eup %3705  ;;  %vm2348_vm10 = vcmp.gt.f32.partialorder %v5531_v2, 20.0 }
 0x2f3   : > { %v2746_v59 = vsel %vm2330_vm1, %v5512_v4, %v2482_v38  ;;  %v2642_v45 = vand.u32 2147483647, %v5615_v11  ;;  %v3708_v27 = vpop.eup %3707  ;;  %v2485_v57 = vmul.f32 0.6931472, %v3706_v19  ;;  %v2505_v48 = vadd.f32 1.0, %v2504_v42 }
 0x2f4   : > { %3723 = vtanh.f32 %v2746_v59  ;;  %v2626_v41 = vsel %vm5642_vm2, %v2623_v35, %v2620_v56  ;;  %v2629_v44 = vmul.f32 0.6931472, %v3708_v27  ;;  %v2641_v32 = vmul.f32 %v5615_v11, %v2640_v62  ;;  %v3710_v12 = vpop.eup %3709 }
 0x2f5   : > { %v2762_v51 = vsel %vm2346_vm3, %v5515_v43, %v2626_v41  ;;  %3725 = vlog2.f32 %v2645_v26  ;;  %v2491_v34 = vsel %vm5660_vm4, %v5647_v50, %v2485_v57  ;;  %v2507_v13 = vand.u32 2147483647, %v5624_v46 }
 0x2f6   : > { %3727 = vtanh.f32 %v2762_v51  ;;  %v2510_v35 = vadd.f32 1.0, %v5679_v0  ;;  %v2747_v18 = vsel %vm2331_vm5, %v5522_v37, %v2491_v34  ;;  %v2635_v42 = vsel %vm5671_vm6, %v2632_v20, %v2629_v44  ;;  %v3712_v54 = vpop.eup %3711  ;;  %v2271_v44 = vpop.f32.mrf.mxu0 }
 0x2f7   : > { %v2494_v28 = vmul.f32 0.6931472, %v3710_v12  ;;  %vm5720_vm11 = vcmp.lt.f32.partialorder %v2642_v45, 0.0004427343  ;;  %3729 = vtanh.f32 %v2747_v18  ;;  %v2763_v50 = vsel %vm2347_vm7, %v5525_v52, %v2635_v42 }
 0x2f8   : > { %vm2333_vm12 = vcmp.gt.f32.partialorder %v5538_v53, 20.0  ;;  %v2506_v24 = vmul.f32 %v5624_v46, %v2505_v48  ;;  %v2648_v31 = vmul.f32 -0.5, %v5665_v6  ;;  %3731 = vtanh.f32 %v2763_v50 }
 0x2f9   : > { %v2500_v58 = vsel %vm5698_vm9, %v2497_v5, %v2494_v28  ;;  %v2638_v47 = vmul.f32 0.6931472, %v3712_v54  ;;  %v2367_v20 = vmin.f32 %v5574_v36, 20.0  ;;  %vm5736_vm13 = vcmp.lt.f32.partialorder %v2507_v13, 0.0004427343  ;;  %v2311_v13 = vpop.f32.mrf.mxu1 }
 0x2fa   : > { %v2748_v62 = vsel %vm2332_vm8, %v5528_v16, %v2500_v58  ;;  %v2651_v56 = vand.u32 2147483647, %v5665_v6  ;;  %3733 = vlog2.f32 %v2510_v35  ;;  %v2383_v59 = vmin.f32 %v5581_v22, 20.0 }
 0x2fb   : > { %v3714_v46 = vpop.eup %3713  ;;  %3735 = vtanh.f32 %v2748_v62  ;;  %v2644_v26 = vsel %vm5720_vm11, %v2641_v32, %v2638_v47  ;;  %v2406_v19 = vmul.f32 1.442695, %v2367_v20  ;;  %v2513_v27 = vmul.f32 -0.5, %v5679_v0 }
 0x2fc   : > { %v3716_v5 = vpop.eup %3715  ;;  %v2808_v25 = vmul.f32 %v3714_v46, %v5498_v14  ;;  %v2764_v45 = vsel %vm2348_vm10, %v5531_v2, %v2644_v26  ;;  %3737 = vpow2.f32 %v5578_v8  ;;  %vm2349_vm14 = vcmp.gt.f32.partialorder %v5541_v63, 20.0 }
 0x2fd   : > { %v3718_v41 = vpop.eup %3717  ;;  %3739 = vtanh.f32 %v2764_v45  ;;  %v2649_v57 = vadd.f32 1.0, %v2648_v31  ;;  %v2438_v48 = vmul.f32 1.442695, %v2383_v59  ;;  %v2368_v51 = vmin.f32 %v5584_v3, 20.0 }
 0x2fe   : > { %v3720_v32 = vpop.eup %3719  ;;  %v2824_v14 = vmul.f32 %v3716_v5, %v5501_v15  ;;  %v2503_v12 = vmul.f32 0.6931472, %v3718_v41  ;;  %vm5753_vm15 = vcmp.lt.f32.partialorder %v2651_v56, 0.0004427343  ;;  %3741 = vpow2.f32 %v2406_v19 }
 0x2ff   : > { %v3722_v8 = vpop.eup %3721  ;;  %v2888_v35 = vadd.f32 %v2856_v30, %v2808_v25  ;;  %v2809_v18 = vmul.f32 %v3720_v32, %v5506_v17  ;;  %3743 = vpow2.f32 %v2438_v48  ;;  %v2408_v42 = vmul.f32 1.442695, %v2368_v51 }
 0x300   : > { %v2825_v28 = vmul.f32 %v3722_v8, %v5509_v33  ;;  %v2509_v15 = vsel %vm5736_vm13, %v2506_v24, %v2503_v12  ;;  %v2384_v11 = vmin.f32 %v5589_v55, 20.0  ;;  %v5765_v54 = vadd.f32 %v2271_v44, %v5495_v21  ;;  %v2273_v44 = vpop.f32.mrf.mxu0 }
 0x301   : > { %v3724_v50 = vpop.eup %3723  ;;  %v2889_v31 = vadd.f32 %v2857_v9, %v2809_v18  ;;  %v2749_v17 = vsel %vm2333_vm12, %v5538_v53, %v2509_v15  ;;  %3745 = vpow2.f32 %v2408_v42  ;;  %v5773_v30 = vadd.f32 %v2311_v13, %v5495_v21  ;;  %v2842_v13 = vld [vmem:[%s4354_s23 + $0x10] sm:$0xff] }
 0x302   : > { %v3726_v33 = vpop.eup %3725  ;;  %v2904_v24 = vadd.f32 %v2872_v7, %v2824_v14  ;;  %v2905_v58 = vadd.f32 %v2873_v39, %v2825_v28  ;;  %3747 = vtanh.f32 %v2749_v17  ;;  %v2440_v47 = vmul.f32 1.442695, %v2384_v11 }
 0x303   : > { %v3728_v29 = vpop.eup %3727  ;;  %v3354_v9 = vpack.c.bf16 %v2889_v31, %v2888_v35  ;;  %v2647_v20 = vmul.f32 0.6931472, %v3726_v33  ;;  %v2650_v62 = vmul.f32 %v5665_v6, %v2649_v57  ;;  %v2369_v38 = vmin.f32 %v5765_v54, 20.0 }
 0x304   : > { %v3362_v56 = vpack.c.bf16 %v2905_v58, %v2904_v24  ;;  %v2810_v46 = vmul.f32 %v3724_v50, %v5512_v4  ;;  %v2514_v26 = vadd.f32 1.0, %v2513_v27  ;;  %3749 = vpow2.f32 %v2440_v47  ;;  %v3730_v19 = vpop.eup %3729  ;;  %v2850_v50 = vld [vmem:[%s4354_s23 + $0x50] sm:$0xff] }
 0x305   : > { %3016 = vst [vmem:[%s4356_s18] sm:$0xff] %v3354_v9  ;;  %v2826_v49 = vmul.f32 %v3728_v29, %v5515_v43  ;;  %v2653_v7 = vsel %vm5753_vm15, %v2650_v62, %v2647_v20  ;;  %v2410_v39 = vmul.f32 1.442695, %v2369_v38  ;;  %v2385_v59 = vmin.f32 %v5773_v30, 20.0  ;;  %v3732_v5 = vpop.eup %3731  ;;  %v2313_v9 = vpop.f32.mrf.mxu1 }
 0x306   : > { %3024 = vst [vmem:[%s4356_s18 + $0x40] sm:$0xff] %v3362_v56  ;;  %v2811_v6 = vmul.f32 %v3730_v19, %v5522_v37  ;;  %v2765_v4 = vsel %vm2349_vm14, %v5541_v63, %v2653_v7  ;;  %v2516_v25 = vand.u32 2147483647, %v5679_v0  ;;  %v2827_v43 = vmul.f32 %v3732_v5, %v5525_v52 }
 0x307   : > { %v3734_v45 = vpop.eup %3733  ;;  %3751 = vtanh.f32 %v2765_v4  ;;  %v2442_v27 = vmul.f32 1.442695, %v2385_v59  ;;  %v2890_v57 = vadd.f32 %v2858_v23, %v2810_v46  ;;  %v6327_v48 = vunpack.c.h.bf16 %v5557_v1 }
 0x308   : > { %v3736_v41 = vpop.eup %3735  ;;  %v2512_v37 = vmul.f32 0.6931472, %v3734_v45  ;;  %3753 = vpow2.f32 %v2410_v39  ;;  %v6328_v14 = vunpack.c.l.bf16 %v5560_v10  ;;  %v6329_v52 = vunpack.c.h.bf16 %v5560_v10 }
 0x309   : > { %v2891_v51 = vadd.f32 %v6327_v48, %v2811_v6  ;;  %v5798_v32 = vpop.eup %3737  ;;  %v2515_v23 = vmul.f32 %v5679_v0, %v2514_v26  ;;  %3755 = vpow2.f32 %v2442_v27  ;;  %vm5806_vm0 = vcmp.lt.f32.partialorder %v2516_v25, 0.0004427343 }
 0x30a   : > { %v2906_v12 = vadd.f32 %v6328_v14, %v2826_v49  ;;  %v2907_v34 = vadd.f32 %v6329_v52, %v2827_v43  ;;  %v3740_v1 = vpop.eup %3739  ;;  %v2654_v18 = vadd.f32 1.0, %v5798_v32  ;;  %v5816_v15 = vadd.f32 %v2273_v44, %v5493_v40 }
 0x30b   : > { %v3355_v8 = vpack.c.bf16 %v2891_v51, %v2890_v57  ;;  %v5811_v42 = vpop.eup %3741  ;;  %v2518_v10 = vsel %vm5806_vm0, %v2515_v23, %v2512_v37  ;;  %v2860_v0 = vunpack.c.l.bf16 %v2842_v13  ;;  %v2861_v17 = vunpack.c.h.bf16 %v2842_v13 }
 0x30c   : > { %v3363_v28 = vpack.c.bf16 %v2907_v34, %v2906_v12  ;;  %v5818_v11 = vpop.eup %3743  ;;  %v2519_v31 = vadd.f32 1.0, %v5811_v42  ;;  %vm2334_vm1 = vcmp.gt.f32.partialorder %v5544_v61, 20.0  ;;  %3757 = vlog2.f32 %v2654_v18 }
 0x30d   : > { %3017 = vst [vmem:[%s4356_s18 + $0x8] sm:$0xff] %v3355_v8  ;;  %v2657_v33 = vmul.f32 -0.5, %v5798_v32  ;;  %v2812_v58 = vmul.f32 %v3736_v41, %v5528_v16  ;;  %v2750_v47 = vsel %vm2334_vm1, %v5544_v61, %v2518_v10  ;;  %v2663_v29 = vadd.f32 1.0, %v5818_v11  ;;  %v2275_v8 = vpop.f32.mrf.mxu0 }
 0x30e   : > { %3025 = vst [vmem:[%s4356_s18 + $0x48] sm:$0xff] %v3363_v28  ;;  %v5826_v24 = vpop.eup %3745  ;;  %3759 = vlog2.f32 %v2519_v31  ;;  %v2828_v62 = vmul.f32 %v3740_v1, %v5531_v2  ;;  %v2876_v38 = vunpack.c.l.bf16 %v2850_v50  ;;  %v2877_v56 = vunpack.c.h.bf16 %v2850_v50 }
 0x30f   : > { %v3748_v20 = vpop.eup %3747  ;;  %v2370_v46 = vmin.f32 %v5816_v15, 20.0  ;;  %v2522_v19 = vmul.f32 -0.5, %v5811_v42  ;;  %3761 = vlog2.f32 %v2663_v29  ;;  %v2528_v16 = vadd.f32 1.0, %v5826_v24 }
 0x310   : > { %v2813_v26 = vmul.f32 %v3748_v20, %v5538_v53  ;;  %3763 = vtanh.f32 %v2750_v47  ;;  %v2658_v7 = vadd.f32 1.0, %v2657_v33  ;;  %v2666_v39 = vmul.f32 -0.5, %v5818_v11  ;;  %v2315_v47 = vpop.f32.mrf.mxu1 }
 0x311   : > { %v5836_v49 = vpop.eup %3749  ;;  %v5840_v59 = vadd.f32 %v2313_v9, %v5493_v40  ;;  %v2892_v2 = vadd.f32 %v2860_v0, %v2812_v58  ;;  %3765 = vlog2.f32 %v2528_v16  ;;  %v2908_v53 = vadd.f32 %v2876_v38, %v2828_v62  ;;  %v2851_v62 = vld [vmem:[%s4354_s23 + $0x58] sm:$0xff] }
 0x312   : > { %v2893_v5 = vadd.f32 %v2861_v17, %v2813_v26  ;;  %v2672_v6 = vadd.f32 1.0, %v5836_v49  ;;  %v2660_v4 = vand.u32 2147483647, %v5798_v32  ;;  %v2525_v25 = vand.u32 2147483647, %v5811_v42 }
 0x313   : > { %v2531_v45 = vmul.f32 -0.5, %v5826_v24  ;;  %v2523_v41 = vadd.f32 1.0, %v2522_v19  ;;  %v2412_v57 = vmul.f32 1.442695, %v2370_v46  ;;  %vm2350_vm2 = vcmp.gt.f32.partialorder %v5554_v60, 20.0 }
 0x314   : > { %v3752_v43 = vpop.eup %3751  ;;  %v3356_v27 = vpack.c.bf16 %v2893_v5, %v2892_v2  ;;  %3767 = vlog2.f32 %v2672_v6  ;;  %v2659_v37 = vmul.f32 %v5798_v32, %v2658_v7  ;;  %v2667_v44 = vadd.f32 1.0, %v2666_v39  ;;  %v2279_v39 = vpop.f32.mrf.mxu0 }
 0x315   : > { %v5846_v48 = vpop.eup %3753  ;;  %v2829_v51 = vmul.f32 %v3752_v43, %v5541_v63  ;;  %v2669_v14 = vand.u32 2147483647, %v5818_v11  ;;  %vm2335_vm3 = vcmp.gt.f32.partialorder %v5574_v36, 20.0  ;;  %v2534_v52 = vand.u32 2147483647, %v5826_v24 }
 0x316   : > { %v5852_v12 = vpop.eup %3755  ;;  %3018 = vst [vmem:[%s4356_s18 + $0x10] sm:$0xff] %v3356_v27  ;;  %v2675_v34 = vmul.f32 -0.5, %v5836_v49  ;;  %v2537_v13 = vadd.f32 1.0, %v5846_v48  ;;  %3769 = vpow2.f32 %v2412_v57  ;;  %v2532_v23 = vadd.f32 1.0, %v2531_v45 }
 0x317   : > { %v2909_v63 = vadd.f32 %v2877_v56, %v2829_v51  ;;  %v2678_v1 = vand.u32 2147483647, %v5836_v49  ;;  %v2681_v32 = vadd.f32 1.0, %v5852_v12  ;;  %vm5861_vm4 = vcmp.lt.f32.partialorder %v2660_v4, 0.0004427343 }
 0x318   : > { %v2524_v18 = vmul.f32 %v5811_v42, %v2523_v41  ;;  %vm5866_vm5 = vcmp.lt.f32.partialorder %v2525_v25, 0.0004427343  ;;  %vm2351_vm6 = vcmp.gt.f32.partialorder %v5581_v22, 20.0  ;;  %3771 = vlog2.f32 %v2537_v13 }
 0x319   : > { %v3364_v10 = vpack.c.bf16 %v2909_v63, %v2908_v53  ;;  %vm5871_vm7 = vcmp.lt.f32.partialorder %v2669_v14, 0.0004427343  ;;  %3773 = vlog2.f32 %v2681_v32  ;;  %v2386_v50 = vmin.f32 %v5840_v59, 20.0  ;;  %v3758_v31 = vpop.eup %3757 }
 0x31a   : > { %v2668_v17 = vmul.f32 %v5818_v11, %v2667_v44  ;;  %vm2336_vm8 = vcmp.gt.f32.partialorder %v5584_v3, 20.0  ;;  %vm5878_vm9 = vcmp.lt.f32.partialorder %v2534_v52, 0.0004427343  ;;  %v2676_v33 = vadd.f32 1.0, %v2675_v34 }
 0x31b   : > { %v5883_v58 = vadd.f32 %v2275_v8, %v5495_v21  ;;  %v3760_v29 = vpop.eup %3759  ;;  %3026 = vst [vmem:[%s4356_s18 + $0x50] sm:$0xff] %v3364_v10  ;;  %v2656_v9 = vmul.f32 0.6931472, %v3758_v31  ;;  %v2533_v20 = vmul.f32 %v5826_v24, %v2532_v23  ;;  %vm5887_vm10 = vcmp.lt.f32.partialorder %v2678_v1, 0.0004427343 }
 0x31c   : > { %v2444_v11 = vmul.f32 1.442695, %v2386_v50  ;;  %v2521_v38 = vmul.f32 0.6931472, %v3760_v29  ;;  %v2540_v56 = vmul.f32 -0.5, %v5846_v48  ;;  %v3762_v19 = vpop.eup %3761  ;;  %v2684_v7 = vmul.f32 -0.5, %v5852_v12 }
 0x31d   : > { %v2543_v46 = vand.u32 2147483647, %v5846_v48  ;;  %v2371_v26 = vmin.f32 %v5883_v58, 20.0  ;;  %v2662_v16 = vsel %vm5861_vm4, %v2659_v37, %v2656_v9  ;;  %v5898_v24 = vadd.f32 %v2315_v47, %v5495_v21  ;;  %v5900_v2 = vpop.eup %3763  ;;  %v2319_v37 = vpop.f32.mrf.mxu1  ;;  %v2843_v29 = vld [vmem:[%s4354_s23 + $0x18] sm:$0xff] }
 0x31e   : > { %3775 = vpow2.f32 %v2444_v11  ;;  %v2766_v5 = vsel %vm2350_vm2, %v5554_v60, %v2662_v16  ;;  %v2527_v6 = vsel %vm5866_vm5, %v2524_v18, %v2521_v38  ;;  %v2665_v53 = vmul.f32 0.6931472, %v3762_v19  ;;  %v3766_v25 = vpop.eup %3765  ;;  %v2281_v47 = vpop.f32.mrf.mxu0  ;;  %v5953_v16 = vld [vmem:[%s4354_s23 + $0x20] sm:$0xff] }
 0x31f   : > { %v2414_v4 = vmul.f32 1.442695, %v2371_v26  ;;  %3777 = vtanh.f32 %v2766_v5  ;;  %v2751_v45 = vsel %vm2335_vm3, %v5574_v36, %v2527_v6  ;;  %v2677_v43 = vmul.f32 %v5836_v49, %v2676_v33  ;;  %v2321_v26 = vpop.f32.mrf.mxu1  ;;  %v5959_v6 = vld [vmem:[%s4354_s23 + $0x60] sm:$0xff] }
 0x320   : > { %v2387_v27 = vmin.f32 %v5898_v24, 20.0  ;;  %3779 = vtanh.f32 %v2751_v45  ;;  %v2671_v41 = vsel %vm5871_vm7, %v2668_v17, %v2665_v53  ;;  %v2530_v57 = vmul.f32 0.6931472, %v3766_v25 }
 0x321   : > { %v5915_v51 = vadd.f32 %v2279_v39, %v5493_v40  ;;  %v3768_v44 = vpop.eup %3767  ;;  %v2767_v14 = vsel %vm2351_vm6, %v5581_v22, %v2671_v41  ;;  %v2541_v52 = vadd.f32 1.0, %v2540_v56  ;;  %3781 = vpow2.f32 %v2414_v4 }
 0x322   : > { %v2446_v34 = vmul.f32 1.442695, %v2387_v27  ;;  %3783 = vtanh.f32 %v2767_v14  ;;  %v2536_v49 = vsel %vm5878_vm9, %v2533_v20, %v2530_v57  ;;  %v2674_v13 = vmul.f32 0.6931472, %v3768_v44 }
 0x323   : > { %v2685_v63 = vadd.f32 1.0, %v2684_v7  ;;  %v5922_v23 = vpop.eup %3769  ;;  %v2752_v1 = vsel %vm2336_vm8, %v5584_v3, %v2536_v49  ;;  %v2372_v32 = vmin.f32 %v5915_v51, 20.0  ;;  %v5929_v8 = vadd.f32 %v2319_v37, %v5493_v40 }
 0x324   : > { %3785 = vpow2.f32 %v2446_v34  ;;  %vm2352_vm11 = vcmp.gt.f32.partialorder %v5589_v55, 20.0  ;;  %v2680_v35 = vsel %vm5887_vm10, %v2677_v43, %v2674_v13  ;;  %v2687_v18 = vand.u32 2147483647, %v5852_v12 }
 0x325   : > { %v2546_v28 = vadd.f32 1.0, %v5922_v23  ;;  %v3772_v10 = vpop.eup %3771  ;;  %3787 = vtanh.f32 %v2752_v1  ;;  %v2768_v0 = vsel %vm2352_vm11, %v5589_v55, %v2680_v35  ;;  %vm2337_vm12 = vcmp.gt.f32.partialorder %v5765_v54, 20.0 }
 0x326   : > { %v2416_v50 = vmul.f32 1.442695, %v2372_v32  ;;  %v3774_v31 = vpop.eup %3773  ;;  %3789 = vtanh.f32 %v2768_v0  ;;  %v2539_v17 = vmul.f32 0.6931472, %v3772_v10  ;;  %v2542_v42 = vmul.f32 %v5846_v48, %v2541_v52 }
 0x327   : > { %v2388_v33 = vmin.f32 %v5929_v8, 20.0  ;;  %vm2544_vm13 = vcmp.lt.f32.partialorder %v2543_v46, 0.0004427343  ;;  %v2683_v9 = vmul.f32 0.6931472, %v3774_v31  ;;  %v2686_v20 = vmul.f32 %v5852_v12, %v2685_v63 }
 0x328   : > { %3791 = vlog2.f32 %v2546_v28  ;;  %v2545_v11 = vsel %vm2544_vm13, %v2542_v42, %v2539_v17  ;;  %vm2688_vm14 = vcmp.lt.f32.partialorder %v2687_v18, 0.0004427343  ;;  %vm2353_vm15 = vcmp.gt.f32.partialorder %v5773_v30, 20.0 }
 0x329   : > { %3793 = vpow2.f32 %v2416_v50  ;;  %v2448_v38 = vmul.f32 1.442695, %v2388_v33  ;;  %v2753_v48 = vsel %vm2337_vm12, %v5765_v54, %v2545_v11  ;;  %v2689_v56 = vsel %vm2688_vm14, %v2686_v20, %v2683_v9 }
 0x32a   : > { %v5948_v46 = vadd.f32 %v2281_v47, %v5495_v21  ;;  %v2862_v12 = vunpack.c.l.bf16 %v2843_v29  ;;  %3795 = vtanh.f32 %v2753_v48  ;;  %v2769_v7 = vsel %vm2353_vm15, %v5773_v30, %v2689_v56 }
 0x32b   : > { %v5950_v19 = vpop.eup %3775  ;;  %v2814_v39 = vmul.f32 %v5900_v2, %v5544_v61  ;;  %v2878_v5 = vunpack.c.l.bf16 %v2851_v62  ;;  %3797 = vtanh.f32 %v2769_v7  ;;  %v2863_v25 = vunpack.c.h.bf16 %v2843_v29 }
 0x32c   : > { %v2690_v53 = vadd.f32 1.0, %v5950_v19  ;;  %v3778_v4 = vpop.eup %3777  ;;  %3799 = vpow2.f32 %v2448_v38  ;;  %v2373_v45 = vmin.f32 %v5948_v46, 20.0  ;;  %v5964_v43 = vadd.f32 %v2321_v26, %v5495_v21 }
 0x32d   : > { %v3780_v27 = vpop.eup %3779  ;;  %v2879_v41 = vunpack.c.h.bf16 %v2851_v62  ;;  %v2864_v57 = vunpack.c.l.bf16 %v5953_v16  ;;  %v2549_v61 = vmul.f32 -0.5, %v5922_v23  ;;  %v2830_v37 = vmul.f32 %v3778_v4, %v5554_v60 }
 0x32e   : > { %3801 = vlog2.f32 %v2690_v53  ;;  %v5968_v2 = vpop.eup %3781  ;;  %v2815_v44 = vmul.f32 %v3780_v27, %v5574_v36  ;;  %v2880_v14 = vunpack.c.l.bf16 %v5959_v6  ;;  %v2418_v52 = vmul.f32 1.442695, %v2373_v45  ;;  %v2283_v36 = vpop.f32.mrf.mxu0 }
 0x32f   : > { %v3784_v34 = vpop.eup %3783  ;;  %v2894_v49 = vadd.f32 %v2862_v12, %v2814_v39  ;;  %v2865_v13 = vunpack.c.h.bf16 %v5953_v16  ;;  %v2693_v63 = vmul.f32 -0.5, %v5950_v19  ;;  %v2555_v1 = vadd.f32 1.0, %v5968_v2 }
 0x330   : > { %v2895_v35 = vadd.f32 %v2863_v25, %v2815_v44  ;;  %v2831_v18 = vmul.f32 %v3784_v34, %v5581_v22  ;;  %3803 = vpow2.f32 %v2418_v52  ;;  %v2389_v60 = vmin.f32 %v5964_v43, 20.0 }
 0x331   : > { %v5976_v32 = vpop.eup %3785  ;;  %v2550_v28 = vadd.f32 1.0, %v2549_v61  ;;  %v2552_v10 = vand.u32 2147483647, %v5922_v23  ;;  %3805 = vlog2.f32 %v2555_v1  ;;  %v2910_v31 = vadd.f32 %v2878_v5, %v2830_v37 }
 0x332   : > { %v2699_v0 = vadd.f32 1.0, %v5976_v32  ;;  %v3788_v50 = vpop.eup %3787  ;;  %v3357_v17 = vpack.c.bf16 %v2895_v35, %v2894_v49  ;;  %v2911_v42 = vadd.f32 %v2879_v41, %v2831_v18  ;;  %v2696_v33 = vand.u32 2147483647, %v5950_v19 }
 0x333   : > { %v3790_v47 = vpop.eup %3789  ;;  %v2881_v22 = vunpack.c.h.bf16 %v5959_v6  ;;  %v2694_v29 = vadd.f32 1.0, %v2693_v63  ;;  %v5985_v9 = vadd.f32 %v2283_v36, %v5493_v40  ;;  %vm2338_vm0 = vcmp.gt.f32.partialorder %v5816_v15, 20.0 }
 0x334   : > { %3807 = vlog2.f32 %v2699_v0  ;;  %3019 = vst [vmem:[%s4356_s18 + $0x18] sm:$0xff] %v3357_v17  ;;  %v3365_v62 = vpack.c.bf16 %v2911_v42, %v2910_v31  ;;  %v2558_v11 = vmul.f32 -0.5, %v5968_v2  ;;  %v2450_v38 = vmul.f32 1.442695, %v2389_v60 }
 0x335   : > { %v3792_v20 = vpop.eup %3791  ;;  %vm5992_vm1 = vcmp.lt.f32.partialorder %v2552_v10, 0.0004427343  ;;  %vm2354_vm2 = vcmp.gt.f32.partialorder %v5840_v59, 20.0  ;;  %v2702_v12 = vmul.f32 -0.5, %v5976_v32  ;;  %v2816_v7 = vmul.f32 %v3788_v50, %v5584_v3  ;;  %v2285_v10 = vpop.f32.mrf.mxu0 }
 0x336   : > { %v5990_v48 = vpop.eup %3793  ;;  %v2548_v56 = vmul.f32 0.6931472, %v3792_v20  ;;  %3027 = vst [vmem:[%s4356_s18 + $0x58] sm:$0xff] %v3365_v62  ;;  %v2551_v39 = vmul.f32 %v5922_v23, %v2550_v28  ;;  %vm6001_vm3 = vcmp.lt.f32.partialorder %v2696_v33, 0.0004427343  ;;  %v2832_v25 = vmul.f32 %v3790_v47, %v5589_v55 }
 0x337   : > { %v2564_v53 = vadd.f32 1.0, %v5990_v48  ;;  %v3796_v4 = vpop.eup %3795  ;;  %v2695_v45 = vmul.f32 %v5950_v19, %v2694_v29  ;;  %3809 = vpow2.f32 %v2450_v38  ;;  %v2374_v27 = vmin.f32 %v5985_v9, 20.0  ;;  %v2323_v19 = vpop.f32.mrf.mxu1 }
 0x338   : > { %v3798_v41 = vpop.eup %3797  ;;  %v2817_v61 = vmul.f32 %v3796_v4, %v5765_v54  ;;  %v2559_v3 = vadd.f32 1.0, %v2558_v11  ;;  %v2561_v23 = vand.u32 2147483647, %v5968_v2  ;;  %v2554_v52 = vsel %vm5992_vm1, %v2551_v39, %v2548_v56 }
 0x339   : > { %3811 = vlog2.f32 %v2564_v53  ;;  %v6011_v37 = vpop.eup %3799  ;;  %v2833_v44 = vmul.f32 %v3798_v41, %v5773_v30  ;;  %v2703_v55 = vadd.f32 1.0, %v2702_v12  ;;  %v2420_v34 = vmul.f32 1.442695, %v2374_v27  ;;  %v2325_v62 = vpop.f32.mrf.mxu1 }
 0x33a   : > { %v2896_v63 = vadd.f32 %v2864_v57, %v2816_v7  ;;  %v2897_v1 = vadd.f32 %v2865_v13, %v2817_v61  ;;  %v2705_v54 = vand.u32 2147483647, %v5976_v32  ;;  %v2708_v35 = vadd.f32 1.0, %v6011_v37 }
 0x33b   : > { %v3802_v49 = vpop.eup %3801  ;;  %v2912_v18 = vadd.f32 %v2880_v14, %v2832_v25  ;;  %v2913_v30 = vadd.f32 %v2881_v22, %v2833_v44  ;;  %3813 = vpow2.f32 %v2420_v34  ;;  %v2754_v28 = vsel %vm2338_vm0, %v5816_v15, %v2554_v52 }
 0x33c   : > { %v2692_v60 = vmul.f32 0.6931472, %v3802_v49  ;;  %v3358_v36 = vpack.c.bf16 %v2897_v1, %v2896_v63  ;;  %3815 = vlog2.f32 %v2708_v35  ;;  %v6026_v16 = vadd.f32 %v2323_v19, %v5493_v40  ;;  %v2845_v63 = vld [vmem:[%s4354_s23 + $0x28] sm:$0xff] }
 0x33d   : > { %v6028_v57 = vpop.eup %3803  ;;  %v3366_v13 = vpack.c.bf16 %v2913_v30, %v2912_v18  ;;  %vm2339_vm4 = vcmp.gt.f32.partialorder %v5883_v58, 20.0  ;;  %v2567_v14 = vmul.f32 -0.5, %v5990_v48  ;;  %vm6038_vm5 = vcmp.lt.f32.partialorder %v2561_v23, 0.0004427343  ;;  %v2853_v35 = vld [vmem:[%s4354_s23 + $0x68] sm:$0xff] }
 0x33e   : > { %v2698_v6 = vsel %vm6001_vm3, %v2695_v45, %v2692_v60  ;;  %v3806_v0 = vpop.eup %3805  ;;  %3020 = vst [vmem:[%s4356_s18 + $0x20] sm:$0xff] %v3358_v36  ;;  %vm2355_vm6 = vcmp.gt.f32.partialorder %v5898_v24, 20.0  ;;  %v2573_v31 = vadd.f32 1.0, %v6028_v57  ;;  %3817 = vtanh.f32 %v2754_v28 }
 0x33f   : > { %v2770_v50 = vsel %vm2354_vm2, %v5840_v59, %v2698_v6  ;;  %3028 = vst [vmem:[%s4356_s18 + $0x60] sm:$0xff] %v3366_v13  ;;  %v2557_v17 = vmul.f32 0.6931472, %v3806_v0  ;;  %v2560_v42 = vmul.f32 %v5968_v2, %v2559_v3  ;;  %v2704_v33 = vmul.f32 %v5976_v32, %v2703_v55 }
 0x340   : > { %vm6047_vm7 = vcmp.lt.f32.partialorder %v2705_v54, 0.0004427343  ;;  %3819 = vlog2.f32 %v2573_v31  ;;  %v2390_v29 = vmin.f32 %v6026_v16, 20.0  ;;  %v6053_v20 = vadd.f32 %v2285_v10, %v5495_v21 }
 0x341   : > { %v3808_v47 = vpop.eup %3807  ;;  %3821 = vtanh.f32 %v2770_v50  ;;  %v2563_v11 = vsel %vm6038_vm5, %v2560_v42, %v2557_v17  ;;  %v2568_v2 = vadd.f32 1.0, %v2567_v14  ;;  %v2570_v56 = vand.u32 2147483647, %v5990_v48 }
 0x342   : > { %v2701_v38 = vmul.f32 0.6931472, %v3808_v47  ;;  %v2755_v32 = vsel %vm2339_vm4, %v5883_v58, %v2563_v11  ;;  %v2711_v26 = vmul.f32 -0.5, %v6011_v37  ;;  %v2452_v12 = vmul.f32 1.442695, %v2390_v29 }
 0x343   : > { %3823 = vtanh.f32 %v2755_v32  ;;  %v2375_v39 = vmin.f32 %v6053_v20, 20.0  ;;  %v6066_v5 = vadd.f32 %v2325_v62, %v5495_v21  ;;  %v2569_v45 = vmul.f32 %v5990_v48, %v2568_v2 }
 0x344   : > { %v2707_v7 = vsel %vm6047_vm7, %v2704_v33, %v2701_v38  ;;  %v6068_v53 = vpop.eup %3809  ;;  %3825 = vpow2.f32 %v2452_v12  ;;  %v2576_v61 = vmul.f32 -0.5, %v6028_v57  ;;  %vm6077_vm8 = vcmp.lt.f32.partialorder %v2570_v56, 0.0004427343 }
 0x345   : > { %v2771_v4 = vsel %vm2355_vm6, %v5898_v24, %v2707_v7  ;;  %v2717_v27 = vadd.f32 1.0, %v6068_v53  ;;  %v2422_v3 = vmul.f32 1.442695, %v2375_v39  ;;  %v2391_v21 = vmin.f32 %v6066_v5, 20.0 }
 0x346   : > { %v3812_v25 = vpop.eup %3811  ;;  %3827 = vtanh.f32 %v2771_v4  ;;  %v2712_v44 = vadd.f32 1.0, %v2711_v26  ;;  %v2714_v55 = vand.u32 2147483647, %v6011_v37  ;;  %vm2340_vm9 = vcmp.gt.f32.partialorder %v5915_v51, 20.0 }
 0x347   : > { %v2566_v41 = vmul.f32 0.6931472, %v3812_v25  ;;  %3829 = vlog2.f32 %v2717_v27  ;;  %v2454_v34 = vmul.f32 1.442695, %v2391_v21  ;;  %v2577_v54 = vadd.f32 1.0, %v2576_v61 }
 0x348   : > { %v6081_v52 = vpop.eup %3813  ;;  %3831 = vpow2.f32 %v2422_v3  ;;  %v2713_v30 = vmul.f32 %v6011_v37, %v2712_v44  ;;  %v2579_v60 = vand.u32 2147483647, %v6028_v57  ;;  %vm6093_vm10 = vcmp.lt.f32.partialorder %v2714_v55, 0.0004427343 }
 0x349   : > { %v2572_v48 = vsel %vm6077_vm8, %v2569_v45, %v2566_v41  ;;  %v3816_v19 = vpop.eup %3815  ;;  %v2582_v49 = vadd.f32 1.0, %v6081_v52  ;;  %v2720_v13 = vmul.f32 -0.5, %v6068_v53  ;;  %v2866_v14 = vunpack.c.l.bf16 %v2845_v63 }
 0x34a   : > { %v2710_v1 = vmul.f32 0.6931472, %v3816_v19  ;;  %v2756_v18 = vsel %vm2340_vm9, %v5915_v51, %v2572_v48  ;;  %v2882_v50 = vunpack.c.l.bf16 %v2853_v35  ;;  %v2578_v40 = vmul.f32 %v6028_v57, %v2577_v54 }
 0x34b   : > { %3833 = vlog2.f32 %v2582_v49  ;;  %v3818_v36 = vpop.eup %3817  ;;  %v2867_v17 = vunpack.c.h.bf16 %v2845_v63  ;;  %vm2356_vm11 = vcmp.gt.f32.partialorder %v5929_v8, 20.0  ;;  %vm2580_vm12 = vcmp.lt.f32.partialorder %v2579_v60, 0.0004427343 }
 0x34c   : > { %3835 = vpow2.f32 %v2454_v34  ;;  %v2716_v10 = vsel %vm6093_vm10, %v2713_v30, %v2710_v1  ;;  %v2818_v31 = vmul.f32 %v3818_v36, %v5816_v15  ;;  %vm2341_vm13 = vcmp.gt.f32.partialorder %v5948_v46, 20.0  ;;  %v2846_v34 = vld [vmem:[%s4354_s23 + $0x30] sm:$0xff] }
 0x34d   : > { %v3820_v6 = vpop.eup %3819  ;;  %3837 = vtanh.f32 %v2756_v18  ;;  %v2772_v33 = vsel %vm2356_vm11, %v5929_v8, %v2716_v10  ;;  %v2721_v22 = vadd.f32 1.0, %v2720_v13  ;;  %v2883_v57 = vunpack.c.h.bf16 %v2853_v35  ;;  %v2854_v10 = vld [vmem:[%s4354_s23 + $0x70] sm:$0xff] }
 0x34e   : > { %v3822_v0 = vpop.eup %3821  ;;  %v2575_v37 = vmul.f32 0.6931472, %v3820_v6  ;;  %v2723_v2 = vand.u32 2147483647, %v6068_v53  ;;  %v2898_v56 = vadd.f32 %v2866_v14, %v2818_v31  ;;  %v2585_v27 = vmul.f32 -0.5, %v6081_v52 }
 0x34f   : > { %v2834_v62 = vmul.f32 %v3822_v0, %v5840_v59  ;;  %v2722_v59 = vmul.f32 %v6068_v53, %v2721_v22  ;;  %vm2357_vm15 = vcmp.gt.f32.partialorder %v5964_v43, 20.0  ;;  %v2588_v19 = vand.u32 2147483647, %v6081_v52 }
 0x350   : > { %v3824_v42 = vpop.eup %3823  ;;  %v2581_v47 = vsel %vm2580_vm12, %v2578_v40, %v2575_v37  ;;  %vm2724_vm14 = vcmp.lt.f32.partialorder %v2723_v2, 0.0004427343  ;;  %v2586_v44 = vadd.f32 1.0, %v2585_v27  ;;  %v2868_v35 = vunpack.c.l.bf16 %v2846_v34 }
 0x351   : > { %v6105_v29 = vpop.eup %3825  ;;  %v2819_v11 = vmul.f32 %v3824_v42, %v5883_v58  ;;  %v2757_v15 = vsel %vm2341_vm13, %v5948_v46, %v2581_v47  ;;  %v2914_v39 = vadd.f32 %v2882_v50, %v2834_v62  ;;  %v2869_v18 = vunpack.c.h.bf16 %v2846_v34 }
 0x352   : > { %3839 = vtanh.f32 %v2757_v15  ;;  %v2726_v32 = vadd.f32 1.0, %v6105_v29  ;;  %v2729_v23 = vmul.f32 -0.5, %v6105_v29  ;;  %v2587_v30 = vmul.f32 %v6081_v52, %v2586_v44 }
 0x353   : > { %v3828_v38 = vpop.eup %3827  ;;  %v2899_v26 = vadd.f32 %v2867_v17, %v2819_v11  ;;  %3841 = vtanh.f32 %v2772_v33  ;;  %vm2589_vm0 = vcmp.lt.f32.partialorder %v2588_v19, 0.0004427343  ;;  %v2732_v36 = vand.u32 2147483647, %v6105_v29 }
 0x354   : > { %v2835_v12 = vmul.f32 %v3828_v38, %v5898_v24  ;;  %v3830_v7 = vpop.eup %3829  ;;  %3843 = vlog2.f32 %v2726_v32  ;;  %v2730_v63 = vadd.f32 1.0, %v2729_v23  ;;  %vm2342_vm1 = vcmp.gt.f32.partialorder %v5985_v9, 20.0 }
 0x355   : > { %v6114_v58 = vpop.eup %3831  ;;  %v3359_v4 = vpack.c.bf16 %v2899_v26, %v2898_v56  ;;  %v2719_v45 = vmul.f32 0.6931472, %v3830_v7  ;;  %vm2733_vm2 = vcmp.lt.f32.partialorder %v2732_v36, 0.0004427343  ;;  %v2885_v62 = vunpack.c.h.bf16 %v2854_v10 }
 0x356   : > { %v2915_v25 = vadd.f32 %v2883_v57, %v2835_v12  ;;  %v2591_v41 = vadd.f32 1.0, %v6114_v58  ;;  %v2594_v1 = vmul.f32 -0.5, %v6114_v58  ;;  %v2731_v0 = vmul.f32 %v6105_v29, %v2730_v63 }
 0x357   : > { %3021 = vst [vmem:[%s4356_s18 + $0x28] sm:$0xff] %v3359_v4  ;;  %v2725_v61 = vsel %vm2724_vm14, %v2722_v59, %v2719_v45  ;;  %v2597_v17 = vand.u32 2147483647, %v6114_v58  ;;  %vm2358_vm3 = vcmp.gt.f32.partialorder %v6026_v16, 20.0  ;;  %vm2343_vm5 = vcmp.gt.f32.partialorder %v6053_v20, 20.0  ;;  %v2847_v45 = vld [vmem:[%s4354_s23 + $0x38] sm:$0xff] }
 0x358   : > { %v3367_v24 = vpack.c.bf16 %v2915_v25, %v2914_v39  ;;  %v3834_v53 = vpop.eup %3833  ;;  %v2773_v3 = vsel %vm2357_vm15, %v5964_v43, %v2725_v61  ;;  %3845 = vlog2.f32 %v2591_v41  ;;  %v2595_v50 = vadd.f32 1.0, %v2594_v1  ;;  %v2855_v61 = vld [vmem:[%s4354_s23 + $0x78] sm:$0xff]  ;;  %s4001_s23 = scalar_lea.vmem %s4000_s0, 4096 }
 0x359   : > { %v6121_v21 = vpop.eup %3835  ;;  %3847 = vtanh.f32 %v2773_v3  ;;  %v2584_v49 = vmul.f32 0.6931472, %v3834_v53  ;;  %vm2598_vm4 = vcmp.lt.f32.partialorder %v2597_v17, 0.0004427343  ;;  %vm2359_vm7 = vcmp.gt.f32.partialorder %v6066_v5, 20.0  ;;  %p4003_p4 = scmp.lt.s32.totalorder %s4001_s23, %s3995_s29 }
 0x35a   : > { %3029 = vst [vmem:[%s4356_s18 + $0x68] sm:$0xff] %v3367_v24  ;;  %v2735_v48 = vadd.f32 1.0, %v6121_v21  ;;  %v3838_v55 = vpop.eup %3837  ;;  %v2738_v52 = vmul.f32 -0.5, %v6121_v21  ;;  %v2596_v29 = vmul.f32 %v6114_v58, %v2595_v50  ;;  %v2741_v32 = vand.u32 2147483647, %v6121_v21 }
 0x35b   : > { %v2820_v54 = vmul.f32 %v3838_v55, %v5915_v51  ;;  %v2590_v6 = vsel %vm2589_vm0, %v2587_v30, %v2584_v49  ;;  %v2870_v24 = vunpack.c.l.bf16 %v2847_v45  ;;  %v2871_v53 = vunpack.c.h.bf16 %v2847_v45  ;;  %p4004_p6 = por %p4003_p4, %p4002_p12 }
 0x35c   : > { %3849 = vlog2.f32 %v2735_v48  ;;  %v2758_v31 = vsel %vm2342_vm1, %v5985_v9, %v2590_v6  ;;  %v2739_v38 = vadd.f32 1.0, %v2738_v52  ;;  %vm2742_vm6 = vcmp.lt.f32.partialorder %v2741_v32, 0.0004427343 }
 0x35d   : > { %v2900_v51 = vadd.f32 %v2868_v35, %v2820_v54  ;;  %3851 = vtanh.f32 %v2758_v31  ;;  %v2886_v23 = vunpack.c.l.bf16 %v2855_v61  ;;  %v2887_v34 = vunpack.c.h.bf16 %v2855_v61  ;;  %p4005_p13 = pnand %p4004_p6, %p3998_p10 }
 0x35e   : > { %v2740_v58 = vmul.f32 %v6121_v21, %v2739_v38 }
 0x35f   : > { %v3840_v60 = vpop.eup %3839 }
 0x360   : > { %v3842_v28 = vpop.eup %3841  ;;  %v2821_v13 = vmul.f32 %v3840_v60, %v5948_v46  ;;  %v2884_v46 = vunpack.c.l.bf16 %v2854_v10 }
 0x361   : > { %v3844_v14 = vpop.eup %3843  ;;  %v2836_v22 = vmul.f32 %v3842_v28, %v5929_v8 }
 0x362   : > { %v2901_v37 = vadd.f32 %v2869_v18, %v2821_v13  ;;  %v2728_v40 = vmul.f32 0.6931472, %v3844_v14 }
 0x363   : > { %v2916_v26 = vadd.f32 %v2884_v46, %v2836_v22 }
 0x364   : > { %v3360_v42 = vpack.c.bf16 %v2901_v37, %v2900_v51  ;;  %v2734_v33 = vsel %vm2733_vm2, %v2731_v0, %v2728_v40 }
 0x365   : > { %v3846_v47 = vpop.eup %3845  ;;  %v2774_v57 = vsel %vm2358_vm3, %v6026_v16, %v2734_v33 }
 0x366   : > { %v3848_v11 = vpop.eup %3847  ;;  %3022 = vst [vmem:[%s4356_s18 + $0x30] sm:$0xff] %v3360_v42  ;;  %v2593_v15 = vmul.f32 0.6931472, %v3846_v47  ;;  %3853 = vtanh.f32 %v2774_v57 }
 0x367   : > { %v2837_v2 = vmul.f32 %v3848_v11, %v5964_v43 }
 0x368   : > { %v2599_v8 = vsel %vm2598_vm4, %v2596_v29, %v2593_v15 }
 0x369   : > { %v3850_v56 = vpop.eup %3849  ;;  %v2917_v12 = vadd.f32 %v2885_v62, %v2837_v2  ;;  %v2759_v7 = vsel %vm2343_vm5, %v6053_v20, %v2599_v8 }
 0x36a   : > { %3855 = vtanh.f32 %v2759_v7  ;;  %v2737_v59 = vmul.f32 0.6931472, %v3850_v56  ;;  %v3852_v25 = vpop.eup %3851 }
 0x36b   : > { %v3368_v43 = vpack.c.bf16 %v2917_v12, %v2916_v26  ;;  %v2822_v41 = vmul.f32 %v3852_v25, %v5985_v9 }
 0x36c   : > { %v2743_v39 = vsel %vm2742_vm6, %v2740_v58, %v2737_v59 }
 0x36d   : > { %3030 = vst [vmem:[%s4356_s18 + $0x70] sm:$0xff] %v3368_v43  ;;  %v2775_v4 = vsel %vm2359_vm7, %v6066_v5, %v2743_v39  ;;  %v2902_v44 = vadd.f32 %v2870_v24, %v2822_v41 }
 0x36e   : > { %3857 = vtanh.f32 %v2775_v4 }
 0x373   : > { %v3854_v27 = vpop.eup %3853 }
 0x374   : > { %v2838_v48 = vmul.f32 %v3854_v27, %v6026_v16 }
 0x376   : > { %v2918_v63 = vadd.f32 %v2886_v23, %v2838_v48 }
 0x377   : > { %v3856_v3 = vpop.eup %3855 }
 0x378   : > { %v2823_v21 = vmul.f32 %v3856_v3, %v6053_v20 }
 0x37a   : > { %v2903_v55 = vadd.f32 %v2871_v53, %v2823_v21 }
 0x37b   : > { %v3858_v19 = vpop.eup %3857 }
 0x37c   : > { %v3361_v49 = vpack.c.bf16 %v2903_v55, %v2902_v44  ;;  %v2839_v9 = vmul.f32 %v3858_v19, %v6066_v5 }
 0x37e   : > { %3023 = vst [vmem:[%s4356_s18 + $0x38] sm:$0xff] %v3361_v49  ;;  %v2919_v1 = vadd.f32 %v2887_v34, %v2839_v9 }
 0x380   : > { %v3369_v16 = vpack.c.bf16 %v2919_v1, %v2918_v63 }
 0x382   : > { %3031 = vst [vmem:[%s4356_s18 + $0x78] sm:$0xff] %v3369_v16 }
 0x383   : > { %4008 = shalt.err (!%p4005_p13)
}
 0x384   : > { %s4009_s18 = scalar_lea.hbm %s6164_s20, 2048  ;;  %s4013_s14 = scalar_lea.hbm %s6215_s6, 8192 }
 0x385   : > { %p4010_p0 = scmp.ne.s32.totalorder %s6164_s20, %s4009_s18  ;;  %p4014_p11 = scmp.lt.s32.totalorder %s6164_s20, %s6215_s6 }
 0x386   : > { %p4015_p2 = scmp.lt.s32.totalorder %s4013_s14, %s4009_s18 }
 0x387   : > { %p4011_p7 = pnand %p4010_p0, %p6354_p9 }
 0x388   : > { %p4016_p3 = por %p4015_p2, %p4014_p11 }
 0x389   : > { %p4012_p1 = pneg %p4011_p7 }
 0x38b   : > { %p4017_p8 = pnand %p4016_p3, %p4012_p1 }
 0x38d   : > { %4020 = shalt.err (!%p4017_p8)
}
 0x38e   : > { %s4089_s27 = smov 128   ;;  %s4090_s13 = smov 512  }
 0x38f   : > { %s4091_s21 = smov 8  }
 0x390   : > { %3417 = dma.vmem_to_hbm [thread:$0]  (%p6354_p9), %s6166_s17, 2048, %s6164_s20, %s3033_s25, %s4089_s27, %s4090_s13, %s4091_s21  }
 0x391 PF: > { %s6355_s3 = sld [smem:[#allocation17_spill]]  ;;  %p3445_p5 = scmp.ge.s32.totalorder %s4071_s24, 2 }
 0x392   : > { %s6356_s16 = sld [smem:[#allocation21_spill]] }
 0x397   : > { %s3061_s28 = sand.u32 1, %s6355_s3  }
 0x398   : > { %p6357_p10 = scmp.ne.s32.totalorder %s6356_s16, 0  ;;  %s3062_s30 = scalar_lea.sflag [#allocation6], %s3061_s28 }
 0x39a   : > { %p3437_p12 = pnand %p3445_p5, %p6357_p10 }
 0x39c   : > { %p3438_p4 = pneg %p3437_p12 }
 0x39e   : > { %4054 = dma.done.wait (%p3438_p4), %s3062_s30, 2048  }
 0x39f   : > { %4056 = vsyncadd (%p3438_p4), %s3062_s30, 4294965248  ;;  %s6358_s24 = sld [smem:[#allocation19_spill]]  ;;  %s6361_s21 = smov %s4063_s22 }
 0x3a0   : > { %s6359_s11 = sld [smem:[#allocation18_spill]] }
 0x3a1   : > { %s6360_s23 = sld [smem:[#allocation20_spill]] }
 0x3a5   : > { %p18_p6 = scmp.ge.s32.totalorder %s6358_s24, 6  }
 0x3a6   : > { %s6362_s22 = smov %s6359_s11 }
 0x3a7   :  { %20 = sbr.rel (!%p18_p6) target bundleno = 8 (0x8), region = 148 }
 0x3ac   :  { %3067 = vsyncpa [#allocation5], 1 }
 0x3ad   :  { %3069 = vsyncpa [#allocation5 + $0x1], 1 }
 0x3ae   :  { %3070 = vsyncpa [#allocation8], 1 }
 0x3af   :  { %3071 = vsyncpa [#allocation6], 1 }
 0x3b0   :  { %3073 = vsyncpa [#allocation6 + $0x1], 1 }

</bundles_post_ra>
